<compile_context>
chip_gen: v7x
topology: tpu7x:2x2x1
jax: 0.10.0
libtpu: 0.0.40
codegen_flags: <defaults>
</compile_context>

<pallas_src>
import math
import functools

import jax
import jax.numpy as jnp
from jax.experimental import pallas as pl
from jax.experimental.pallas import tpu as pltpu

# ---------------- small synthetic config ----------------
BATCH = 2
SEQ = 8
HIDDEN = 32
HEADS = 2
HEAD_DIM = HIDDEN // HEADS
INTERMEDIATE = 64
VOCAB = 128          # multiple of 128 -> lane-dense logits
LAYERS = 2
MAX_POS = 16
TYPE_VOCAB = 2
TYPE_PAD = 8         # type-embedding table padded to 8 rows (rows >= TYPE_VOCAB are zero)
LN_EPS = 1e-12
SQRT2 = math.sqrt(2.0)


# ---------------- single fused kernel ----------------
def _bert_lm_kernel(
    ids_ref, pos_ref, typ_ref, mask_ref, labels_ref,
    word_emb_ref, pos_emb_ref, type_emb_ref, emb_ln_g_ref, emb_ln_b_ref,
    qkv_w_ref, qkv_b_ref, o_w_ref, o_b_ref, attn_ln_g_ref, attn_ln_b_ref,
    ffn1_w_ref, ffn1_b_ref, ffn2_w_ref, ffn2_b_ref, ffn_ln_g_ref, ffn_ln_b_ref,
    head_w_ref, head_b_ref, head_ln_g_ref, head_ln_b_ref, dec_w_ref, dec_b_ref,
    loss_ref, attn_stage_ref, *, batch, seq):
    m_tokens = batch * seq
    scale = 1.0 / math.sqrt(HEAD_DIM)

    def mxu(a, b):
        return jnp.dot(a, b, preferred_element_type=jnp.float32)

    def layer_norm(h, g, b):
        mu = jnp.mean(h, axis=-1, keepdims=True)
        var = jnp.mean((h - mu) ** 2, axis=-1, keepdims=True)
        return (h - mu) * jax.lax.rsqrt(var + LN_EPS) * g + b

    def gelu(y):
        # exact erf-based GELU (matches torch F.gelu default / _gelu_python)
        return y * 0.5 * (1.0 + jax.lax.erf(y / SQRT2))

    # ---- embeddings: one-hot gathers on the MXU, everything stays in VMEM ----
    ids = ids_ref[...]                                   # (M, 1) i32
    pos = pos_ref[...]                                   # (M, 1) i32
    typ = typ_ref[...]                                   # (M, 1) i32
    word_oh = (jax.lax.broadcasted_iota(jnp.int32, (m_tokens, VOCAB), 1)
               == ids).astype(jnp.float32)
    pos_oh = (jax.lax.broadcasted_iota(jnp.int32, (m_tokens, MAX_POS), 1)
              == pos).astype(jnp.float32)
    typ_oh = (jax.lax.broadcasted_iota(jnp.int32, (m_tokens, TYPE_PAD), 1)
              == typ).astype(jnp.float32)
    emb = (mxu(word_oh, word_emb_ref[...])
           + mxu(pos_oh, pos_emb_ref[...])
           + mxu(typ_oh, type_emb_ref[...]))
    x = layer_norm(emb, emb_ln_g_ref[...], emb_ln_b_ref[...])

    mask = mask_ref[...]                                 # (B, S) f32

    # ---- encoder layers (fully fused; intermediates never leave VMEM) ----
    for l in range(LAYERS):
        qkv = mxu(x, qkv_w_ref[l]) + qkv_b_ref[l]        # (M, 3H): fused QKV matmul
        o_w_l = o_w_ref[l]                               # (H, H)
        for b in range(batch):
            r0 = b * seq
            bias = (1.0 - mask[b:b + 1, :]) * -10000.0   # (1, S) BERT extended mask
            acc_b = jnp.zeros((seq, HIDDEN), jnp.float32)
            for hi in range(HEADS):
                c0 = hi * HEAD_DIM
                q_bh = qkv[r0:r0 + seq, c0:c0 + HEAD_DIM]
                k_bh = qkv[r0:r0 + seq, HIDDEN + c0:HIDDEN + c0 + HEAD_DIM]
                v_bh = qkv[r0:r0 + seq, 2 * HIDDEN + c0:2 * HIDDEN + c0 + HEAD_DIM]
                s = jnp.einsum("qd,kd->qk", q_bh, k_bh,
                               preferred_element_type=jnp.float32) * scale + bias
                s_max = jnp.max(s, axis=-1, keepdims=True)
                p = jnp.exp(s - s_max)
                p = p * pl.reciprocal(jnp.sum(p, axis=-1, keepdims=True), approx=True)
                ctx_bh = mxu(p, v_bh)                    # (S, D)
                # fold head-merge into the output projection: ctx @ W_o == sum_h ctx_h @ W_o[h]
                acc_b = acc_b + mxu(ctx_bh, o_w_l[c0:c0 + HEAD_DIM, :])
            attn_stage_ref[pl.ds(r0, seq), :] = acc_b
        attn_out = attn_stage_ref[...] + o_b_ref[l]
        x = layer_norm(attn_out + x, attn_ln_g_ref[l], attn_ln_b_ref[l])

        h1 = gelu(mxu(x, ffn1_w_ref[l]) + ffn1_b_ref[l])
        ffn_out = mxu(h1, ffn2_w_ref[l]) + ffn2_b_ref[l]
        x = layer_norm(ffn_out + x, ffn_ln_g_ref[l], ffn_ln_b_ref[l])

    # ---- BertOnlyMLMHead: dense -> erf-GELU -> LayerNorm -> decoder (+bias) ----
    hh = gelu(mxu(x, head_w_ref[...]) + head_b_ref[...])
    hh = layer_norm(hh, head_ln_g_ref[...], head_ln_b_ref[...])
    logits = mxu(hh, dec_w_ref[...]) + dec_b_ref[...]    # (M, VOCAB), lane-dense

    # ---- fused masked-LM cross-entropy (mean over labels != -100) ----
    labels = labels_ref[...]                             # (M, 1) i32
    lmax = jnp.max(logits, axis=-1, keepdims=True)
    lse = lmax + jnp.log(jnp.sum(jnp.exp(logits - lmax), axis=-1, keepdims=True))
    col = jax.lax.broadcasted_iota(jnp.int32, (m_tokens, VOCAB), 1)
    label_logit = jnp.sum(jnp.where(col == labels, logits, 0.0),
                          axis=-1, keepdims=True)
    nll = lse - label_logit                              # (M, 1)
    valid = (labels != -100).astype(jnp.float32)         # ignore_index=-100
    total = jnp.sum(nll * valid)
    count = jnp.sum(valid)
    # NOTE: if every label is -100 this is 0/0 = NaN, matching torch.nn.CrossEntropyLoss.
    loss_ref[...] = jnp.reshape(total / count, (1, 1))


def _full_spec(shape):
    zero = (0,) * len(shape)

    def index_map(i):
        return zero

    return pl.BlockSpec(tuple(shape), index_map)


# ---------------- deterministic parameter init ----------------
def init_params(key):
    keys = iter(jax.random.split(key, 32))

    def normal(shape, std=0.02):
        return (std * jax.random.normal(next(keys), shape)).astype(jnp.float32)

    def zeros(shape):
        return jnp.zeros(shape, jnp.float32)

    def ones(shape):
        return jnp.ones(shape, jnp.float32)

    L, H, I, V = LAYERS, HIDDEN, INTERMEDIATE, VOCAB
    params = {
        "word_emb": normal((V, H)),
        "pos_emb": normal((MAX_POS, H)),
        # padded to TYPE_PAD rows for sublane alignment; extra rows are zero & unused
        "type_emb": jnp.concatenate(
            [normal((TYPE_VOCAB, H)), zeros((TYPE_PAD - TYPE_VOCAB, H))], axis=0),
        "emb_ln_g": ones((1, H)), "emb_ln_b": zeros((1, H)),
        # per-layer params stacked on a leading LAYERS axis (QKV fused into one matmul)
        "qkv_w": normal((L, H, 3 * H)), "qkv_b": zeros((L, 1, 3 * H)),
        "o_w": normal((L, H, H)), "o_b": zeros((L, 1, H)),
        "attn_ln_g": ones((L, 1, H)), "attn_ln_b": zeros((L, 1, H)),
        "ffn1_w": normal((L, H, I)), "ffn1_b": zeros((L, 1, I)),
        "ffn2_w": normal((L, I, H)), "ffn2_b": zeros((L, 1, H)),
        "ffn_ln_g": ones((L, 1, H)), "ffn_ln_b": zeros((L, 1, H)),
        # BertOnlyMLMHead / BertLMPredictionHead
        "head_dense_w": normal((H, H)), "head_dense_b": zeros((1, H)),
        "head_ln_g": ones((1, H)), "head_ln_b": zeros((1, H)),
        "dec_w": normal((H, V)), "dec_b": zeros((1, V)),   # decoder bias init = zeros
    }
    return params


# ---------------- full BERTLM forward (single pallas_call) ----------------
def bert_lm_forward(params, input_ids, token_type_ids, attention_mask, lm_labels):
    B, S = input_ids.shape
    M = B * S

    ids = input_ids.reshape(M, 1).astype(jnp.int32)
    pos = jnp.tile(jnp.arange(S, dtype=jnp.int32), B).reshape(M, 1)
    typ = token_type_ids.reshape(M, 1).astype(jnp.int32)
    mask = attention_mask.reshape(B, S).astype(jnp.float32)
    labels = lm_labels.reshape(M, 1).astype(jnp.int32)

    args = [
        ids, pos, typ, mask, labels,
        params["word_emb"], params["pos_emb"], params["type_emb"],
        params["emb_ln_g"], params["emb_ln_b"],
        params["qkv_w"], params["qkv_b"], params["o_w"], params["o_b"],
        params["attn_ln_g"], params["attn_ln_b"],
        params["ffn1_w"], params["ffn1_b"], params["ffn2_w"], params["ffn2_b"],
        params["ffn_ln_g"], params["ffn_ln_b"],
        params["head_dense_w"], params["head_dense_b"],
        params["head_ln_g"], params["head_ln_b"],
        params["dec_w"], params["dec_b"],
    ]

    loss = pl.pallas_call(
        functools.partial(_bert_lm_kernel, batch=B, seq=S),
        out_shape=jax.ShapeDtypeStruct((1, 1), jnp.float32),
        grid=(1,),
        in_specs=[_full_spec(a.shape) for a in args],
        out_specs=pl.BlockSpec((1, 1), lambda i: (0, 0)),
        scratch_shapes=[pltpu.VMEM((M, HIDDEN), jnp.float32)],  # attention staging
    )(*args)
    return loss[0, 0]


if __name__ == "__main__":
    key = jax.random.PRNGKey(0)
    pkey, ikey, lkey = jax.random.split(key, 3)

    params = init_params(pkey)
    input_ids = jax.random.randint(ikey, (BATCH, SEQ), 0, VOCAB, dtype=jnp.int32)
    token_type_ids = jnp.zeros((BATCH, SEQ), jnp.int32)
    attention_mask = jnp.ones((BATCH, SEQ), jnp.int32)
    lm_labels = jax.random.randint(lkey, (BATCH, SEQ), 0, VOCAB, dtype=jnp.int32)

    loss = jax.jit(bert_lm_forward)(params, input_ids, token_type_ids,
                                    attention_mask, lm_labels)
    jax.block_until_ready(loss)
    assert loss.shape == () and jnp.isfinite(loss)
    print("KERNEL_OK")
</pallas_src>

<mosaic_0001>
module attributes {stable_mosaic.version = 11 : i64} {
  func.func @_bert_lm_kernel(%arg0: i32, %arg1: memref<16x1xi32, #tpu.memory_space<vmem>>, %arg2: memref<16x1xi32, #tpu.memory_space<vmem>>, %arg3: memref<16x1xi32, #tpu.memory_space<vmem>>, %arg4: memref<2x8xf32, #tpu.memory_space<vmem>>, %arg5: memref<16x1xi32, #tpu.memory_space<vmem>>, %arg6: memref<128x32xf32, #tpu.memory_space<vmem>>, %arg7: memref<16x32xf32, #tpu.memory_space<vmem>>, %arg8: memref<8x32xf32, #tpu.memory_space<vmem>>, %arg9: memref<1x32xf32, #tpu.memory_space<vmem>>, %arg10: memref<1x32xf32, #tpu.memory_space<vmem>>, %arg11: memref<2x32x96xf32, #tpu.memory_space<vmem>>, %arg12: memref<2x1x96xf32, #tpu.memory_space<vmem>>, %arg13: memref<2x32x32xf32, #tpu.memory_space<vmem>>, %arg14: memref<2x1x32xf32, #tpu.memory_space<vmem>>, %arg15: memref<2x1x32xf32, #tpu.memory_space<vmem>>, %arg16: memref<2x1x32xf32, #tpu.memory_space<vmem>>, %arg17: memref<2x32x64xf32, #tpu.memory_space<vmem>>, %arg18: memref<2x1x64xf32, #tpu.memory_space<vmem>>, %arg19: memref<2x64x32xf32, #tpu.memory_space<vmem>>, %arg20: memref<2x1x32xf32, #tpu.memory_space<vmem>>, %arg21: memref<2x1x32xf32, #tpu.memory_space<vmem>>, %arg22: memref<2x1x32xf32, #tpu.memory_space<vmem>>, %arg23: memref<32x32xf32, #tpu.memory_space<vmem>>, %arg24: memref<1x32xf32, #tpu.memory_space<vmem>>, %arg25: memref<1x32xf32, #tpu.memory_space<vmem>>, %arg26: memref<1x32xf32, #tpu.memory_space<vmem>>, %arg27: memref<32x128xf32, #tpu.memory_space<vmem>>, %arg28: memref<1x128xf32, #tpu.memory_space<vmem>>, %arg29: memref<1x1xf32, #tpu.memory_space<vmem>>, %arg30: memref<16x32xf32, #tpu.memory_space<vmem>>) attributes {dimension_semantics = [#tpu.dimension_semantics<arbitrary>], iteration_bounds = array<i64: 1>, scalar_prefetch = 0 : i64, scratch_operands = 1 : i64, tpu.core_type = #tpu.core_type<tc>, window_params = [{pipeline_mode = #tpu.pipeline_mode<synchronous>, transform_indices = @transform_0, window_bounds = array<i64: 16, 1>}, {pipeline_mode = #tpu.pipeline_mode<synchronous>, transform_indices = @transform_1, window_bounds = array<i64: 16, 1>}, {pipeline_mode = #tpu.pipeline_mode<synchronous>, transform_indices = @transform_2, window_bounds = array<i64: 16, 1>}, {pipeline_mode = #tpu.pipeline_mode<synchronous>, transform_indices = @transform_3, window_bounds = array<i64: 2, 8>}, {pipeline_mode = #tpu.pipeline_mode<synchronous>, transform_indices = @transform_4, window_bounds = array<i64: 16, 1>}, {pipeline_mode = #tpu.pipeline_mode<synchronous>, transform_indices = @transform_5, window_bounds = array<i64: 128, 32>}, {pipeline_mode = #tpu.pipeline_mode<synchronous>, transform_indices = @transform_6, window_bounds = array<i64: 16, 32>}, {pipeline_mode = #tpu.pipeline_mode<synchronous>, transform_indices = @transform_7, window_bounds = array<i64: 8, 32>}, {pipeline_mode = #tpu.pipeline_mode<synchronous>, transform_indices = @transform_8, window_bounds = array<i64: 1, 32>}, {pipeline_mode = #tpu.pipeline_mode<synchronous>, transform_indices = @transform_9, window_bounds = array<i64: 1, 32>}, {pipeline_mode = #tpu.pipeline_mode<synchronous>, transform_indices = @transform_10, window_bounds = array<i64: 2, 32, 96>}, {pipeline_mode = #tpu.pipeline_mode<synchronous>, transform_indices = @transform_11, window_bounds = array<i64: 2, 1, 96>}, {pipeline_mode = #tpu.pipeline_mode<synchronous>, transform_indices = @transform_12, window_bounds = array<i64: 2, 32, 32>}, {pipeline_mode = #tpu.pipeline_mode<synchronous>, transform_indices = @transform_13, window_bounds = array<i64: 2, 1, 32>}, {pipeline_mode = #tpu.pipeline_mode<synchronous>, transform_indices = @transform_14, window_bounds = array<i64: 2, 1, 32>}, {pipeline_mode = #tpu.pipeline_mode<synchronous>, transform_indices = @transform_15, window_bounds = array<i64: 2, 1, 32>}, {pipeline_mode = #tpu.pipeline_mode<synchronous>, transform_indices = @transform_16, window_bounds = array<i64: 2, 32, 64>}, {pipeline_mode = #tpu.pipeline_mode<synchronous>, transform_indices = @transform_17, window_bounds = array<i64: 2, 1, 64>}, {pipeline_mode = #tpu.pipeline_mode<synchronous>, transform_indices = @transform_18, window_bounds = array<i64: 2, 64, 32>}, {pipeline_mode = #tpu.pipeline_mode<synchronous>, transform_indices = @transform_19, window_bounds = array<i64: 2, 1, 32>}, {pipeline_mode = #tpu.pipeline_mode<synchronous>, transform_indices = @transform_20, window_bounds = array<i64: 2, 1, 32>}, {pipeline_mode = #tpu.pipeline_mode<synchronous>, transform_indices = @transform_21, window_bounds = array<i64: 2, 1, 32>}, {pipeline_mode = #tpu.pipeline_mode<synchronous>, transform_indices = @transform_22, window_bounds = array<i64: 32, 32>}, {pipeline_mode = #tpu.pipeline_mode<synchronous>, transform_indices = @transform_23, window_bounds = array<i64: 1, 32>}, {pipeline_mode = #tpu.pipeline_mode<synchronous>, transform_indices = @transform_24, window_bounds = array<i64: 1, 32>}, {pipeline_mode = #tpu.pipeline_mode<synchronous>, transform_indices = @transform_25, window_bounds = array<i64: 1, 32>}, {pipeline_mode = #tpu.pipeline_mode<synchronous>, transform_indices = @transform_26, window_bounds = array<i64: 32, 128>}, {pipeline_mode = #tpu.pipeline_mode<synchronous>, transform_indices = @transform_27, window_bounds = array<i64: 1, 128>}, {pipeline_mode = #tpu.pipeline_mode<synchronous>, transform_indices = @transform_28, window_bounds = array<i64: 1, 1>}]} {
    %c0 = arith.constant 0 : index
    %c0_0 = arith.constant 0 : index
    %0 = vector.load %arg1[%c0, %c0_0] : memref<16x1xi32, #tpu.memory_space<vmem>>, vector<16x1xi32>
    %c0_1 = arith.constant 0 : index
    %c0_2 = arith.constant 0 : index
    %1 = vector.load %arg2[%c0_1, %c0_2] : memref<16x1xi32, #tpu.memory_space<vmem>>, vector<16x1xi32>
    %c0_3 = arith.constant 0 : index
    %c0_4 = arith.constant 0 : index
    %2 = vector.load %arg3[%c0_3, %c0_4] : memref<16x1xi32, #tpu.memory_space<vmem>>, vector<16x1xi32>
    %3 = tpu.iota {dimensions = array<i32: 1>} : vector<16x128xi32>
    %4 = vector.broadcast %0 : vector<16x1xi32> to vector<16x128xi32>
    %5 = arith.cmpi eq, %3, %4 : vector<16x128xi32>
    %6 = arith.extui %5 : vector<16x128xi1> to vector<16x128xi32>
    %7 = arith.sitofp %6 : vector<16x128xi32> to vector<16x128xf32>
    %8 = tpu.iota {dimensions = array<i32: 1>} : vector<16x16xi32>
    %9 = vector.broadcast %1 : vector<16x1xi32> to vector<16x16xi32>
    %10 = arith.cmpi eq, %8, %9 : vector<16x16xi32>
    %11 = arith.extui %10 : vector<16x16xi1> to vector<16x16xi32>
    %12 = arith.sitofp %11 : vector<16x16xi32> to vector<16x16xf32>
    %13 = tpu.iota {dimensions = array<i32: 1>} : vector<16x8xi32>
    %14 = vector.broadcast %2 : vector<16x1xi32> to vector<16x8xi32>
    %15 = arith.cmpi eq, %13, %14 : vector<16x8xi32>
    %16 = arith.extui %15 : vector<16x8xi1> to vector<16x8xi32>
    %17 = arith.sitofp %16 : vector<16x8xi32> to vector<16x8xf32>
    %c0_5 = arith.constant 0 : index
    %c0_6 = arith.constant 0 : index
    %18 = vector.load %arg6[%c0_5, %c0_6] : memref<128x32xf32, #tpu.memory_space<vmem>>, vector<128x32xf32>
    %cst = arith.constant dense<0.000000e+00> : vector<16x32xf32>
    %19 = tpu.matmul %7, %18, %cst {dimension_numbers = #tpu.dot_dimension_numbers<[1], [0], [0], [1], [0, 0, 1, 1], [], []>} : vector<16x128xf32>, vector<128x32xf32>, vector<16x32xf32> -> vector<16x32xf32>
    %c0_7 = arith.constant 0 : index
    %c0_8 = arith.constant 0 : index
    %20 = vector.load %arg7[%c0_7, %c0_8] : memref<16x32xf32, #tpu.memory_space<vmem>>, vector<16x32xf32>
    %cst_9 = arith.constant dense<0.000000e+00> : vector<16x32xf32>
    %21 = tpu.matmul %12, %20, %cst_9 {dimension_numbers = #tpu.dot_dimension_numbers<[1], [0], [0], [1], [0, 0, 1, 1], [], []>} : vector<16x16xf32>, vector<16x32xf32>, vector<16x32xf32> -> vector<16x32xf32>
    %22 = arith.addf %19, %21 : vector<16x32xf32>
    %c0_10 = arith.constant 0 : index
    %c0_11 = arith.constant 0 : index
    %23 = vector.load %arg8[%c0_10, %c0_11] : memref<8x32xf32, #tpu.memory_space<vmem>>, vector<8x32xf32>
    %cst_12 = arith.constant dense<0.000000e+00> : vector<16x32xf32>
    %24 = tpu.matmul %17, %23, %cst_12 {dimension_numbers = #tpu.dot_dimension_numbers<[1], [0], [0], [1], [0, 0, 1, 1], [], []>} : vector<16x8xf32>, vector<8x32xf32>, vector<16x32xf32> -> vector<16x32xf32>
    %25 = arith.addf %22, %24 : vector<16x32xf32>
    %c0_13 = arith.constant 0 : index
    %c0_14 = arith.constant 0 : index
    %26 = vector.load %arg9[%c0_13, %c0_14] : memref<1x32xf32, #tpu.memory_space<vmem>>, vector<1x32xf32>
    %c0_15 = arith.constant 0 : index
    %c0_16 = arith.constant 0 : index
    %27 = vector.load %arg10[%c0_15, %c0_16] : memref<1x32xf32, #tpu.memory_space<vmem>>, vector<1x32xf32>
    %cst_17 = arith.constant dense<0.000000e+00> : vector<16xf32>
    %28 = vector.multi_reduction <add>, %25, %cst_17 [1] : vector<16x32xf32> to vector<16xf32>
    %29 = vector.shape_cast %28 : vector<16xf32> to vector<16x1xf32>
    %cst_18 = arith.constant 3.200000e+01 : f32
    %30 = vector.broadcast %cst_18 : f32 to vector<16x1xf32>
    %31 = arith.divf %29, %30 : vector<16x1xf32>
    %32 = vector.broadcast %31 : vector<16x1xf32> to vector<16x32xf32>
    %33 = arith.subf %25, %32 : vector<16x32xf32>
    %34 = arith.mulf %33, %33 : vector<16x32xf32>
    %cst_19 = arith.constant dense<0.000000e+00> : vector<16xf32>
    %35 = vector.multi_reduction <add>, %34, %cst_19 [1] : vector<16x32xf32> to vector<16xf32>
    %36 = vector.shape_cast %35 : vector<16xf32> to vector<16x1xf32>
    %cst_20 = arith.constant 3.200000e+01 : f32
    %37 = vector.broadcast %cst_20 : f32 to vector<16x1xf32>
    %38 = arith.divf %36, %37 : vector<16x1xf32>
    %39 = vector.broadcast %31 : vector<16x1xf32> to vector<16x32xf32>
    %40 = arith.subf %25, %39 : vector<16x32xf32>
    %cst_21 = arith.constant 9.99999996E-13 : f32
    %41 = vector.broadcast %cst_21 : f32 to vector<16x1xf32>
    %42 = arith.addf %38, %41 : vector<16x1xf32>
    %43 = math.rsqrt %42 : vector<16x1xf32>
    %44 = vector.broadcast %43 : vector<16x1xf32> to vector<16x32xf32>
    %45 = arith.mulf %40, %44 : vector<16x32xf32>
    %46 = vector.broadcast %26 : vector<1x32xf32> to vector<16x32xf32>
    %47 = arith.mulf %45, %46 : vector<16x32xf32>
    %48 = vector.broadcast %27 : vector<1x32xf32> to vector<16x32xf32>
    %49 = arith.addf %47, %48 : vector<16x32xf32>
    %c0_22 = arith.constant 0 : index
    %c0_23 = arith.constant 0 : index
    %50 = vector.load %arg4[%c0_22, %c0_23] : memref<2x8xf32, #tpu.memory_space<vmem>>, vector<2x8xf32>
    %c0_24 = arith.constant 0 : index
    %c0_25 = arith.constant 0 : index
    %c0_26 = arith.constant 0 : index
    %51 = vector.load %arg11[%c0_24, %c0_25, %c0_26] : memref<2x32x96xf32, #tpu.memory_space<vmem>>, vector<1x32x96xf32>
    %52 = vector.shape_cast %51 : vector<1x32x96xf32> to vector<32x96xf32>
    %cst_27 = arith.constant dense<0.000000e+00> : vector<16x96xf32>
    %53 = tpu.matmul %49, %52, %cst_27 {dimension_numbers = #tpu.dot_dimension_numbers<[1], [0], [0], [1], [0, 0, 1, 1], [], []>} : vector<16x32xf32>, vector<32x96xf32>, vector<16x96xf32> -> vector<16x96xf32>
    %c0_28 = arith.constant 0 : index
    %c0_29 = arith.constant 0 : index
    %c0_30 = arith.constant 0 : index
    %54 = vector.load %arg12[%c0_28, %c0_29, %c0_30] : memref<2x1x96xf32, #tpu.memory_space<vmem>>, vector<1x1x96xf32>
    %55 = vector.shape_cast %54 : vector<1x1x96xf32> to vector<1x96xf32>
    %56 = vector.broadcast %55 : vector<1x96xf32> to vector<16x96xf32>
    %57 = arith.addf %53, %56 : vector<16x96xf32>
    %c0_31 = arith.constant 0 : index
    %c0_32 = arith.constant 0 : index
    %c0_33 = arith.constant 0 : index
    %58 = vector.load %arg13[%c0_31, %c0_32, %c0_33] : memref<2x32x32xf32, #tpu.memory_space<vmem>>, vector<1x32x32xf32>
    %59 = vector.shape_cast %58 : vector<1x32x32xf32> to vector<32x32xf32>
    %60 = vector.extract_strided_slice %50 {offsets = [0, 0], sizes = [1, 8], strides = [1, 1]} : vector<2x8xf32> to vector<1x8xf32>
    %cst_34 = arith.constant 1.000000e+00 : f32
    %61 = vector.broadcast %cst_34 : f32 to vector<1x8xf32>
    %62 = arith.subf %61, %60 : vector<1x8xf32>
    %cst_35 = arith.constant -1.000000e+04 : f32
    %63 = vector.broadcast %cst_35 : f32 to vector<1x8xf32>
    %64 = arith.mulf %62, %63 : vector<1x8xf32>
    %cst_36 = arith.constant 0.000000e+00 : f32
    %65 = vector.broadcast %cst_36 : f32 to vector<8x32xf32>
    %66 = vector.extract_strided_slice %57 {offsets = [0, 0], sizes = [8, 16], strides = [1, 1]} : vector<16x96xf32> to vector<8x16xf32>
    %67 = vector.extract_strided_slice %57 {offsets = [0, 32], sizes = [8, 16], strides = [1, 1]} : vector<16x96xf32> to vector<8x16xf32>
    %68 = vector.extract_strided_slice %57 {offsets = [0, 64], sizes = [8, 16], strides = [1, 1]} : vector<16x96xf32> to vector<8x16xf32>
    "tpu.trace_start"() <{level = 10 : i32, message = "qd,kd->qk"}> : () -> ()
    %cst_37 = arith.constant dense<0.000000e+00> : vector<8x8xf32>
    %69 = tpu.matmul %66, %67, %cst_37 {dimension_numbers = #tpu.dot_dimension_numbers<[1], [1], [0], [0], [0, 0, 1, 0], [], []>} : vector<8x16xf32>, vector<8x16xf32>, vector<8x8xf32> -> vector<8x8xf32>
    "tpu.trace_stop"() : () -> ()
    %cst_38 = arith.constant 2.500000e-01 : f32
    %70 = vector.broadcast %cst_38 : f32 to vector<8x8xf32>
    %71 = arith.mulf %69, %70 : vector<8x8xf32>
    %72 = vector.broadcast %64 : vector<1x8xf32> to vector<8x8xf32>
    %73 = arith.addf %71, %72 : vector<8x8xf32>
    %cst_39 = arith.constant dense<0xFF800000> : vector<8xf32>
    %74 = vector.multi_reduction <maximumf>, %73, %cst_39 [1] : vector<8x8xf32> to vector<8xf32>
    %75 = vector.shape_cast %74 : vector<8xf32> to vector<8x1xf32>
    %76 = vector.broadcast %75 : vector<8x1xf32> to vector<8x8xf32>
    %77 = arith.subf %73, %76 : vector<8x8xf32>
    %78 = math.exp %77 : vector<8x8xf32>
    %cst_40 = arith.constant dense<0.000000e+00> : vector<8xf32>
    %79 = vector.multi_reduction <add>, %78, %cst_40 [1] : vector<8x8xf32> to vector<8xf32>
    %80 = vector.shape_cast %79 : vector<8xf32> to vector<8x1xf32>
    %81 = tpu.reciprocal %80 {approx = true} : vector<8x1xf32> -> vector<8x1xf32>
    %82 = vector.broadcast %81 : vector<8x1xf32> to vector<8x8xf32>
    %83 = arith.mulf %78, %82 : vector<8x8xf32>
    %cst_41 = arith.constant dense<0.000000e+00> : vector<8x16xf32>
    %84 = tpu.matmul %83, %68, %cst_41 {dimension_numbers = #tpu.dot_dimension_numbers<[1], [0], [0], [1], [0, 0, 1, 1], [], []>} : vector<8x8xf32>, vector<8x16xf32>, vector<8x16xf32> -> vector<8x16xf32>
    %85 = vector.extract_strided_slice %59 {offsets = [0, 0], sizes = [16, 32], strides = [1, 1]} : vector<32x32xf32> to vector<16x32xf32>
    %cst_42 = arith.constant dense<0.000000e+00> : vector<8x32xf32>
    %86 = tpu.matmul %84, %85, %cst_42 {dimension_numbers = #tpu.dot_dimension_numbers<[1], [0], [0], [1], [0, 0, 1, 1], [], []>} : vector<8x16xf32>, vector<16x32xf32>, vector<8x32xf32> -> vector<8x32xf32>
    %87 = arith.addf %65, %86 : vector<8x32xf32>
    %88 = vector.extract_strided_slice %57 {offsets = [0, 16], sizes = [8, 16], strides = [1, 1]} : vector<16x96xf32> to vector<8x16xf32>
    %89 = vector.extract_strided_slice %57 {offsets = [0, 48], sizes = [8, 16], strides = [1, 1]} : vector<16x96xf32> to vector<8x16xf32>
    %90 = vector.extract_strided_slice %57 {offsets = [0, 80], sizes = [8, 16], strides = [1, 1]} : vector<16x96xf32> to vector<8x16xf32>
    "tpu.trace_start"() <{level = 10 : i32, message = "qd,kd->qk"}> : () -> ()
    %cst_43 = arith.constant dense<0.000000e+00> : vector<8x8xf32>
    %91 = tpu.matmul %88, %89, %cst_43 {dimension_numbers = #tpu.dot_dimension_numbers<[1], [1], [0], [0], [0, 0, 1, 0], [], []>} : vector<8x16xf32>, vector<8x16xf32>, vector<8x8xf32> -> vector<8x8xf32>
    "tpu.trace_stop"() : () -> ()
    %cst_44 = arith.constant 2.500000e-01 : f32
    %92 = vector.broadcast %cst_44 : f32 to vector<8x8xf32>
    %93 = arith.mulf %91, %92 : vector<8x8xf32>
    %94 = vector.broadcast %64 : vector<1x8xf32> to vector<8x8xf32>
    %95 = arith.addf %93, %94 : vector<8x8xf32>
    %cst_45 = arith.constant dense<0xFF800000> : vector<8xf32>
    %96 = vector.multi_reduction <maximumf>, %95, %cst_45 [1] : vector<8x8xf32> to vector<8xf32>
    %97 = vector.shape_cast %96 : vector<8xf32> to vector<8x1xf32>
    %98 = vector.broadcast %97 : vector<8x1xf32> to vector<8x8xf32>
    %99 = arith.subf %95, %98 : vector<8x8xf32>
    %100 = math.exp %99 : vector<8x8xf32>
    %cst_46 = arith.constant dense<0.000000e+00> : vector<8xf32>
    %101 = vector.multi_reduction <add>, %100, %cst_46 [1] : vector<8x8xf32> to vector<8xf32>
    %102 = vector.shape_cast %101 : vector<8xf32> to vector<8x1xf32>
    %103 = tpu.reciprocal %102 {approx = true} : vector<8x1xf32> -> vector<8x1xf32>
    %104 = vector.broadcast %103 : vector<8x1xf32> to vector<8x8xf32>
    %105 = arith.mulf %100, %104 : vector<8x8xf32>
    %cst_47 = arith.constant dense<0.000000e+00> : vector<8x16xf32>
    %106 = tpu.matmul %105, %90, %cst_47 {dimension_numbers = #tpu.dot_dimension_numbers<[1], [0], [0], [1], [0, 0, 1, 1], [], []>} : vector<8x8xf32>, vector<8x16xf32>, vector<8x16xf32> -> vector<8x16xf32>
    %107 = vector.extract_strided_slice %59 {offsets = [16, 0], sizes = [16, 32], strides = [1, 1]} : vector<32x32xf32> to vector<16x32xf32>
    %cst_48 = arith.constant dense<0.000000e+00> : vector<8x32xf32>
    %108 = tpu.matmul %106, %107, %cst_48 {dimension_numbers = #tpu.dot_dimension_numbers<[1], [0], [0], [1], [0, 0, 1, 1], [], []>} : vector<8x16xf32>, vector<16x32xf32>, vector<8x32xf32> -> vector<8x32xf32>
    %109 = arith.addf %87, %108 : vector<8x32xf32>
    %c0_49 = arith.constant 0 : index
    %c0_50 = arith.constant 0 : index
    %110 = vector.load %arg30[%c0_49, %c0_50] : memref<16x32xf32, #tpu.memory_space<vmem>>, vector<8x32xf32>
    tpu.vector_store %arg30[%c0_49, %c0_50], %109 {strides = array<i32>} : memref<16x32xf32, #tpu.memory_space<vmem>>, vector<8x32xf32>,
    %111 = vector.extract_strided_slice %50 {offsets = [1, 0], sizes = [1, 8], strides = [1, 1]} : vector<2x8xf32> to vector<1x8xf32>
    %cst_51 = arith.constant 1.000000e+00 : f32
    %112 = vector.broadcast %cst_51 : f32 to vector<1x8xf32>
    %113 = arith.subf %112, %111 : vector<1x8xf32>
    %cst_52 = arith.constant -1.000000e+04 : f32
    %114 = vector.broadcast %cst_52 : f32 to vector<1x8xf32>
    %115 = arith.mulf %113, %114 : vector<1x8xf32>
    %cst_53 = arith.constant 0.000000e+00 : f32
    %116 = vector.broadcast %cst_53 : f32 to vector<8x32xf32>
    %117 = vector.extract_strided_slice %57 {offsets = [8, 0], sizes = [8, 16], strides = [1, 1]} : vector<16x96xf32> to vector<8x16xf32>
    %118 = vector.extract_strided_slice %57 {offsets = [8, 32], sizes = [8, 16], strides = [1, 1]} : vector<16x96xf32> to vector<8x16xf32>
    %119 = vector.extract_strided_slice %57 {offsets = [8, 64], sizes = [8, 16], strides = [1, 1]} : vector<16x96xf32> to vector<8x16xf32>
    "tpu.trace_start"() <{level = 10 : i32, message = "qd,kd->qk"}> : () -> ()
    %cst_54 = arith.constant dense<0.000000e+00> : vector<8x8xf32>
    %120 = tpu.matmul %117, %118, %cst_54 {dimension_numbers = #tpu.dot_dimension_numbers<[1], [1], [0], [0], [0, 0, 1, 0], [], []>} : vector<8x16xf32>, vector<8x16xf32>, vector<8x8xf32> -> vector<8x8xf32>
    "tpu.trace_stop"() : () -> ()
    %cst_55 = arith.constant 2.500000e-01 : f32
    %121 = vector.broadcast %cst_55 : f32 to vector<8x8xf32>
    %122 = arith.mulf %120, %121 : vector<8x8xf32>
    %123 = vector.broadcast %115 : vector<1x8xf32> to vector<8x8xf32>
    %124 = arith.addf %122, %123 : vector<8x8xf32>
    %cst_56 = arith.constant dense<0xFF800000> : vector<8xf32>
    %125 = vector.multi_reduction <maximumf>, %124, %cst_56 [1] : vector<8x8xf32> to vector<8xf32>
    %126 = vector.shape_cast %125 : vector<8xf32> to vector<8x1xf32>
    %127 = vector.broadcast %126 : vector<8x1xf32> to vector<8x8xf32>
    %128 = arith.subf %124, %127 : vector<8x8xf32>
    %129 = math.exp %128 : vector<8x8xf32>
    %cst_57 = arith.constant dense<0.000000e+00> : vector<8xf32>
    %130 = vector.multi_reduction <add>, %129, %cst_57 [1] : vector<8x8xf32> to vector<8xf32>
    %131 = vector.shape_cast %130 : vector<8xf32> to vector<8x1xf32>
    %132 = tpu.reciprocal %131 {approx = true} : vector<8x1xf32> -> vector<8x1xf32>
    %133 = vector.broadcast %132 : vector<8x1xf32> to vector<8x8xf32>
    %134 = arith.mulf %129, %133 : vector<8x8xf32>
    %cst_58 = arith.constant dense<0.000000e+00> : vector<8x16xf32>
    %135 = tpu.matmul %134, %119, %cst_58 {dimension_numbers = #tpu.dot_dimension_numbers<[1], [0], [0], [1], [0, 0, 1, 1], [], []>} : vector<8x8xf32>, vector<8x16xf32>, vector<8x16xf32> -> vector<8x16xf32>
    %136 = vector.extract_strided_slice %59 {offsets = [0, 0], sizes = [16, 32], strides = [1, 1]} : vector<32x32xf32> to vector<16x32xf32>
    %cst_59 = arith.constant dense<0.000000e+00> : vector<8x32xf32>
    %137 = tpu.matmul %135, %136, %cst_59 {dimension_numbers = #tpu.dot_dimension_numbers<[1], [0], [0], [1], [0, 0, 1, 1], [], []>} : vector<8x16xf32>, vector<16x32xf32>, vector<8x32xf32> -> vector<8x32xf32>
    %138 = arith.addf %116, %137 : vector<8x32xf32>
    %139 = vector.extract_strided_slice %57 {offsets = [8, 16], sizes = [8, 16], strides = [1, 1]} : vector<16x96xf32> to vector<8x16xf32>
    %140 = vector.extract_strided_slice %57 {offsets = [8, 48], sizes = [8, 16], strides = [1, 1]} : vector<16x96xf32> to vector<8x16xf32>
    %141 = vector.extract_strided_slice %57 {offsets = [8, 80], sizes = [8, 16], strides = [1, 1]} : vector<16x96xf32> to vector<8x16xf32>
    "tpu.trace_start"() <{level = 10 : i32, message = "qd,kd->qk"}> : () -> ()
    %cst_60 = arith.constant dense<0.000000e+00> : vector<8x8xf32>
    %142 = tpu.matmul %139, %140, %cst_60 {dimension_numbers = #tpu.dot_dimension_numbers<[1], [1], [0], [0], [0, 0, 1, 0], [], []>} : vector<8x16xf32>, vector<8x16xf32>, vector<8x8xf32> -> vector<8x8xf32>
    "tpu.trace_stop"() : () -> ()
    %cst_61 = arith.constant 2.500000e-01 : f32
    %143 = vector.broadcast %cst_61 : f32 to vector<8x8xf32>
    %144 = arith.mulf %142, %143 : vector<8x8xf32>
    %145 = vector.broadcast %115 : vector<1x8xf32> to vector<8x8xf32>
    %146 = arith.addf %144, %145 : vector<8x8xf32>
    %cst_62 = arith.constant dense<0xFF800000> : vector<8xf32>
    %147 = vector.multi_reduction <maximumf>, %146, %cst_62 [1] : vector<8x8xf32> to vector<8xf32>
    %148 = vector.shape_cast %147 : vector<8xf32> to vector<8x1xf32>
    %149 = vector.broadcast %148 : vector<8x1xf32> to vector<8x8xf32>
    %150 = arith.subf %146, %149 : vector<8x8xf32>
    %151 = math.exp %150 : vector<8x8xf32>
    %cst_63 = arith.constant dense<0.000000e+00> : vector<8xf32>
    %152 = vector.multi_reduction <add>, %151, %cst_63 [1] : vector<8x8xf32> to vector<8xf32>
    %153 = vector.shape_cast %152 : vector<8xf32> to vector<8x1xf32>
    %154 = tpu.reciprocal %153 {approx = true} : vector<8x1xf32> -> vector<8x1xf32>
    %155 = vector.broadcast %154 : vector<8x1xf32> to vector<8x8xf32>
    %156 = arith.mulf %151, %155 : vector<8x8xf32>
    %cst_64 = arith.constant dense<0.000000e+00> : vector<8x16xf32>
    %157 = tpu.matmul %156, %141, %cst_64 {dimension_numbers = #tpu.dot_dimension_numbers<[1], [0], [0], [1], [0, 0, 1, 1], [], []>} : vector<8x8xf32>, vector<8x16xf32>, vector<8x16xf32> -> vector<8x16xf32>
    %158 = vector.extract_strided_slice %59 {offsets = [16, 0], sizes = [16, 32], strides = [1, 1]} : vector<32x32xf32> to vector<16x32xf32>
    %cst_65 = arith.constant dense<0.000000e+00> : vector<8x32xf32>
    %159 = tpu.matmul %157, %158, %cst_65 {dimension_numbers = #tpu.dot_dimension_numbers<[1], [0], [0], [1], [0, 0, 1, 1], [], []>} : vector<8x16xf32>, vector<16x32xf32>, vector<8x32xf32> -> vector<8x32xf32>
    %160 = arith.addf %138, %159 : vector<8x32xf32>
    %c8 = arith.constant 8 : index
    %c0_66 = arith.constant 0 : index
    %161 = vector.load %arg30[%c8, %c0_66] : memref<16x32xf32, #tpu.memory_space<vmem>>, vector<8x32xf32>
    tpu.vector_store %arg30[%c8, %c0_66], %160 {strides = array<i32>} : memref<16x32xf32, #tpu.memory_space<vmem>>, vector<8x32xf32>,
    %c0_67 = arith.constant 0 : index
    %c0_68 = arith.constant 0 : index
    %162 = vector.load %arg30[%c0_67, %c0_68] : memref<16x32xf32, #tpu.memory_space<vmem>>, vector<16x32xf32>
    %c0_69 = arith.constant 0 : index
    %c0_70 = arith.constant 0 : index
    %c0_71 = arith.constant 0 : index
    %163 = vector.load %arg14[%c0_69, %c0_70, %c0_71] : memref<2x1x32xf32, #tpu.memory_space<vmem>>, vector<1x1x32xf32>
    %164 = vector.shape_cast %163 : vector<1x1x32xf32> to vector<1x32xf32>
    %165 = vector.broadcast %164 : vector<1x32xf32> to vector<16x32xf32>
    %166 = arith.addf %162, %165 : vector<16x32xf32>
    %167 = arith.addf %166, %49 : vector<16x32xf32>
    %c0_72 = arith.constant 0 : index
    %c0_73 = arith.constant 0 : index
    %c0_74 = arith.constant 0 : index
    %168 = vector.load %arg15[%c0_72, %c0_73, %c0_74] : memref<2x1x32xf32, #tpu.memory_space<vmem>>, vector<1x1x32xf32>
    %169 = vector.shape_cast %168 : vector<1x1x32xf32> to vector<1x32xf32>
    %c0_75 = arith.constant 0 : index
    %c0_76 = arith.constant 0 : index
    %c0_77 = arith.constant 0 : index
    %170 = vector.load %arg16[%c0_75, %c0_76, %c0_77] : memref<2x1x32xf32, #tpu.memory_space<vmem>>, vector<1x1x32xf32>
    %171 = vector.shape_cast %170 : vector<1x1x32xf32> to vector<1x32xf32>
    %cst_78 = arith.constant dense<0.000000e+00> : vector<16xf32>
    %172 = vector.multi_reduction <add>, %167, %cst_78 [1] : vector<16x32xf32> to vector<16xf32>
    %173 = vector.shape_cast %172 : vector<16xf32> to vector<16x1xf32>
    %cst_79 = arith.constant 3.200000e+01 : f32
    %174 = vector.broadcast %cst_79 : f32 to vector<16x1xf32>
    %175 = arith.divf %173, %174 : vector<16x1xf32>
    %176 = vector.broadcast %175 : vector<16x1xf32> to vector<16x32xf32>
    %177 = arith.subf %167, %176 : vector<16x32xf32>
    %178 = arith.mulf %177, %177 : vector<16x32xf32>
    %cst_80 = arith.constant dense<0.000000e+00> : vector<16xf32>
    %179 = vector.multi_reduction <add>, %178, %cst_80 [1] : vector<16x32xf32> to vector<16xf32>
    %180 = vector.shape_cast %179 : vector<16xf32> to vector<16x1xf32>
    %cst_81 = arith.constant 3.200000e+01 : f32
    %181 = vector.broadcast %cst_81 : f32 to vector<16x1xf32>
    %182 = arith.divf %180, %181 : vector<16x1xf32>
    %183 = vector.broadcast %175 : vector<16x1xf32> to vector<16x32xf32>
    %184 = arith.subf %167, %183 : vector<16x32xf32>
    %cst_82 = arith.constant 9.99999996E-13 : f32
    %185 = vector.broadcast %cst_82 : f32 to vector<16x1xf32>
    %186 = arith.addf %182, %185 : vector<16x1xf32>
    %187 = math.rsqrt %186 : vector<16x1xf32>
    %188 = vector.broadcast %187 : vector<16x1xf32> to vector<16x32xf32>
    %189 = arith.mulf %184, %188 : vector<16x32xf32>
    %190 = vector.broadcast %169 : vector<1x32xf32> to vector<16x32xf32>
    %191 = arith.mulf %189, %190 : vector<16x32xf32>
    %192 = vector.broadcast %171 : vector<1x32xf32> to vector<16x32xf32>
    %193 = arith.addf %191, %192 : vector<16x32xf32>
    %c0_83 = arith.constant 0 : index
    %c0_84 = arith.constant 0 : index
    %c0_85 = arith.constant 0 : index
    %194 = vector.load %arg17[%c0_83, %c0_84, %c0_85] : memref<2x32x64xf32, #tpu.memory_space<vmem>>, vector<1x32x64xf32>
    %195 = vector.shape_cast %194 : vector<1x32x64xf32> to vector<32x64xf32>
    %cst_86 = arith.constant dense<0.000000e+00> : vector<16x64xf32>
    %196 = tpu.matmul %193, %195, %cst_86 {dimension_numbers = #tpu.dot_dimension_numbers<[1], [0], [0], [1], [0, 0, 1, 1], [], []>} : vector<16x32xf32>, vector<32x64xf32>, vector<16x64xf32> -> vector<16x64xf32>
    %c0_87 = arith.constant 0 : index
    %c0_88 = arith.constant 0 : index
    %c0_89 = arith.constant 0 : index
    %197 = vector.load %arg18[%c0_87, %c0_88, %c0_89] : memref<2x1x64xf32, #tpu.memory_space<vmem>>, vector<1x1x64xf32>
    %198 = vector.shape_cast %197 : vector<1x1x64xf32> to vector<1x64xf32>
    %199 = vector.broadcast %198 : vector<1x64xf32> to vector<16x64xf32>
    %200 = arith.addf %196, %199 : vector<16x64xf32>
    %cst_90 = arith.constant 5.000000e-01 : f32
    %201 = vector.broadcast %cst_90 : f32 to vector<16x64xf32>
    %202 = arith.mulf %200, %201 : vector<16x64xf32>
    %cst_91 = arith.constant 1.41421354 : f32
    %203 = vector.broadcast %cst_91 : f32 to vector<16x64xf32>
    %204 = arith.divf %200, %203 : vector<16x64xf32>
    %205 = math.erf %204 : vector<16x64xf32>
    %cst_92 = arith.constant 1.000000e+00 : f32
    %206 = vector.broadcast %cst_92 : f32 to vector<16x64xf32>
    %207 = arith.addf %206, %205 : vector<16x64xf32>
    %208 = arith.mulf %202, %207 : vector<16x64xf32>
    %c0_93 = arith.constant 0 : index
    %c0_94 = arith.constant 0 : index
    %c0_95 = arith.constant 0 : index
    %209 = vector.load %arg19[%c0_93, %c0_94, %c0_95] : memref<2x64x32xf32, #tpu.memory_space<vmem>>, vector<1x64x32xf32>
    %210 = vector.shape_cast %209 : vector<1x64x32xf32> to vector<64x32xf32>
    %cst_96 = arith.constant dense<0.000000e+00> : vector<16x32xf32>
    %211 = tpu.matmul %208, %210, %cst_96 {dimension_numbers = #tpu.dot_dimension_numbers<[1], [0], [0], [1], [0, 0, 1, 1], [], []>} : vector<16x64xf32>, vector<64x32xf32>, vector<16x32xf32> -> vector<16x32xf32>
    %c0_97 = arith.constant 0 : index
    %c0_98 = arith.constant 0 : index
    %c0_99 = arith.constant 0 : index
    %212 = vector.load %arg20[%c0_97, %c0_98, %c0_99] : memref<2x1x32xf32, #tpu.memory_space<vmem>>, vector<1x1x32xf32>
    %213 = vector.shape_cast %212 : vector<1x1x32xf32> to vector<1x32xf32>
    %214 = vector.broadcast %213 : vector<1x32xf32> to vector<16x32xf32>
    %215 = arith.addf %211, %214 : vector<16x32xf32>
    %216 = arith.addf %215, %193 : vector<16x32xf32>
    %c0_100 = arith.constant 0 : index
    %c0_101 = arith.constant 0 : index
    %c0_102 = arith.constant 0 : index
    %217 = vector.load %arg21[%c0_100, %c0_101, %c0_102] : memref<2x1x32xf32, #tpu.memory_space<vmem>>, vector<1x1x32xf32>
    %218 = vector.shape_cast %217 : vector<1x1x32xf32> to vector<1x32xf32>
    %c0_103 = arith.constant 0 : index
    %c0_104 = arith.constant 0 : index
    %c0_105 = arith.constant 0 : index
    %219 = vector.load %arg22[%c0_103, %c0_104, %c0_105] : memref<2x1x32xf32, #tpu.memory_space<vmem>>, vector<1x1x32xf32>
    %220 = vector.shape_cast %219 : vector<1x1x32xf32> to vector<1x32xf32>
    %cst_106 = arith.constant dense<0.000000e+00> : vector<16xf32>
    %221 = vector.multi_reduction <add>, %216, %cst_106 [1] : vector<16x32xf32> to vector<16xf32>
    %222 = vector.shape_cast %221 : vector<16xf32> to vector<16x1xf32>
    %cst_107 = arith.constant 3.200000e+01 : f32
    %223 = vector.broadcast %cst_107 : f32 to vector<16x1xf32>
    %224 = arith.divf %222, %223 : vector<16x1xf32>
    %225 = vector.broadcast %224 : vector<16x1xf32> to vector<16x32xf32>
    %226 = arith.subf %216, %225 : vector<16x32xf32>
    %227 = arith.mulf %226, %226 : vector<16x32xf32>
    %cst_108 = arith.constant dense<0.000000e+00> : vector<16xf32>
    %228 = vector.multi_reduction <add>, %227, %cst_108 [1] : vector<16x32xf32> to vector<16xf32>
    %229 = vector.shape_cast %228 : vector<16xf32> to vector<16x1xf32>
    %cst_109 = arith.constant 3.200000e+01 : f32
    %230 = vector.broadcast %cst_109 : f32 to vector<16x1xf32>
    %231 = arith.divf %229, %230 : vector<16x1xf32>
    %232 = vector.broadcast %224 : vector<16x1xf32> to vector<16x32xf32>
    %233 = arith.subf %216, %232 : vector<16x32xf32>
    %cst_110 = arith.constant 9.99999996E-13 : f32
    %234 = vector.broadcast %cst_110 : f32 to vector<16x1xf32>
    %235 = arith.addf %231, %234 : vector<16x1xf32>
    %236 = math.rsqrt %235 : vector<16x1xf32>
    %237 = vector.broadcast %236 : vector<16x1xf32> to vector<16x32xf32>
    %238 = arith.mulf %233, %237 : vector<16x32xf32>
    %239 = vector.broadcast %218 : vector<1x32xf32> to vector<16x32xf32>
    %240 = arith.mulf %238, %239 : vector<16x32xf32>
    %241 = vector.broadcast %220 : vector<1x32xf32> to vector<16x32xf32>
    %242 = arith.addf %240, %241 : vector<16x32xf32>
    %c1 = arith.constant 1 : index
    %c0_111 = arith.constant 0 : index
    %c0_112 = arith.constant 0 : index
    %243 = vector.load %arg11[%c1, %c0_111, %c0_112] : memref<2x32x96xf32, #tpu.memory_space<vmem>>, vector<1x32x96xf32>
    %244 = vector.shape_cast %243 : vector<1x32x96xf32> to vector<32x96xf32>
    %cst_113 = arith.constant dense<0.000000e+00> : vector<16x96xf32>
    %245 = tpu.matmul %242, %244, %cst_113 {dimension_numbers = #tpu.dot_dimension_numbers<[1], [0], [0], [1], [0, 0, 1, 1], [], []>} : vector<16x32xf32>, vector<32x96xf32>, vector<16x96xf32> -> vector<16x96xf32>
    %c1_114 = arith.constant 1 : index
    %c0_115 = arith.constant 0 : index
    %c0_116 = arith.constant 0 : index
    %246 = vector.load %arg12[%c1_114, %c0_115, %c0_116] : memref<2x1x96xf32, #tpu.memory_space<vmem>>, vector<1x1x96xf32>
    %247 = vector.shape_cast %246 : vector<1x1x96xf32> to vector<1x96xf32>
    %248 = vector.broadcast %247 : vector<1x96xf32> to vector<16x96xf32>
    %249 = arith.addf %245, %248 : vector<16x96xf32>
    %c1_117 = arith.constant 1 : index
    %c0_118 = arith.constant 0 : index
    %c0_119 = arith.constant 0 : index
    %250 = vector.load %arg13[%c1_117, %c0_118, %c0_119] : memref<2x32x32xf32, #tpu.memory_space<vmem>>, vector<1x32x32xf32>
    %251 = vector.shape_cast %250 : vector<1x32x32xf32> to vector<32x32xf32>
    %252 = vector.extract_strided_slice %50 {offsets = [0, 0], sizes = [1, 8], strides = [1, 1]} : vector<2x8xf32> to vector<1x8xf32>
    %cst_120 = arith.constant 1.000000e+00 : f32
    %253 = vector.broadcast %cst_120 : f32 to vector<1x8xf32>
    %254 = arith.subf %253, %252 : vector<1x8xf32>
    %cst_121 = arith.constant -1.000000e+04 : f32
    %255 = vector.broadcast %cst_121 : f32 to vector<1x8xf32>
    %256 = arith.mulf %254, %255 : vector<1x8xf32>
    %cst_122 = arith.constant 0.000000e+00 : f32
    %257 = vector.broadcast %cst_122 : f32 to vector<8x32xf32>
    %258 = vector.extract_strided_slice %249 {offsets = [0, 0], sizes = [8, 16], strides = [1, 1]} : vector<16x96xf32> to vector<8x16xf32>
    %259 = vector.extract_strided_slice %249 {offsets = [0, 32], sizes = [8, 16], strides = [1, 1]} : vector<16x96xf32> to vector<8x16xf32>
    %260 = vector.extract_strided_slice %249 {offsets = [0, 64], sizes = [8, 16], strides = [1, 1]} : vector<16x96xf32> to vector<8x16xf32>
    "tpu.trace_start"() <{level = 10 : i32, message = "qd,kd->qk"}> : () -> ()
    %cst_123 = arith.constant dense<0.000000e+00> : vector<8x8xf32>
    %261 = tpu.matmul %258, %259, %cst_123 {dimension_numbers = #tpu.dot_dimension_numbers<[1], [1], [0], [0], [0, 0, 1, 0], [], []>} : vector<8x16xf32>, vector<8x16xf32>, vector<8x8xf32> -> vector<8x8xf32>
    "tpu.trace_stop"() : () -> ()
    %cst_124 = arith.constant 2.500000e-01 : f32
    %262 = vector.broadcast %cst_124 : f32 to vector<8x8xf32>
    %263 = arith.mulf %261, %262 : vector<8x8xf32>
    %264 = vector.broadcast %256 : vector<1x8xf32> to vector<8x8xf32>
    %265 = arith.addf %263, %264 : vector<8x8xf32>
    %cst_125 = arith.constant dense<0xFF800000> : vector<8xf32>
    %266 = vector.multi_reduction <maximumf>, %265, %cst_125 [1] : vector<8x8xf32> to vector<8xf32>
    %267 = vector.shape_cast %266 : vector<8xf32> to vector<8x1xf32>
    %268 = vector.broadcast %267 : vector<8x1xf32> to vector<8x8xf32>
    %269 = arith.subf %265, %268 : vector<8x8xf32>
    %270 = math.exp %269 : vector<8x8xf32>
    %cst_126 = arith.constant dense<0.000000e+00> : vector<8xf32>
    %271 = vector.multi_reduction <add>, %270, %cst_126 [1] : vector<8x8xf32> to vector<8xf32>
    %272 = vector.shape_cast %271 : vector<8xf32> to vector<8x1xf32>
    %273 = tpu.reciprocal %272 {approx = true} : vector<8x1xf32> -> vector<8x1xf32>
    %274 = vector.broadcast %273 : vector<8x1xf32> to vector<8x8xf32>
    %275 = arith.mulf %270, %274 : vector<8x8xf32>
    %cst_127 = arith.constant dense<0.000000e+00> : vector<8x16xf32>
    %276 = tpu.matmul %275, %260, %cst_127 {dimension_numbers = #tpu.dot_dimension_numbers<[1], [0], [0], [1], [0, 0, 1, 1], [], []>} : vector<8x8xf32>, vector<8x16xf32>, vector<8x16xf32> -> vector<8x16xf32>
    %277 = vector.extract_strided_slice %251 {offsets = [0, 0], sizes = [16, 32], strides = [1, 1]} : vector<32x32xf32> to vector<16x32xf32>
    %cst_128 = arith.constant dense<0.000000e+00> : vector<8x32xf32>
    %278 = tpu.matmul %276, %277, %cst_128 {dimension_numbers = #tpu.dot_dimension_numbers<[1], [0], [0], [1], [0, 0, 1, 1], [], []>} : vector<8x16xf32>, vector<16x32xf32>, vector<8x32xf32> -> vector<8x32xf32>
    %279 = arith.addf %257, %278 : vector<8x32xf32>
    %280 = vector.extract_strided_slice %249 {offsets = [0, 16], sizes = [8, 16], strides = [1, 1]} : vector<16x96xf32> to vector<8x16xf32>
    %281 = vector.extract_strided_slice %249 {offsets = [0, 48], sizes = [8, 16], strides = [1, 1]} : vector<16x96xf32> to vector<8x16xf32>
    %282 = vector.extract_strided_slice %249 {offsets = [0, 80], sizes = [8, 16], strides = [1, 1]} : vector<16x96xf32> to vector<8x16xf32>
    "tpu.trace_start"() <{level = 10 : i32, message = "qd,kd->qk"}> : () -> ()
    %cst_129 = arith.constant dense<0.000000e+00> : vector<8x8xf32>
    %283 = tpu.matmul %280, %281, %cst_129 {dimension_numbers = #tpu.dot_dimension_numbers<[1], [1], [0], [0], [0, 0, 1, 0], [], []>} : vector<8x16xf32>, vector<8x16xf32>, vector<8x8xf32> -> vector<8x8xf32>
    "tpu.trace_stop"() : () -> ()
    %cst_130 = arith.constant 2.500000e-01 : f32
    %284 = vector.broadcast %cst_130 : f32 to vector<8x8xf32>
    %285 = arith.mulf %283, %284 : vector<8x8xf32>
    %286 = vector.broadcast %256 : vector<1x8xf32> to vector<8x8xf32>
    %287 = arith.addf %285, %286 : vector<8x8xf32>
    %cst_131 = arith.constant dense<0xFF800000> : vector<8xf32>
    %288 = vector.multi_reduction <maximumf>, %287, %cst_131 [1] : vector<8x8xf32> to vector<8xf32>
    %289 = vector.shape_cast %288 : vector<8xf32> to vector<8x1xf32>
    %290 = vector.broadcast %289 : vector<8x1xf32> to vector<8x8xf32>
    %291 = arith.subf %287, %290 : vector<8x8xf32>
    %292 = math.exp %291 : vector<8x8xf32>
    %cst_132 = arith.constant dense<0.000000e+00> : vector<8xf32>
    %293 = vector.multi_reduction <add>, %292, %cst_132 [1] : vector<8x8xf32> to vector<8xf32>
    %294 = vector.shape_cast %293 : vector<8xf32> to vector<8x1xf32>
    %295 = tpu.reciprocal %294 {approx = true} : vector<8x1xf32> -> vector<8x1xf32>
    %296 = vector.broadcast %295 : vector<8x1xf32> to vector<8x8xf32>
    %297 = arith.mulf %292, %296 : vector<8x8xf32>
    %cst_133 = arith.constant dense<0.000000e+00> : vector<8x16xf32>
    %298 = tpu.matmul %297, %282, %cst_133 {dimension_numbers = #tpu.dot_dimension_numbers<[1], [0], [0], [1], [0, 0, 1, 1], [], []>} : vector<8x8xf32>, vector<8x16xf32>, vector<8x16xf32> -> vector<8x16xf32>
    %299 = vector.extract_strided_slice %251 {offsets = [16, 0], sizes = [16, 32], strides = [1, 1]} : vector<32x32xf32> to vector<16x32xf32>
    %cst_134 = arith.constant dense<0.000000e+00> : vector<8x32xf32>
    %300 = tpu.matmul %298, %299, %cst_134 {dimension_numbers = #tpu.dot_dimension_numbers<[1], [0], [0], [1], [0, 0, 1, 1], [], []>} : vector<8x16xf32>, vector<16x32xf32>, vector<8x32xf32> -> vector<8x32xf32>
    %301 = arith.addf %279, %300 : vector<8x32xf32>
    %c0_135 = arith.constant 0 : index
    %c0_136 = arith.constant 0 : index
    %302 = vector.load %arg30[%c0_135, %c0_136] : memref<16x32xf32, #tpu.memory_space<vmem>>, vector<8x32xf32>
    tpu.vector_store %arg30[%c0_135, %c0_136], %301 {strides = array<i32>} : memref<16x32xf32, #tpu.memory_space<vmem>>, vector<8x32xf32>,
    %303 = vector.extract_strided_slice %50 {offsets = [1, 0], sizes = [1, 8], strides = [1, 1]} : vector<2x8xf32> to vector<1x8xf32>
    %cst_137 = arith.constant 1.000000e+00 : f32
    %304 = vector.broadcast %cst_137 : f32 to vector<1x8xf32>
    %305 = arith.subf %304, %303 : vector<1x8xf32>
    %cst_138 = arith.constant -1.000000e+04 : f32
    %306 = vector.broadcast %cst_138 : f32 to vector<1x8xf32>
    %307 = arith.mulf %305, %306 : vector<1x8xf32>
    %cst_139 = arith.constant 0.000000e+00 : f32
    %308 = vector.broadcast %cst_139 : f32 to vector<8x32xf32>
    %309 = vector.extract_strided_slice %249 {offsets = [8, 0], sizes = [8, 16], strides = [1, 1]} : vector<16x96xf32> to vector<8x16xf32>
    %310 = vector.extract_strided_slice %249 {offsets = [8, 32], sizes = [8, 16], strides = [1, 1]} : vector<16x96xf32> to vector<8x16xf32>
    %311 = vector.extract_strided_slice %249 {offsets = [8, 64], sizes = [8, 16], strides = [1, 1]} : vector<16x96xf32> to vector<8x16xf32>
    "tpu.trace_start"() <{level = 10 : i32, message = "qd,kd->qk"}> : () -> ()
    %cst_140 = arith.constant dense<0.000000e+00> : vector<8x8xf32>
    %312 = tpu.matmul %309, %310, %cst_140 {dimension_numbers = #tpu.dot_dimension_numbers<[1], [1], [0], [0], [0, 0, 1, 0], [], []>} : vector<8x16xf32>, vector<8x16xf32>, vector<8x8xf32> -> vector<8x8xf32>
    "tpu.trace_stop"() : () -> ()
    %cst_141 = arith.constant 2.500000e-01 : f32
    %313 = vector.broadcast %cst_141 : f32 to vector<8x8xf32>
    %314 = arith.mulf %312, %313 : vector<8x8xf32>
    %315 = vector.broadcast %307 : vector<1x8xf32> to vector<8x8xf32>
    %316 = arith.addf %314, %315 : vector<8x8xf32>
    %cst_142 = arith.constant dense<0xFF800000> : vector<8xf32>
    %317 = vector.multi_reduction <maximumf>, %316, %cst_142 [1] : vector<8x8xf32> to vector<8xf32>
    %318 = vector.shape_cast %317 : vector<8xf32> to vector<8x1xf32>
    %319 = vector.broadcast %318 : vector<8x1xf32> to vector<8x8xf32>
    %320 = arith.subf %316, %319 : vector<8x8xf32>
    %321 = math.exp %320 : vector<8x8xf32>
    %cst_143 = arith.constant dense<0.000000e+00> : vector<8xf32>
    %322 = vector.multi_reduction <add>, %321, %cst_143 [1] : vector<8x8xf32> to vector<8xf32>
    %323 = vector.shape_cast %322 : vector<8xf32> to vector<8x1xf32>
    %324 = tpu.reciprocal %323 {approx = true} : vector<8x1xf32> -> vector<8x1xf32>
    %325 = vector.broadcast %324 : vector<8x1xf32> to vector<8x8xf32>
    %326 = arith.mulf %321, %325 : vector<8x8xf32>
    %cst_144 = arith.constant dense<0.000000e+00> : vector<8x16xf32>
    %327 = tpu.matmul %326, %311, %cst_144 {dimension_numbers = #tpu.dot_dimension_numbers<[1], [0], [0], [1], [0, 0, 1, 1], [], []>} : vector<8x8xf32>, vector<8x16xf32>, vector<8x16xf32> -> vector<8x16xf32>
    %328 = vector.extract_strided_slice %251 {offsets = [0, 0], sizes = [16, 32], strides = [1, 1]} : vector<32x32xf32> to vector<16x32xf32>
    %cst_145 = arith.constant dense<0.000000e+00> : vector<8x32xf32>
    %329 = tpu.matmul %327, %328, %cst_145 {dimension_numbers = #tpu.dot_dimension_numbers<[1], [0], [0], [1], [0, 0, 1, 1], [], []>} : vector<8x16xf32>, vector<16x32xf32>, vector<8x32xf32> -> vector<8x32xf32>
    %330 = arith.addf %308, %329 : vector<8x32xf32>
    %331 = vector.extract_strided_slice %249 {offsets = [8, 16], sizes = [8, 16], strides = [1, 1]} : vector<16x96xf32> to vector<8x16xf32>
    %332 = vector.extract_strided_slice %249 {offsets = [8, 48], sizes = [8, 16], strides = [1, 1]} : vector<16x96xf32> to vector<8x16xf32>
    %333 = vector.extract_strided_slice %249 {offsets = [8, 80], sizes = [8, 16], strides = [1, 1]} : vector<16x96xf32> to vector<8x16xf32>
    "tpu.trace_start"() <{level = 10 : i32, message = "qd,kd->qk"}> : () -> ()
    %cst_146 = arith.constant dense<0.000000e+00> : vector<8x8xf32>
    %334 = tpu.matmul %331, %332, %cst_146 {dimension_numbers = #tpu.dot_dimension_numbers<[1], [1], [0], [0], [0, 0, 1, 0], [], []>} : vector<8x16xf32>, vector<8x16xf32>, vector<8x8xf32> -> vector<8x8xf32>
    "tpu.trace_stop"() : () -> ()
    %cst_147 = arith.constant 2.500000e-01 : f32
    %335 = vector.broadcast %cst_147 : f32 to vector<8x8xf32>
    %336 = arith.mulf %334, %335 : vector<8x8xf32>
    %337 = vector.broadcast %307 : vector<1x8xf32> to vector<8x8xf32>
    %338 = arith.addf %336, %337 : vector<8x8xf32>
    %cst_148 = arith.constant dense<0xFF800000> : vector<8xf32>
    %339 = vector.multi_reduction <maximumf>, %338, %cst_148 [1] : vector<8x8xf32> to vector<8xf32>
    %340 = vector.shape_cast %339 : vector<8xf32> to vector<8x1xf32>
    %341 = vector.broadcast %340 : vector<8x1xf32> to vector<8x8xf32>
    %342 = arith.subf %338, %341 : vector<8x8xf32>
    %343 = math.exp %342 : vector<8x8xf32>
    %cst_149 = arith.constant dense<0.000000e+00> : vector<8xf32>
    %344 = vector.multi_reduction <add>, %343, %cst_149 [1] : vector<8x8xf32> to vector<8xf32>
    %345 = vector.shape_cast %344 : vector<8xf32> to vector<8x1xf32>
    %346 = tpu.reciprocal %345 {approx = true} : vector<8x1xf32> -> vector<8x1xf32>
    %347 = vector.broadcast %346 : vector<8x1xf32> to vector<8x8xf32>
    %348 = arith.mulf %343, %347 : vector<8x8xf32>
    %cst_150 = arith.constant dense<0.000000e+00> : vector<8x16xf32>
    %349 = tpu.matmul %348, %333, %cst_150 {dimension_numbers = #tpu.dot_dimension_numbers<[1], [0], [0], [1], [0, 0, 1, 1], [], []>} : vector<8x8xf32>, vector<8x16xf32>, vector<8x16xf32> -> vector<8x16xf32>
    %350 = vector.extract_strided_slice %251 {offsets = [16, 0], sizes = [16, 32], strides = [1, 1]} : vector<32x32xf32> to vector<16x32xf32>
    %cst_151 = arith.constant dense<0.000000e+00> : vector<8x32xf32>
    %351 = tpu.matmul %349, %350, %cst_151 {dimension_numbers = #tpu.dot_dimension_numbers<[1], [0], [0], [1], [0, 0, 1, 1], [], []>} : vector<8x16xf32>, vector<16x32xf32>, vector<8x32xf32> -> vector<8x32xf32>
    %352 = arith.addf %330, %351 : vector<8x32xf32>
    %c8_152 = arith.constant 8 : index
    %c0_153 = arith.constant 0 : index
    %353 = vector.load %arg30[%c8_152, %c0_153] : memref<16x32xf32, #tpu.memory_space<vmem>>, vector<8x32xf32>
    tpu.vector_store %arg30[%c8_152, %c0_153], %352 {strides = array<i32>} : memref<16x32xf32, #tpu.memory_space<vmem>>, vector<8x32xf32>,
    %c0_154 = arith.constant 0 : index
    %c0_155 = arith.constant 0 : index
    %354 = vector.load %arg30[%c0_154, %c0_155] : memref<16x32xf32, #tpu.memory_space<vmem>>, vector<16x32xf32>
    %c1_156 = arith.constant 1 : index
    %c0_157 = arith.constant 0 : index
    %c0_158 = arith.constant 0 : index
    %355 = vector.load %arg14[%c1_156, %c0_157, %c0_158] : memref<2x1x32xf32, #tpu.memory_space<vmem>>, vector<1x1x32xf32>
    %356 = vector.shape_cast %355 : vector<1x1x32xf32> to vector<1x32xf32>
    %357 = vector.broadcast %356 : vector<1x32xf32> to vector<16x32xf32>
    %358 = arith.addf %354, %357 : vector<16x32xf32>
    %359 = arith.addf %358, %242 : vector<16x32xf32>
    %c1_159 = arith.constant 1 : index
    %c0_160 = arith.constant 0 : index
    %c0_161 = arith.constant 0 : index
    %360 = vector.load %arg15[%c1_159, %c0_160, %c0_161] : memref<2x1x32xf32, #tpu.memory_space<vmem>>, vector<1x1x32xf32>
    %361 = vector.shape_cast %360 : vector<1x1x32xf32> to vector<1x32xf32>
    %c1_162 = arith.constant 1 : index
    %c0_163 = arith.constant 0 : index
    %c0_164 = arith.constant 0 : index
    %362 = vector.load %arg16[%c1_162, %c0_163, %c0_164] : memref<2x1x32xf32, #tpu.memory_space<vmem>>, vector<1x1x32xf32>
    %363 = vector.shape_cast %362 : vector<1x1x32xf32> to vector<1x32xf32>
    %cst_165 = arith.constant dense<0.000000e+00> : vector<16xf32>
    %364 = vector.multi_reduction <add>, %359, %cst_165 [1] : vector<16x32xf32> to vector<16xf32>
    %365 = vector.shape_cast %364 : vector<16xf32> to vector<16x1xf32>
    %cst_166 = arith.constant 3.200000e+01 : f32
    %366 = vector.broadcast %cst_166 : f32 to vector<16x1xf32>
    %367 = arith.divf %365, %366 : vector<16x1xf32>
    %368 = vector.broadcast %367 : vector<16x1xf32> to vector<16x32xf32>
    %369 = arith.subf %359, %368 : vector<16x32xf32>
    %370 = arith.mulf %369, %369 : vector<16x32xf32>
    %cst_167 = arith.constant dense<0.000000e+00> : vector<16xf32>
    %371 = vector.multi_reduction <add>, %370, %cst_167 [1] : vector<16x32xf32> to vector<16xf32>
    %372 = vector.shape_cast %371 : vector<16xf32> to vector<16x1xf32>
    %cst_168 = arith.constant 3.200000e+01 : f32
    %373 = vector.broadcast %cst_168 : f32 to vector<16x1xf32>
    %374 = arith.divf %372, %373 : vector<16x1xf32>
    %375 = vector.broadcast %367 : vector<16x1xf32> to vector<16x32xf32>
    %376 = arith.subf %359, %375 : vector<16x32xf32>
    %cst_169 = arith.constant 9.99999996E-13 : f32
    %377 = vector.broadcast %cst_169 : f32 to vector<16x1xf32>
    %378 = arith.addf %374, %377 : vector<16x1xf32>
    %379 = math.rsqrt %378 : vector<16x1xf32>
    %380 = vector.broadcast %379 : vector<16x1xf32> to vector<16x32xf32>
    %381 = arith.mulf %376, %380 : vector<16x32xf32>
    %382 = vector.broadcast %361 : vector<1x32xf32> to vector<16x32xf32>
    %383 = arith.mulf %381, %382 : vector<16x32xf32>
    %384 = vector.broadcast %363 : vector<1x32xf32> to vector<16x32xf32>
    %385 = arith.addf %383, %384 : vector<16x32xf32>
    %c1_170 = arith.constant 1 : index
    %c0_171 = arith.constant 0 : index
    %c0_172 = arith.constant 0 : index
    %386 = vector.load %arg17[%c1_170, %c0_171, %c0_172] : memref<2x32x64xf32, #tpu.memory_space<vmem>>, vector<1x32x64xf32>
    %387 = vector.shape_cast %386 : vector<1x32x64xf32> to vector<32x64xf32>
    %cst_173 = arith.constant dense<0.000000e+00> : vector<16x64xf32>
    %388 = tpu.matmul %385, %387, %cst_173 {dimension_numbers = #tpu.dot_dimension_numbers<[1], [0], [0], [1], [0, 0, 1, 1], [], []>} : vector<16x32xf32>, vector<32x64xf32>, vector<16x64xf32> -> vector<16x64xf32>
    %c1_174 = arith.constant 1 : index
    %c0_175 = arith.constant 0 : index
    %c0_176 = arith.constant 0 : index
    %389 = vector.load %arg18[%c1_174, %c0_175, %c0_176] : memref<2x1x64xf32, #tpu.memory_space<vmem>>, vector<1x1x64xf32>
    %390 = vector.shape_cast %389 : vector<1x1x64xf32> to vector<1x64xf32>
    %391 = vector.broadcast %390 : vector<1x64xf32> to vector<16x64xf32>
    %392 = arith.addf %388, %391 : vector<16x64xf32>
    %cst_177 = arith.constant 5.000000e-01 : f32
    %393 = vector.broadcast %cst_177 : f32 to vector<16x64xf32>
    %394 = arith.mulf %392, %393 : vector<16x64xf32>
    %cst_178 = arith.constant 1.41421354 : f32
    %395 = vector.broadcast %cst_178 : f32 to vector<16x64xf32>
    %396 = arith.divf %392, %395 : vector<16x64xf32>
    %397 = math.erf %396 : vector<16x64xf32>
    %cst_179 = arith.constant 1.000000e+00 : f32
    %398 = vector.broadcast %cst_179 : f32 to vector<16x64xf32>
    %399 = arith.addf %398, %397 : vector<16x64xf32>
    %400 = arith.mulf %394, %399 : vector<16x64xf32>
    %c1_180 = arith.constant 1 : index
    %c0_181 = arith.constant 0 : index
    %c0_182 = arith.constant 0 : index
    %401 = vector.load %arg19[%c1_180, %c0_181, %c0_182] : memref<2x64x32xf32, #tpu.memory_space<vmem>>, vector<1x64x32xf32>
    %402 = vector.shape_cast %401 : vector<1x64x32xf32> to vector<64x32xf32>
    %cst_183 = arith.constant dense<0.000000e+00> : vector<16x32xf32>
    %403 = tpu.matmul %400, %402, %cst_183 {dimension_numbers = #tpu.dot_dimension_numbers<[1], [0], [0], [1], [0, 0, 1, 1], [], []>} : vector<16x64xf32>, vector<64x32xf32>, vector<16x32xf32> -> vector<16x32xf32>
    %c1_184 = arith.constant 1 : index
    %c0_185 = arith.constant 0 : index
    %c0_186 = arith.constant 0 : index
    %404 = vector.load %arg20[%c1_184, %c0_185, %c0_186] : memref<2x1x32xf32, #tpu.memory_space<vmem>>, vector<1x1x32xf32>
    %405 = vector.shape_cast %404 : vector<1x1x32xf32> to vector<1x32xf32>
    %406 = vector.broadcast %405 : vector<1x32xf32> to vector<16x32xf32>
    %407 = arith.addf %403, %406 : vector<16x32xf32>
    %408 = arith.addf %407, %385 : vector<16x32xf32>
    %c1_187 = arith.constant 1 : index
    %c0_188 = arith.constant 0 : index
    %c0_189 = arith.constant 0 : index
    %409 = vector.load %arg21[%c1_187, %c0_188, %c0_189] : memref<2x1x32xf32, #tpu.memory_space<vmem>>, vector<1x1x32xf32>
    %410 = vector.shape_cast %409 : vector<1x1x32xf32> to vector<1x32xf32>
    %c1_190 = arith.constant 1 : index
    %c0_191 = arith.constant 0 : index
    %c0_192 = arith.constant 0 : index
    %411 = vector.load %arg22[%c1_190, %c0_191, %c0_192] : memref<2x1x32xf32, #tpu.memory_space<vmem>>, vector<1x1x32xf32>
    %412 = vector.shape_cast %411 : vector<1x1x32xf32> to vector<1x32xf32>
    %cst_193 = arith.constant dense<0.000000e+00> : vector<16xf32>
    %413 = vector.multi_reduction <add>, %408, %cst_193 [1] : vector<16x32xf32> to vector<16xf32>
    %414 = vector.shape_cast %413 : vector<16xf32> to vector<16x1xf32>
    %cst_194 = arith.constant 3.200000e+01 : f32
    %415 = vector.broadcast %cst_194 : f32 to vector<16x1xf32>
    %416 = arith.divf %414, %415 : vector<16x1xf32>
    %417 = vector.broadcast %416 : vector<16x1xf32> to vector<16x32xf32>
    %418 = arith.subf %408, %417 : vector<16x32xf32>
    %419 = arith.mulf %418, %418 : vector<16x32xf32>
    %cst_195 = arith.constant dense<0.000000e+00> : vector<16xf32>
    %420 = vector.multi_reduction <add>, %419, %cst_195 [1] : vector<16x32xf32> to vector<16xf32>
    %421 = vector.shape_cast %420 : vector<16xf32> to vector<16x1xf32>
    %cst_196 = arith.constant 3.200000e+01 : f32
    %422 = vector.broadcast %cst_196 : f32 to vector<16x1xf32>
    %423 = arith.divf %421, %422 : vector<16x1xf32>
    %424 = vector.broadcast %416 : vector<16x1xf32> to vector<16x32xf32>
    %425 = arith.subf %408, %424 : vector<16x32xf32>
    %cst_197 = arith.constant 9.99999996E-13 : f32
    %426 = vector.broadcast %cst_197 : f32 to vector<16x1xf32>
    %427 = arith.addf %423, %426 : vector<16x1xf32>
    %428 = math.rsqrt %427 : vector<16x1xf32>
    %429 = vector.broadcast %428 : vector<16x1xf32> to vector<16x32xf32>
    %430 = arith.mulf %425, %429 : vector<16x32xf32>
    %431 = vector.broadcast %410 : vector<1x32xf32> to vector<16x32xf32>
    %432 = arith.mulf %430, %431 : vector<16x32xf32>
    %433 = vector.broadcast %412 : vector<1x32xf32> to vector<16x32xf32>
    %434 = arith.addf %432, %433 : vector<16x32xf32>
    %c0_198 = arith.constant 0 : index
    %c0_199 = arith.constant 0 : index
    %435 = vector.load %arg23[%c0_198, %c0_199] : memref<32x32xf32, #tpu.memory_space<vmem>>, vector<32x32xf32>
    %cst_200 = arith.constant dense<0.000000e+00> : vector<16x32xf32>
    %436 = tpu.matmul %434, %435, %cst_200 {dimension_numbers = #tpu.dot_dimension_numbers<[1], [0], [0], [1], [0, 0, 1, 1], [], []>} : vector<16x32xf32>, vector<32x32xf32>, vector<16x32xf32> -> vector<16x32xf32>
    %c0_201 = arith.constant 0 : index
    %c0_202 = arith.constant 0 : index
    %437 = vector.load %arg24[%c0_201, %c0_202] : memref<1x32xf32, #tpu.memory_space<vmem>>, vector<1x32xf32>
    %438 = vector.broadcast %437 : vector<1x32xf32> to vector<16x32xf32>
    %439 = arith.addf %436, %438 : vector<16x32xf32>
    %cst_203 = arith.constant 5.000000e-01 : f32
    %440 = vector.broadcast %cst_203 : f32 to vector<16x32xf32>
    %441 = arith.mulf %439, %440 : vector<16x32xf32>
    %cst_204 = arith.constant 1.41421354 : f32
    %442 = vector.broadcast %cst_204 : f32 to vector<16x32xf32>
    %443 = arith.divf %439, %442 : vector<16x32xf32>
    %444 = math.erf %443 : vector<16x32xf32>
    %cst_205 = arith.constant 1.000000e+00 : f32
    %445 = vector.broadcast %cst_205 : f32 to vector<16x32xf32>
    %446 = arith.addf %445, %444 : vector<16x32xf32>
    %447 = arith.mulf %441, %446 : vector<16x32xf32>
    %c0_206 = arith.constant 0 : index
    %c0_207 = arith.constant 0 : index
    %448 = vector.load %arg25[%c0_206, %c0_207] : memref<1x32xf32, #tpu.memory_space<vmem>>, vector<1x32xf32>
    %c0_208 = arith.constant 0 : index
    %c0_209 = arith.constant 0 : index
    %449 = vector.load %arg26[%c0_208, %c0_209] : memref<1x32xf32, #tpu.memory_space<vmem>>, vector<1x32xf32>
    %cst_210 = arith.constant dense<0.000000e+00> : vector<16xf32>
    %450 = vector.multi_reduction <add>, %447, %cst_210 [1] : vector<16x32xf32> to vector<16xf32>
    %451 = vector.shape_cast %450 : vector<16xf32> to vector<16x1xf32>
    %cst_211 = arith.constant 3.200000e+01 : f32
    %452 = vector.broadcast %cst_211 : f32 to vector<16x1xf32>
    %453 = arith.divf %451, %452 : vector<16x1xf32>
    %454 = vector.broadcast %453 : vector<16x1xf32> to vector<16x32xf32>
    %455 = arith.subf %447, %454 : vector<16x32xf32>
    %456 = arith.mulf %455, %455 : vector<16x32xf32>
    %cst_212 = arith.constant dense<0.000000e+00> : vector<16xf32>
    %457 = vector.multi_reduction <add>, %456, %cst_212 [1] : vector<16x32xf32> to vector<16xf32>
    %458 = vector.shape_cast %457 : vector<16xf32> to vector<16x1xf32>
    %cst_213 = arith.constant 3.200000e+01 : f32
    %459 = vector.broadcast %cst_213 : f32 to vector<16x1xf32>
    %460 = arith.divf %458, %459 : vector<16x1xf32>
    %461 = vector.broadcast %453 : vector<16x1xf32> to vector<16x32xf32>
    %462 = arith.subf %447, %461 : vector<16x32xf32>
    %cst_214 = arith.constant 9.99999996E-13 : f32
    %463 = vector.broadcast %cst_214 : f32 to vector<16x1xf32>
    %464 = arith.addf %460, %463 : vector<16x1xf32>
    %465 = math.rsqrt %464 : vector<16x1xf32>
    %466 = vector.broadcast %465 : vector<16x1xf32> to vector<16x32xf32>
    %467 = arith.mulf %462, %466 : vector<16x32xf32>
    %468 = vector.broadcast %448 : vector<1x32xf32> to vector<16x32xf32>
    %469 = arith.mulf %467, %468 : vector<16x32xf32>
    %470 = vector.broadcast %449 : vector<1x32xf32> to vector<16x32xf32>
    %471 = arith.addf %469, %470 : vector<16x32xf32>
    %c0_215 = arith.constant 0 : index
    %c0_216 = arith.constant 0 : index
    %472 = vector.load %arg27[%c0_215, %c0_216] : memref<32x128xf32, #tpu.memory_space<vmem>>, vector<32x128xf32>
    %cst_217 = arith.constant dense<0.000000e+00> : vector<16x128xf32>
    %473 = tpu.matmul %471, %472, %cst_217 {dimension_numbers = #tpu.dot_dimension_numbers<[1], [0], [0], [1], [0, 0, 1, 1], [], []>} : vector<16x32xf32>, vector<32x128xf32>, vector<16x128xf32> -> vector<16x128xf32>
    %c0_218 = arith.constant 0 : index
    %c0_219 = arith.constant 0 : index
    %474 = vector.load %arg28[%c0_218, %c0_219] : memref<1x128xf32, #tpu.memory_space<vmem>>, vector<1x128xf32>
    %475 = vector.broadcast %474 : vector<1x128xf32> to vector<16x128xf32>
    %476 = arith.addf %473, %475 : vector<16x128xf32>
    %c0_220 = arith.constant 0 : index
    %c0_221 = arith.constant 0 : index
    %477 = vector.load %arg5[%c0_220, %c0_221] : memref<16x1xi32, #tpu.memory_space<vmem>>, vector<16x1xi32>
    %cst_222 = arith.constant dense<0xFF800000> : vector<16xf32>
    %478 = vector.multi_reduction <maximumf>, %476, %cst_222 [1] : vector<16x128xf32> to vector<16xf32>
    %479 = vector.shape_cast %478 : vector<16xf32> to vector<16x1xf32>
    %480 = vector.broadcast %479 : vector<16x1xf32> to vector<16x128xf32>
    %481 = arith.subf %476, %480 : vector<16x128xf32>
    %482 = math.exp %481 : vector<16x128xf32>
    %cst_223 = arith.constant dense<0.000000e+00> : vector<16xf32>
    %483 = vector.multi_reduction <add>, %482, %cst_223 [1] : vector<16x128xf32> to vector<16xf32>
    %484 = vector.shape_cast %483 : vector<16xf32> to vector<16x1xf32>
    %485 = math.log %484 : vector<16x1xf32>
    %486 = arith.addf %479, %485 : vector<16x1xf32>
    %487 = tpu.iota {dimensions = array<i32: 1>} : vector<16x128xi32>
    %488 = vector.broadcast %477 : vector<16x1xi32> to vector<16x128xi32>
    %489 = arith.cmpi eq, %487, %488 : vector<16x128xi32>
    %cst_224 = arith.constant 0.000000e+00 : f32
    %490 = vector.broadcast %cst_224 : f32 to vector<16x128xf32>
    %491 = arith.select %489, %476, %490 : vector<16x128xi1>, vector<16x128xf32>
    %cst_225 = arith.constant dense<0.000000e+00> : vector<16xf32>
    %492 = vector.multi_reduction <add>, %491, %cst_225 [1] : vector<16x128xf32> to vector<16xf32>
    %493 = vector.shape_cast %492 : vector<16xf32> to vector<16x1xf32>
    %494 = arith.subf %486, %493 : vector<16x1xf32>
    %c-100_i32 = arith.constant -100 : i32
    %495 = vector.broadcast %c-100_i32 : i32 to vector<16x1xi32>
    %496 = arith.cmpi ne, %477, %495 : vector<16x1xi32>
    %497 = arith.extui %496 : vector<16x1xi1> to vector<16x1xi32>
    %498 = arith.sitofp %497 : vector<16x1xi32> to vector<16x1xf32>
    %499 = arith.mulf %494, %498 : vector<16x1xf32>
    %500 = vector.shape_cast %499 : vector<16x1xf32> to vector<1x16x1xf32>
    %cst_226 = arith.constant dense<0.000000e+00> : vector<1xf32>
    %501 = vector.multi_reduction <add>, %500, %cst_226 [1, 2] : vector<1x16x1xf32> to vector<1xf32>
    %502 = vector.shape_cast %501 : vector<1xf32> to vector<1x1x1xf32>
    %503 = vector.extract %502[0, 0, 0] : f32 from vector<1x1x1xf32>
    %504 = vector.shape_cast %498 : vector<16x1xf32> to vector<1x16x1xf32>
    %cst_227 = arith.constant dense<0.000000e+00> : vector<1xf32>
    %505 = vector.multi_reduction <add>, %504, %cst_227 [1, 2] : vector<1x16x1xf32> to vector<1xf32>
    %506 = vector.shape_cast %505 : vector<1xf32> to vector<1x1x1xf32>
    %507 = vector.extract %506[0, 0, 0] : f32 from vector<1x1x1xf32>
    %508 = arith.divf %503, %507 : f32
    %509 = vector.broadcast %508 : f32 to vector<1x1xf32>
    %c0_228 = arith.constant 0 : index
    %c0_229 = arith.constant 0 : index
    %510 = vector.load %arg29[%c0_228, %c0_229] : memref<1x1xf32, #tpu.memory_space<vmem>>, vector<1x1xf32>
    tpu.vector_store %arg29[%c0_228, %c0_229], %509 {strides = array<i32>} : memref<1x1xf32, #tpu.memory_space<vmem>>, vector<1x1xf32>,
    return
  }
  func.func @transform_0(%arg0: i32) -> (i32, i32) {
    %c0_i32 = arith.constant 0 : i32
    %c0_i32_0 = arith.constant 0 : i32
    %c0_i32_1 = arith.constant 0 : i32
    return %c0_i32, %c0_i32_0 : i32, i32
  }
  func.func @transform_1(%arg0: i32) -> (i32, i32) {
    %c0_i32 = arith.constant 0 : i32
    %c0_i32_0 = arith.constant 0 : i32
    %c0_i32_1 = arith.constant 0 : i32
    return %c0_i32, %c0_i32_0 : i32, i32
  }
  func.func @transform_2(%arg0: i32) -> (i32, i32) {
    %c0_i32 = arith.constant 0 : i32
    %c0_i32_0 = arith.constant 0 : i32
    %c0_i32_1 = arith.constant 0 : i32
    return %c0_i32, %c0_i32_0 : i32, i32
  }
  func.func @transform_3(%arg0: i32) -> (i32, i32) {
    %c0_i32 = arith.constant 0 : i32
    %c0_i32_0 = arith.constant 0 : i32
    %c0_i32_1 = arith.constant 0 : i32
    return %c0_i32, %c0_i32_0 : i32, i32
  }
  func.func @transform_4(%arg0: i32) -> (i32, i32) {
    %c0_i32 = arith.constant 0 : i32
    %c0_i32_0 = arith.constant 0 : i32
    %c0_i32_1 = arith.constant 0 : i32
    return %c0_i32, %c0_i32_0 : i32, i32
  }
  func.func @transform_5(%arg0: i32) -> (i32, i32) {
    %c0_i32 = arith.constant 0 : i32
    %c0_i32_0 = arith.constant 0 : i32
    %c0_i32_1 = arith.constant 0 : i32
    return %c0_i32, %c0_i32_0 : i32, i32
  }
  func.func @transform_6(%arg0: i32) -> (i32, i32) {
    %c0_i32 = arith.constant 0 : i32
    %c0_i32_0 = arith.constant 0 : i32
    %c0_i32_1 = arith.constant 0 : i32
    return %c0_i32, %c0_i32_0 : i32, i32
  }
  func.func @transform_7(%arg0: i32) -> (i32, i32) {
    %c0_i32 = arith.constant 0 : i32
    %c0_i32_0 = arith.constant 0 : i32
    %c0_i32_1 = arith.constant 0 : i32
    return %c0_i32, %c0_i32_0 : i32, i32
  }
  func.func @transform_8(%arg0: i32) -> (i32, i32) {
    %c0_i32 = arith.constant 0 : i32
    %c0_i32_0 = arith.constant 0 : i32
    %c0_i32_1 = arith.constant 0 : i32
    return %c0_i32, %c0_i32_0 : i32, i32
  }
  func.func @transform_9(%arg0: i32) -> (i32, i32) {
    %c0_i32 = arith.constant 0 : i32
    %c0_i32_0 = arith.constant 0 : i32
    %c0_i32_1 = arith.constant 0 : i32
    return %c0_i32, %c0_i32_0 : i32, i32
  }
  func.func @transform_10(%arg0: i32) -> (i32, i32, i32) {
    %c0_i32 = arith.constant 0 : i32
    %c0_i32_0 = arith.constant 0 : i32
    %c0_i32_1 = arith.constant 0 : i32
    %c0_i32_2 = arith.constant 0 : i32
    return %c0_i32, %c0_i32_0, %c0_i32_1 : i32, i32, i32
  }
  func.func @transform_11(%arg0: i32) -> (i32, i32, i32) {
    %c0_i32 = arith.constant 0 : i32
    %c0_i32_0 = arith.constant 0 : i32
    %c0_i32_1 = arith.constant 0 : i32
    %c0_i32_2 = arith.constant 0 : i32
    return %c0_i32, %c0_i32_0, %c0_i32_1 : i32, i32, i32
  }
  func.func @transform_12(%arg0: i32) -> (i32, i32, i32) {
    %c0_i32 = arith.constant 0 : i32
    %c0_i32_0 = arith.constant 0 : i32
    %c0_i32_1 = arith.constant 0 : i32
    %c0_i32_2 = arith.constant 0 : i32
    return %c0_i32, %c0_i32_0, %c0_i32_1 : i32, i32, i32
  }
  func.func @transform_13(%arg0: i32) -> (i32, i32, i32) {
    %c0_i32 = arith.constant 0 : i32
    %c0_i32_0 = arith.constant 0 : i32
    %c0_i32_1 = arith.constant 0 : i32
    %c0_i32_2 = arith.constant 0 : i32
    return %c0_i32, %c0_i32_0, %c0_i32_1 : i32, i32, i32
  }
  func.func @transform_14(%arg0: i32) -> (i32, i32, i32) {
    %c0_i32 = arith.constant 0 : i32
    %c0_i32_0 = arith.constant 0 : i32
    %c0_i32_1 = arith.constant 0 : i32
    %c0_i32_2 = arith.constant 0 : i32
    return %c0_i32, %c0_i32_0, %c0_i32_1 : i32, i32, i32
  }
  func.func @transform_15(%arg0: i32) -> (i32, i32, i32) {
    %c0_i32 = arith.constant 0 : i32
    %c0_i32_0 = arith.constant 0 : i32
    %c0_i32_1 = arith.constant 0 : i32
    %c0_i32_2 = arith.constant 0 : i32
    return %c0_i32, %c0_i32_0, %c0_i32_1 : i32, i32, i32
  }
  func.func @transform_16(%arg0: i32) -> (i32, i32, i32) {
    %c0_i32 = arith.constant 0 : i32
    %c0_i32_0 = arith.constant 0 : i32
    %c0_i32_1 = arith.constant 0 : i32
    %c0_i32_2 = arith.constant 0 : i32
    return %c0_i32, %c0_i32_0, %c0_i32_1 : i32, i32, i32
  }
  func.func @transform_17(%arg0: i32) -> (i32, i32, i32) {
    %c0_i32 = arith.constant 0 : i32
    %c0_i32_0 = arith.constant 0 : i32
    %c0_i32_1 = arith.constant 0 : i32
    %c0_i32_2 = arith.constant 0 : i32
    return %c0_i32, %c0_i32_0, %c0_i32_1 : i32, i32, i32
  }
  func.func @transform_18(%arg0: i32) -> (i32, i32, i32) {
    %c0_i32 = arith.constant 0 : i32
    %c0_i32_0 = arith.constant 0 : i32
    %c0_i32_1 = arith.constant 0 : i32
    %c0_i32_2 = arith.constant 0 : i32
    return %c0_i32, %c0_i32_0, %c0_i32_1 : i32, i32, i32
  }
  func.func @transform_19(%arg0: i32) -> (i32, i32, i32) {
    %c0_i32 = arith.constant 0 : i32
    %c0_i32_0 = arith.constant 0 : i32
    %c0_i32_1 = arith.constant 0 : i32
    %c0_i32_2 = arith.constant 0 : i32
    return %c0_i32, %c0_i32_0, %c0_i32_1 : i32, i32, i32
  }
  func.func @transform_20(%arg0: i32) -> (i32, i32, i32) {
    %c0_i32 = arith.constant 0 : i32
    %c0_i32_0 = arith.constant 0 : i32
    %c0_i32_1 = arith.constant 0 : i32
    %c0_i32_2 = arith.constant 0 : i32
    return %c0_i32, %c0_i32_0, %c0_i32_1 : i32, i32, i32
  }
  func.func @transform_21(%arg0: i32) -> (i32, i32, i32) {
    %c0_i32 = arith.constant 0 : i32
    %c0_i32_0 = arith.constant 0 : i32
    %c0_i32_1 = arith.constant 0 : i32
    %c0_i32_2 = arith.constant 0 : i32
    return %c0_i32, %c0_i32_0, %c0_i32_1 : i32, i32, i32
  }
  func.func @transform_22(%arg0: i32) -> (i32, i32) {
    %c0_i32 = arith.constant 0 : i32
    %c0_i32_0 = arith.constant 0 : i32
    %c0_i32_1 = arith.constant 0 : i32
    return %c0_i32, %c0_i32_0 : i32, i32
  }
  func.func @transform_23(%arg0: i32) -> (i32, i32) {
    %c0_i32 = arith.constant 0 : i32
    %c0_i32_0 = arith.constant 0 : i32
    %c0_i32_1 = arith.constant 0 : i32
    return %c0_i32, %c0_i32_0 : i32, i32
  }
  func.func @transform_24(%arg0: i32) -> (i32, i32) {
    %c0_i32 = arith.constant 0 : i32
    %c0_i32_0 = arith.constant 0 : i32
    %c0_i32_1 = arith.constant 0 : i32
    return %c0_i32, %c0_i32_0 : i32, i32
  }
  func.func @transform_25(%arg0: i32) -> (i32, i32) {
    %c0_i32 = arith.constant 0 : i32
    %c0_i32_0 = arith.constant 0 : i32
    %c0_i32_1 = arith.constant 0 : i32
    return %c0_i32, %c0_i32_0 : i32, i32
  }
  func.func @transform_26(%arg0: i32) -> (i32, i32) {
    %c0_i32 = arith.constant 0 : i32
    %c0_i32_0 = arith.constant 0 : i32
    %c0_i32_1 = arith.constant 0 : i32
    return %c0_i32, %c0_i32_0 : i32, i32
  }
  func.func @transform_27(%arg0: i32) -> (i32, i32) {
    %c0_i32 = arith.constant 0 : i32
    %c0_i32_0 = arith.constant 0 : i32
    %c0_i32_1 = arith.constant 0 : i32
    return %c0_i32, %c0_i32_0 : i32, i32
  }
  func.func @transform_28(%arg0: i32) -> (i32, i32) {
    %c0_i32 = arith.constant 0 : i32
    %c0_i32_0 = arith.constant 0 : i32
    %c0_i32_1 = arith.constant 0 : i32
    return %c0_i32, %c0_i32_0 : i32, i32
  }
}

</mosaic_0001>

<bundles_post_ra>
// kernel: tile.0
= control target key start
LH: loop header
LB: loop body
LE: loop exit
PB: predicated region body
PF: predicated region fallthrough
CT: control target
= control target key end

     0   :  { %s66_s8 = smov 125   ;;  %vm7_vm0 = vcmask 7168   ;;  %s67_s11 = smov 126   ;;  %s117_s0 = inlined_call_operand.vmem [shape: s32[2,8], index: 0, kind: input, shape index: {}]   ;;  %s118_s1 = inlined_call_operand.vmem [shape: s32[16,1], index: 1, kind: output, shape index: {}]  }
   0x1   :  { %v4_v0 = vld [vmem:[%s117_s0] sm:$0x3]  ;;  %s65_s0 = smov 127   ;;  %s68_s12 = smov 124  }
   0x2   :  { %5 = vst [vmem:[#allocation0] sm:$0x3] %v4_v0  ;;  %s69_s13 = smov 123   ;;  %s70_s14 = smov 122  }
   0x3   :  { %s71_s15 = smov 121  }
   0x9   :  { %v9_v1 = vld [vmem:[#allocation0] sm:$0x3]  }
   0xa   :  { %v21_v2 = vld [vmem:[#allocation0] sm:$0x3]   ;;  %10 = vrot.lane.b32.xlu0 %v9_v1, %s65_s0 }
   0xb   :  { %22 = vrot.lane.b32.xlu1 %v21_v2, %s66_s8  ;;  %v15_v3 = vld [vmem:[#allocation0] sm:$0x3]  }
   0xc   :  { %v27_v4 = vld [vmem:[#allocation0] sm:$0x3]  }
   0xd   :  { %v6_v5 = vld [vmem:[#allocation0] sm:$0x3]  }
   0xe   :  { %8 = vst.msk [vmem:[%s118_s1] ss:$8 sm:$0x3] %vm7_vm0, %v6_v5   ;;  %16 = vrot.lane.b32.xlu0 %v15_v3, %s67_s11  ;;  %v33_v6 = vld [vmem:[#allocation0] sm:$0x3]  }
   0xf   :  { %28 = vrot.lane.b32.xlu1 %v27_v4, %s68_s12  ;;  %v39_v7 = vld [vmem:[#allocation0] sm:$0x3]  }
  0x10   :  { %v45_v8 = vld [vmem:[#allocation0] sm:$0x3]  }
  0x12   :  { %34 = vrot.lane.b32.xlu0 %v33_v6, %s69_s13 }
  0x13   :  { %40 = vrot.lane.b32.xlu1 %v39_v7, %s70_s14 }
  0x16   :  { %46 = vrot.lane.b32.xlu0 %v45_v8, %s71_s15 }
  0x7c   :  { %v11_v9 = vpop.permute.xlu0 %10  }
  0x7d   :  { %v23_v10 = vpop.permute.xlu1 %22   ;;  %51 = vst.msk [vmem:[%s118_s1 + $0x1] ss:$8 sm:$0x3] %vm7_vm0, %v11_v9  }
  0x7e   :  { %53 = vst.msk [vmem:[%s118_s1 + $0x3] ss:$8 sm:$0x3] %vm7_vm0, %v23_v10  }
  0x80   :  { %v17_v11 = vpop.permute.xlu0 %16  }
  0x81   :  { %v29_v12 = vpop.permute.xlu1 %28   ;;  %52 = vst.msk [vmem:[%s118_s1 + $0x2] ss:$8 sm:$0x3] %vm7_vm0, %v17_v11  }
  0x82   :  { %54 = vst.msk [vmem:[%s118_s1 + $0x4] ss:$8 sm:$0x3] %vm7_vm0, %v29_v12  }
  0x84   :  { %v35_v13 = vpop.permute.xlu0 %34  }
  0x85   :  { %v41_v14 = vpop.permute.xlu1 %40   ;;  %55 = vst.msk [vmem:[%s118_s1 + $0x5] ss:$8 sm:$0x3] %vm7_vm0, %v35_v13  }
  0x86   :  { %56 = vst.msk [vmem:[%s118_s1 + $0x6] ss:$8 sm:$0x3] %vm7_vm0, %v41_v14  }
  0x88   :  { %v47_v15 = vpop.permute.xlu0 %46  }
  0x89   :  { %57 = vst.msk [vmem:[%s118_s1 + $0x7] ss:$8 sm:$0x3] %vm7_vm0, %v47_v15  }

// kernel: bert_lm_forward.1
= control target key start
LH: loop header
LB: loop body
LE: loop exit
PB: predicated region body
PF: predicated region fallthrough
CT: control target
= control target key end

     0   :  { %s5058_s0 = inlined_call_operand.vmem [shape: s32[16,1], index: 0, kind: input, shape index: {}]   ;;  %s5059_s1 = inlined_call_operand.vmem [shape: s32[16,1], index: 1, kind: input, shape index: {}]   ;;  %s5060_s2 = inlined_call_operand.vmem [shape: s32[16,1], index: 2, kind: input, shape index: {}]   ;;  %s5061_s3 = inlined_call_operand.vmem [shape: f32[2,8], index: 3, kind: input, shape index: {}]   ;;  %s5062_s4 = inlined_call_operand.vmem [shape: s32[16,1], index: 4, kind: input, shape index: {}]   ;;  %s5063_s5 = inlined_call_operand.vmem [shape: f32[128,32], index: 5, kind: input, shape index: {}]   ;;  %s5064_s6 = inlined_call_operand.vmem [shape: f32[16,32], index: 6, kind: input, shape index: {}]   ;;  %s5065_s7 = inlined_call_operand.vmem [shape: f32[8,32], index: 7, kind: input, shape index: {}]   ;;  %s5066_s8 = inlined_call_operand.vmem [shape: f32[1,32], index: 8, kind: input, shape index: {}]   ;;  %s5067_s9 = inlined_call_operand.vmem [shape: f32[1,32], index: 9, kind: input, shape index: {}]   ;;  %s5068_s10 = inlined_call_operand.vmem [shape: f32[2,32,96], index: 10, kind: input, shape index: {}]   ;;  %s5069_s11 = inlined_call_operand.vmem [shape: f32[2,1,96], index: 11, kind: input, shape index: {}]   ;;  %s5070_s12 = inlined_call_operand.vmem [shape: f32[2,32,32], index: 12, kind: input, shape index: {}]   ;;  %s5071_s13 = inlined_call_operand.vmem [shape: f32[2,1,32], index: 13, kind: input, shape index: {}]   ;;  %s5072_s14 = inlined_call_operand.vmem [shape: f32[2,1,32], index: 14, kind: input, shape index: {}]   ;;  %s5073_s15 = inlined_call_operand.vmem [shape: f32[2,1,32], index: 15, kind: input, shape index: {}]   ;;  %s5074_s16 = inlined_call_operand.vmem [shape: f32[2,32,64], index: 16, kind: input, shape index: {}]   ;;  %s5075_s17 = inlined_call_operand.vmem [shape: f32[2,1,64], index: 17, kind: input, shape index: {}]   ;;  %s5076_s18 = inlined_call_operand.vmem [shape: f32[2,64,32], index: 18, kind: input, shape index: {}]   ;;  %s5077_s19 = inlined_call_operand.vmem [shape: f32[2,1,32], index: 19, kind: input, shape index: {}]   ;;  %s5078_s20 = inlined_call_operand.vmem [shape: f32[2,1,32], index: 20, kind: input, shape index: {}]   ;;  %s5079_s21 = inlined_call_operand.vmem [shape: f32[2,1,32], index: 21, kind: input, shape index: {}]   ;;  %s5080_s22 = inlined_call_operand.vmem [shape: f32[32,32], index: 22, kind: input, shape index: {}]   ;;  %s5081_s23 = inlined_call_operand.vmem [shape: f32[1,32], index: 23, kind: input, shape index: {}]   ;;  %s5082_s24 = inlined_call_operand.vmem [shape: f32[1,32], index: 24, kind: input, shape index: {}]   ;;  %s5083_s25 = inlined_call_operand.vmem [shape: f32[1,32], index: 25, kind: input, shape index: {}]   ;;  %s5084_s26 = inlined_call_operand.vmem [shape: f32[32,128], index: 26, kind: input, shape index: {}]   ;;  %s5085_s27 = inlined_call_operand.vmem [shape: f32[1,128], index: 27, kind: input, shape index: {}]   ;;  %s5086_s28 = inlined_call_operand.hbm [shape: f32[1,1], index: 28, kind: output, shape index: {}]  }
   0x1   :  { %5098 = sst [smem:[#allocation6_spill]] %s5058_s0 }
   0x2   :  { %5099 = sst [smem:[#allocation7_spill]] %s5059_s1 }
   0x3   :  { %5100 = sst [smem:[#allocation8_spill]] %s5060_s2 }
   0x4   :  { %5101 = sst [smem:[#allocation9_spill]] %s5061_s3 }
   0x5   :  { %5102 = sst [smem:[#allocation10_spill]] %s5062_s4 }
   0x6   :  { %5103 = sst [smem:[#allocation11_spill]] %s5063_s5 }
   0x7   :  { %5104 = sst [smem:[#allocation12_spill]] %s5064_s6 }
   0x8   :  { %5105 = sst [smem:[#allocation13_spill]] %s5065_s7 }
   0x9   :  { %5106 = sst [smem:[#allocation14_spill]] %s5066_s8 }
   0xa   :  { %5107 = sst [smem:[#allocation15_spill]] %s5067_s9 }
   0xb   :  { %5108 = sst [smem:[#allocation16_spill]] %s5068_s10 }
   0xc   :  { %5109 = sst [smem:[#allocation17_spill]] %s5069_s11 }
   0xd   :  { %5110 = sst [smem:[#allocation18_spill]] %s5070_s12 }
   0xe   :  { %s5111_s9 = sld [smem:[#allocation7_spill]]  ;;  %v4318_v1 = vmov 0   ;;  %s5112_s6 = sld [smem:[#allocation6_spill]] }
   0xf   :  { %4214 = vset.pattern.permute.xlu0 %v4318_v1  ;;  %4215 = vset.pattern.permute.xlu1 %v4318_v1  ;;  %s5113_s11 = sld [smem:[#allocation12_spill]] }
  0x14   :  { %v92_v0 = vld [vmem:[%s5111_s9] sm:$0xff] }
  0x15   :  { %v90_v2 = vld [vmem:[%s5112_s6] sm:$0xff]  ;;  %111 = vperm.xlu0 %4214, %v92_v0   ;;  %v151_v4 = vld [vmem:[%s5113_s11 + $0x8] sm:$0xff] }
  0x16   :  { %99 = vperm.xlu1 %4215, %v90_v2   ;;  %v150_v3 = vld [vmem:[%s5113_s11] sm:$0xff] }
  0x17   :  { %33 = vsyncpa [#allocation4], 0  ;;  %v93_v5 = vld [vmem:[%s5111_s9 + $0x8] sm:$0xff]  ;;  %v4045_v7 = vpack.c.bf16 %v151_v4, %v150_v3  ;;  %s5114_s30 = sld [smem:[#allocation11_spill]]  ;;  %s5115_s9 = sld [smem:[#allocation8_spill]]  ;;  %v96_v13 = vlaneseq  ;;  %vm152_vm0 = vcmask 130048  }
  0x18   :  { %v91_v6 = vld [vmem:[%s5112_s6 + $0x8] sm:$0xff]  ;;  %v4319_v16 = vmov 0.0   ;;  %v4320_v26 = vmov 1.0   ;;  %s5116_s12 = sld [smem:[#allocation13_spill]]  ;;  %vm310_vm5 = vcmask 64512   ;;  %vm396_vm8 = vcmask 261120  }
  0x19   :  { %4046 = vmatprep.subr.bf16.mxu0 %v4045_v7  ;;  %114 = vperm.xlu0 %4214, %v93_v5   ;;  %v4505_v14 = vand.u32 127, %v96_v13  ;;  %s5117_s4 = sld [smem:[#allocation16_spill]]  ;;  %s5118_s2 = sld [smem:[#allocation14_spill]]  ;;  %vm4321_vm9 = vmmov 0   ;;  %vm1682_vm10 = vcmask 523264   ;;  %vm3463_vm15 = vcmask 7168  }
  0x1a   :  { %102 = vperm.xlu1 %4215, %v91_v6   ;;  %4048 = vmatpush3.bf16.msra.mxu0 %v4045_v7  ;;  %s5120_s8 = sld [smem:[#allocation17_spill]]  ;;  %s4322_s5 = smov 96  }
  0x1b   :  { %s4323_s3 = smov 80   ;;  %s4324_s10 = smov 112  }
  0x1c   :  { %s5096_s29 = smov 64   ;;  %s5124_s7 = sld [smem:[#allocation10_spill]] }
  0x1d   :  { %v134_v8 = vld [vmem:[%s5114_s30] sm:$0xff]  ;;  %v135_v9 = vld [vmem:[%s5114_s30 + $0x8] sm:$0xff]  ;;  %v136_v18 = vld [vmem:[%s5114_s30 + $0x10] sm:$0xff]  ;;  %s4328_s0 = smov [#allocation3]  }
  0x1e   :  { %v4049_v10 = vpack.c.bf16 %v135_v9, %v134_v8  ;;  %v94_v11 = vld [vmem:[%s5115_s9] sm:$0xff]  ;;  %v95_v12 = vld [vmem:[%s5115_s9 + $0x8] sm:$0xff]  ;;  %v137_v19 = vld [vmem:[%s5114_s30 + $0x18] sm:$0xff]  ;;  %s5121_s9 = sld [smem:[#allocation9_spill]] }
  0x1f   :  { %123 = vperm.xlu0 %4214, %v94_v11   ;;  %126 = vperm.xlu1 %4215, %v95_v12   ;;  %v4053_v22 = vpack.c.bf16 %v137_v19, %v136_v18  ;;  %v138_v24 = vld [vmem:[%s5114_s30 + $0x20] sm:$0xff]  ;;  %v139_v25 = vld [vmem:[%s5114_s30 + $0x28] sm:$0xff]  ;;  %v140_v28 = vld [vmem:[%s5114_s30 + $0x30] sm:$0xff] }
  0x20   :  { %4050 = vmatprep.subr.bf16.mxu0 %v4049_v10  ;;  %v4057_v27 = vpack.c.bf16 %v139_v25, %v138_v24  ;;  %v141_v29 = vld [vmem:[%s5114_s30 + $0x38] sm:$0xff]  ;;  %v142_v31 = vld [vmem:[%s5114_s30 + $0x40] sm:$0xff]  ;;  %v143_v32 = vld [vmem:[%s5114_s30 + $0x48] sm:$0xff] }
  0x21   :  { %v4061_v30 = vpack.c.bf16 %v141_v29, %v140_v28  ;;  %v4065_v33 = vpack.c.bf16 %v143_v32, %v142_v31  ;;  %v144_v34 = vld [vmem:[%s5114_s30 + $0x50] sm:$0xff]  ;;  %v145_v35 = vld [vmem:[%s5114_s30 + $0x58] sm:$0xff]  ;;  %v146_v37 = vld [vmem:[%s5114_s30 + $0x60] sm:$0xff]  ;;  %v4619_v32 = vshrl.u32 %v96_v13, 7 }
  0x22   :  { %v4069_v36 = vpack.c.bf16 %v145_v35, %v144_v34  ;;  %v147_v38 = vld [vmem:[%s5114_s30 + $0x68] sm:$0xff]  ;;  %v148_v40 = vld [vmem:[%s5114_s30 + $0x70] sm:$0xff]  ;;  %v149_v41 = vld [vmem:[%s5114_s30 + $0x78] sm:$0xff] }
  0x23   :  { %v4073_v39 = vpack.c.bf16 %v147_v38, %v146_v37  ;;  %v4077_v42 = vpack.c.bf16 %v149_v41, %v148_v40  ;;  %v309_v45 = vld [vmem:[%s5116_s12] sm:$0xff]  ;;  %v442_v0 = vld [vmem:[%s5117_s4 + $0x8] sm:$0xff]  ;;  %v443_v1 = vld [vmem:[%s5117_s4 + $0x10] sm:$0xff]  ;;  %s5119_s12 = sld [smem:[#allocation15_spill]]  ;;  %v619_v34 = vsub.s32 0, %v4619_v32 }
  0x24   :  { %v441_v63 = vld [vmem:[%s5117_s4] sm:$0xff]  ;;  %v444_v3 = vld [vmem:[%s5117_s4 + $0x18] sm:$0xff] }
  0x25   :  { %v4081_v2 = vpack.c.bf16 %v442_v0, %v441_v63  ;;  %v4085_v4 = vpack.c.bf16 %v444_v3, %v443_v1  ;;  %v3521_v12 = vld [vmem:[%s5118_s2] ss:$0 sm:$0xff]  ;;  %s4326_s2 = smov 48  }
  0x26   :  { %v3523_v24 = vld [vmem:[%s5120_s8] ss:$0 sm:$0xff] }
  0x27   :  { %4082 = vmatprep.subr.bf16.mxu1 %v4081_v2 }
  0x28   :  { %4084 = vmatpush3.bf16.msra.mxu1 %v4081_v2 }
  0x29   :  { %4086 = vmatprep.subr.bf16.mxu1 %v4085_v4 }
  0x2c   :  { %4088 = vmatpush3.bf16.msra.mxu1 %v4085_v4 }
  0x2d   :  { %3816 = vmatprep.subr.mxu1 %v4319_v16 }
  0x94   :  { %v112_v15 = vpop.permute.xlu0 %111 }
  0x95   :  { %vm116_vm1 = vcmp.eq.s32.totalorder %v4505_v14, %v112_v15  ;;  %v100_v21 = vpop.permute.xlu1 %99 }
  0x96   :  { %v3511_v17 = vsel %vm116_vm1, 1.0, %v4319_v16  ;;  %vm104_vm3 = vcmp.eq.s32.totalorder %v4505_v14, %v100_v21 }
  0x97   :  { %3762 = vmatprep.mubr.msk.f32.mxu0 %vm152_vm0, %v3511_v17  ;;  %v3522_v17 = vld [vmem:[%s5119_s12] ss:$0 sm:$0xff]  ;;  %s5122_s12 = sld [smem:[#allocation18_spill]] }
  0x98   :  { %v115_v20 = vpop.permute.xlu0 %114 }
  0x99   :  { %vm117_vm2 = vcmp.eq.s32.totalorder %v4505_v14, %v115_v20  ;;  %v103_v44 = vpop.permute.xlu1 %102 }
  0x9a   :  { %v3512_v23 = vsel %vm117_vm2, 1.0, %v4319_v16  ;;  %vm105_vm6 = vcmp.eq.s32.totalorder %v4505_v14, %v103_v44 }
  0x9b   :  { %3763 = vmatmul.mubr.msk.f32.vlgmr.msra.gmra.mrb[0].mxu0 %vm152_vm0, %v3512_v23 }
  0x9c   :  { %4052 = vmatpush3.bf16.msra.mxu0 %v4049_v10  ;;  %3797 = vmatprep.mubr.msk.f32.mxu0 %vm104_vm3, %v4320_v26 }
  0x9d   :  { %4054 = vmatprep.subr.bf16.mxu0 %v4053_v22 }
  0x9e   :  { %v124_v43 = vpop.permute.xlu0 %123  ;;  %v127_v47 = vpop.permute.xlu1 %126 }
  0x9f   :  { %vm128_vm4 = vcmp.eq.s32.totalorder %v4505_v14, %v124_v43  ;;  %vm129_vm7 = vcmp.eq.s32.totalorder %v4505_v14, %v127_v47 }
  0xa0   :  { %4056 = vmatpush3.bf16.msra.mxu0 %v4053_v22  ;;  %v3513_v46 = vsel %vm128_vm4, 1.0, %v4319_v16  ;;  %v3514_v48 = vsel %vm129_vm7, 1.0, %v4319_v16 }
  0xa1   :  { %4058 = vmatprep.subr.bf16.mxu0 %v4057_v27 }
  0xa4   :  { %4060 = vmatpush3.bf16.msra.mxu0 %v4057_v27 }
  0xa5   :  { %4062 = vmatprep.subr.bf16.mxu0 %v4061_v30 }
  0xa8   :  { %4064 = vmatpush3.bf16.msra.mxu0 %v4061_v30  ;;  %v440_v30 = vld [vmem:[%s5121_s9] sm:$0x3] }
  0xa9   :  { %4066 = vmatprep.subr.bf16.mxu0 %v4065_v33  ;;  %v537_v31 = vsub.f32 1.0, %v440_v30 }
  0xac   :  { %4068 = vmatpush3.bf16.msra.mxu0 %v4065_v33  ;;  %v4621_v33 = vmul.f32 -10000.0, %v537_v31 }
  0xad   :  { %4070 = vmatprep.subr.bf16.mxu0 %v4069_v36 }
  0xae   :  { %v4625_v35 = vrot.slane %v4621_v33, %v619_v34 }
  0xb0   :  { %4072 = vmatpush3.bf16.msra.mxu0 %v4069_v36 }
  0xb1   :  { %4074 = vmatprep.subr.bf16.mxu0 %v4073_v39 }
  0xb4   :  { %4076 = vmatpush3.bf16.msra.mxu0 %v4073_v39 }
  0xb5   :  { %4078 = vmatprep.subr.bf16.mxu0 %v4077_v42 }
  0xb8   :  { %4080 = vmatpush3.bf16.msra.mxu0 %v4077_v42 }
  0xb9   :  { %3800 = vmatprep.subr.mxu0 %v309_v45 }
  0xbb   :  { %3798 = vmatmul.mubr.msk.f32.vlgmr.msra.gmra.mrb[0].mxu0 %vm105_vm6, %v4320_v26 }
  0xbc   :  { %3801 = vmatpush3.msra.mxu0 %v309_v45  ;;  %3802 = vmatprep.mubr.msk.f32.mxu0 %vm310_vm5, %v3513_v46 }
  0xbd   :  { %3860 = vmatprep.subr.mxu0 %v4319_v16 }
  0xc3   :  { %3803 = vmatmul.mubr.msk.f32.vlgmr.msra.gmra.mrb[0].mxu0 %vm310_vm5, %v3514_v48 }
  0xc4   :  { %3862 = vmatprep.mubr.msk.f32.mxu0 %vm4321_vm9, %v4319_v16 }
 0x196   :  { %v3804_v49 = vpop.f32.mrb[0].mxu0 }
 0x197   :  { %v383_v50 = vpop.f32.mrb[1].mxu0  ;;  %v400_v51 = vsel %vm396_vm8, %v3804_v49, 0.0 }
 0x198   :  { %401 = vadd.xlane.f32.xlu1 %v400_v51  ;;  %v397_v52 = vsel %vm396_vm8, %v383_v50, 0.0 }
 0x199   :  { %398 = vadd.xlane.f32.xlu0 %v397_v52 }
 0x225   :  { %v402_v53 = vpop.xlane.xlu1 %401 }
 0x226   :  { %v405_v54 = vmul.f32 0.03125, %v402_v53  ;;  %v399_v55 = vpop.xlane.xlu0 %398 }
 0x227   :  { %v404_v56 = vmul.f32 0.03125, %v399_v55 }
 0x228   :  { %v407_v57 = vsub.f32 %v3804_v49, %v405_v54 }
 0x229   :  { %v406_v58 = vsub.f32 %v383_v50, %v404_v56 }
 0x22a   :  { %v409_v61 = vmul.f32 %v407_v57, %v407_v57 }
 0x22b   :  { %v408_v59 = vmul.f32 %v406_v58, %v406_v58 }
 0x22c   :  { %v413_v62 = vsel %vm396_vm8, %v409_v61, 0.0 }
 0x22d   :  { %v410_v60 = vsel %vm396_vm8, %v408_v59, 0.0 }
 0x22e   :  { %411 = vadd.xlane.f32.xlu0 %v410_v60 }
 0x232   :  { %414 = vadd.xlane.f32.xlu0 %v413_v62 }
 0x2bb   :  { %v412_v5 = vpop.xlane.xlu0 %411 }
 0x2bc   :  { %v416_v6 = vmul.f32 0.03125, %v412_v5  ;;  %v1103_v5 = vsub.s32 1, %v4619_v32 }
 0x2be   :  { %v418_v7 = vadd.f32 1e-12, %v416_v6  ;;  %v4659_v6 = vrot.slane %v4621_v33, %v1103_v5 }
 0x2bf   :  { %v415_v8 = vpop.xlane.xlu0 %414 }
 0x2c0   :  { %4216 = vrsqrt.f32 %v418_v7  ;;  %v417_v9 = vmul.f32 0.03125, %v415_v8 }
 0x2c2   :  { %v419_v10 = vadd.f32 1e-12, %v417_v9 }
 0x2c4   :  { %4218 = vrsqrt.f32 %v419_v10 }
 0x2ca   :  { %v4217_v11 = vpop.eup %4216 }
 0x2cb   :  { %v422_v15 = vmul.f32 %v4217_v11, %v406_v58 }
 0x2cd   :  { %v430_v18 = vmul.f32 %v3521_v12, %v422_v15  ;;  %v536_v15 = vld [vmem:[%s5122_s12 + $0x18] sm:$0xff] }
 0x2ce   :  { %v4219_v19 = vpop.eup %4218 }
 0x2cf   :  { %v423_v20 = vmul.f32 %v4219_v19, %v407_v57  ;;  %v4590_v21 = vadd.f32 %v3522_v17, %v430_v18  ;;  %v533_v19 = vld [vmem:[%s5122_s12] sm:$0xff] }
 0x2d1   :  { %v431_v22 = vmul.f32 %v3521_v12, %v423_v20  ;;  %3813 = vmatprep.mubr.msk.f32.mxu1 %vm396_vm8, %v4590_v21  ;;  %v535_v12 = vld [vmem:[%s5122_s12 + $0x10] sm:$0xff]  ;;  %v534_v20 = vld [vmem:[%s5122_s12 + $0x8] sm:$0xff] }
 0x2d2   :  { %v4090_v18 = vpack.c.bf16 %v536_v15, %v535_v12 }
 0x2d3   :  { %v4594_v23 = vadd.f32 %v3522_v17, %v431_v22  ;;  %v4327_v17 = vmov 0.0|0.0   ;;  %v4681_v22 = vpack.c.bf16 %v534_v20, %v533_v19 }
 0x2d5   :  { %3814 = vmatmul.mubr.msk.f32.vlgmr.msra.gmra.mrb[0].mxu1 %vm396_vm8, %v4594_v23 }
 0x2d6   :  { %3818 = vmatprep.mubr.msk.f32.mxu1 %vm4321_vm9, %v4319_v16 }
 0x3a8   :  { %v3815_v25 = vpop.f32.mrb[0].mxu1 }
 0x3a9   :  { %v4605_v26 = vadd.f32 %v3815_v25, %v3523_v24  ;;  %v524_v27 = vpop.f32.mrb[1].mxu1 }
 0x3aa   :  { %v525_v28 = vadd.f32 %v3523_v24, %v524_v27 }
 0x3ac   :  { %540 = vrot.lane.b32.xlu1 %v525_v28, %s4322_s5 }
 0x3b0   :  { %711 = vrot.lane.b32.xlu1 %v525_v28, %s4323_s3 }
 0x3b4   :  { %709 = vrot.lane.b32.xlu1 %v525_v28, %s4324_s10 }
 0x41e   :  { %v541_v29 = vpop.permute.xlu1 %540 }
 0x41f   :  { %3817 = vmatpush3.xpose.msk.msra.mxu1 %vm152_vm0, %v541_v29 }
 0x420   :  { %3821 = vmatprep.subr.mxu1 %v4319_v16 }
 0x422   :  { %3819 = vmatmul.mubr.msk.f32.vlgmr.msra.gmra.mrb[2].mxu1 %vm152_vm0, %v525_v28  ;;  %v712_v48 = vpop.permute.xlu1 %711 }
 0x423   :  { %3823 = vmatprep.mubr.msk.f32.mxu1 %vm4321_vm9, %v4319_v16 }
 0x426   :  { %v710_v50 = vpop.permute.xlu1 %709 }
 0x4f5   :  { %v612_v36 = vpop.f32.mrb[2].mxu1 }
 0x4f6   :  { %v616_v37 = vmul.f32 0.25, %v612_v36  ;;  %v3820_v38 = vpop.f32.mrb[3].mxu1 }
 0x4f7   :  { %v3542_v38 = vld [vmem:[%s5071_s13] ss:$0 sm:$0xff] }
 0x4f8   :  { %v621_v39 = vadd.f32 %v4625_v35, %v616_v37 }
 0x4fa   :  { %v622_v40 = vsel %vm310_vm5, %v621_v39, -inf }
 0x4fb   :  { %623 = vmax.xlane.f32.xlu0 %v622_v40 }
 0x588   :  { %v624_v41 = vpop.xlane.xlu0 %623 }
 0x589   :  { %v625_v42 = vsub.f32 %v621_v39, %v624_v41 }
 0x58b   :  { %v626_v43 = vmul.f32 1.442695, %v625_v42 }
 0x58d   :  { %4220 = vpow2.f32 %v626_v43 }
 0x597   :  { %v4221_v13 = vpop.eup %4220 }
 0x598   :  { %v628_v44 = vsel %vm310_vm5, %v4221_v13, 0.0 }
 0x599   :  { %629 = vadd.xlane.f32.xlu0 %v628_v44 }
 0x5af   :  { %633 = vrot.lane.b32.xlu0 %v525_v28, %s5096_s29 }
 0x626   :  { %v630_v45 = vpop.xlane.xlu0 %629 }
 0x627   :  { %4222 = vrcp.f32 %v630_v45 }
 0x62a   :  { %v634_v46 = vpop.permute.xlu0 %633 }
 0x62b   :  { %3822 = vmatpush3.msra.mxu1 %v634_v46 }
 0x62c   :  { %3826 = vmatprep.subr.mxu1 %v4319_v16 }
 0x631   :  { %v4223_v47 = vpop.eup %4222 }
 0x632   :  { %v632_v49 = vmul.f32 %v4223_v47, %v4221_v13 }
 0x634   :  { %3824 = vmatmul.mubr.msk.f32.vlgmr.msra.gmra.mrb[4].mxu1 %vm310_vm5, %v632_v49 }
 0x635   :  { %3827 = vmatpush3.xpose.msk.msra.mxu1 %vm152_vm0, %v712_v48  ;;  %3828 = vmatprep.mubr.msk.f32.mxu1 %vm4321_vm9, %v4319_v16 }
 0x636   :  { %3831 = vmatprep.subr.mxu1 %v4319_v16 }
 0x638   :  { %3829 = vmatmul.mubr.msk.f32.vlgmr.msra.gmra.mrb[6].mxu1 %vm152_vm0, %v710_v50 }
 0x639   :  { %3833 = vmatprep.mubr.msk.f32.mxu1 %vm4321_vm9, %v4319_v16 }
 0x707   :  { %v705_v51 = vpop.f32.mrb[4].mxu1 }
 0x708   :  { %v3825_v52 = vpop.f32.mrb[5].mxu1 }
 0x70b   :  { %v783_v53 = vpop.f32.mrb[6].mxu1 }
 0x70c   :  { %v787_v54 = vmul.f32 0.25, %v783_v53  ;;  %v3830_v55 = vpop.f32.mrb[7].mxu1 }
 0x70e   :  { %v788_v56 = vadd.f32 %v787_v54, %v4625_v35 }
 0x710   :  { %v789_v57 = vsel %vm310_vm5, %v788_v56, -inf }
 0x711   :  { %790 = vmax.xlane.f32.xlu1 %v789_v57 }
 0x722   :  { %800 = vrot.lane.b32.xlu1 %v525_v28, %s4326_s2 }
 0x726   :  { %1195 = vrot.lane.b32.xlu1 %v4605_v26, %s4323_s3 }
 0x72a   :  { %1193 = vrot.lane.b32.xlu1 %v4605_v26, %s4324_s10 }
 0x79e   :  { %v791_v58 = vpop.xlane.xlu1 %790 }
 0x79f   :  { %v792_v59 = vsub.f32 %v788_v56, %v791_v58 }
 0x7a1   :  { %v793_v60 = vmul.f32 1.442695, %v792_v59 }
 0x7a2   :  { %v801_v61 = vpop.permute.xlu1 %800 }
 0x7a3   :  { %4224 = vpow2.f32 %v793_v60  ;;  %3832 = vmatpush3.msra.mxu1 %v801_v61  ;;  %v3543_v61 = vld [vmem:[%s5072_s14] ss:$0 sm:$0xff] }
 0x7a4   :  { %4089 = vmatprep.subr.bf16.mxu1 %v4327_v17 }
 0x7a6   :  { %v1196_v62 = vpop.permute.xlu1 %1195 }
 0x7a7   :  { %3861 = vmatpush3.xpose.msk.msra.mxu0 %vm152_vm0, %v1196_v62 }
 0x7a8   :  { %4095 = vmatprep.subr.bf16.mxu0 %v4327_v17 }
 0x7aa   :  { %v1194_v63 = vpop.permute.xlu1 %1193 }
 0x7ab   :  { %3863 = vmatmul.mubr.msk.f32.vlgmr.msra.gmra.mrb[2].mxu0 %vm152_vm0, %v1194_v63 }
 0x7ac   :  { %3874 = vmatprep.mubr.msk.f32.mxu0 %vm4321_vm9, %v4319_v16  ;;  %4097 = vmatpush3.bf16.msra.mxu0 %v4090_v18 }
 0x7ad   :  { %v4225_v0 = vpop.eup %4224  ;;  %4098 = vmatprep.subr.bf16.mxu0 %v4327_v17 }
 0x7ae   :  { %v795_v1 = vsel %vm310_vm5, %v4225_v0, 0.0 }
 0x7af   :  { %796 = vadd.xlane.f32.xlu0 %v795_v1 }
 0x7c5   :  { %1024 = vrot.lane.b32.xlu0 %v4605_v26, %s4322_s5 }
 0x83c   :  { %v797_v2 = vpop.xlane.xlu0 %796 }
 0x83d   :  { %4226 = vrcp.f32 %v797_v2 }
 0x840   :  { %v1025_v28 = vpop.permute.xlu0 %1024 }
 0x847   :  { %v4227_v3 = vpop.eup %4226 }
 0x848   :  { %v799_v4 = vmul.f32 %v4227_v3, %v4225_v0 }
 0x84a   :  { %3834 = vmatmul.mubr.msk.f32.vlgmr.msra.gmra.mrb[8].mxu1 %vm310_vm5, %v799_v4 }
 0x84b   :  { %3840 = vmatprep.mubr.msk.f32.mxu1 %vm4321_vm9, %v4319_v16  ;;  %4091 = vmatpush3.bf16.msra.mxu1 %v4090_v18 }
 0x84c   :  { %4092 = vmatprep.subr.bf16.mxu1 %v4327_v17 }
 0x87e   :  { %v1267_v7 = vpop.f32.mrb[2].mxu0 }
 0x87f   :  { %v1271_v8 = vmul.f32 0.25, %v1267_v7  ;;  %v3864_v9 = vpop.f32.mrb[3].mxu0 }
 0x881   :  { %v1272_v10 = vadd.f32 %v1271_v8, %v4659_v6 }
 0x883   :  { %v1273_v11 = vsel %vm310_vm5, %v1272_v10, -inf }
 0x884   :  { %1274 = vmax.xlane.f32.xlu1 %v1273_v11 }
 0x895   :  { %1117 = vrot.lane.b32.xlu1 %v4605_v26, %s5096_s29 }
 0x911   :  { %v1275_v27 = vpop.xlane.xlu1 %1274 }
 0x912   :  { %v1276_v30 = vsub.f32 %v1272_v10, %v1275_v27 }
 0x914   :  { %v1277_v31 = vmul.f32 1.442695, %v1276_v30  ;;  %v1565_v30 = vld [vmem:[%s5074_s16 + $0x8] sm:$0xff] }
 0x915   :  { %v1118_v29 = vpop.permute.xlu1 %1117 }
 0x916   :  { %4228 = vpow2.f32 %v1277_v31 }
 0x91d   :  { %v872_v24 = vpop.f32.mrb[8].mxu1 }
 0x91e   :  { %v3835_v25 = vpop.f32.mrb[9].mxu1  ;;  %3841 = vmatmul.mubr.msk.f32.vlgmr.msra.gmra.mrb[10].mxu1 %vm152_vm0, %v872_v24 }
 0x91f   :  { %4094 = vmatpush3.bf16.msra.mxu1 %v4681_v22  ;;  %3847 = vmatprep.mubr.msk.f32.mxu1 %vm4321_vm9, %v4319_v16 }
 0x920   :  { %3850 = vmatprep.subr.mxu1 %v4319_v16  ;;  %v4229_v43 = vpop.eup %4228 }
 0x921   :  { %v1279_v45 = vsel %vm310_vm5, %v4229_v43, 0.0 }
 0x926   :  { %3848 = vmatmul.mubr.msk.f32.vlgmr.msra.gmra.mrb[10].mxu1 %vm152_vm0, %v705_v51 }
 0x927   :  { %3852 = vmatprep.mubr.msk.f32.mxu1 %vm4321_vm9, %v4319_v16 }
 0x928   :  { %3851 = vmatpush3.xpose.msk.msra.mxu1 %vm152_vm0, %v1025_v28 }
 0x929   :  { %3855 = vmatprep.subr.mxu1 %v4319_v16 }
 0x92b   :  { %3853 = vmatmul.mubr.msk.f32.vlgmr.msra.gmra.mrb[12].mxu1 %vm152_vm0, %v4605_v26 }
 0x92c   :  { %3856 = vmatpush3.msra.mxu1 %v1118_v29  ;;  %3857 = vmatprep.mubr.msk.f32.mxu1 %vm4321_vm9, %v4319_v16  ;;  %v1564_v29 = vld [vmem:[%s5074_s16] sm:$0xff] }
 0x92d   :  { %3865 = vmatprep.subr.mxu1 %v4319_v16  ;;  %v4101_v31 = vpack.c.bf16 %v1565_v30, %v1564_v29  ;;  %v3554_v30 = vld [vmem:[%s5117_s4 + $0x28] sm:$0xff] }
 0x9f9   :  { %v1018_v32 = vpop.f32.mrb[10].mxu1 }
 0x9fa   :  { %1022 = vst.msk [vmem:[#allocation2] sm:$0xff] %vm396_vm8, %v1018_v32  ;;  %v3849_v33 = vpop.f32.mrb[11].mxu1  ;;  %v1567_v32 = vld [vmem:[%s5074_s16 + $0x18] sm:$0xff] }
 0x9fe   :  { %v1096_v34 = vpop.f32.mrb[12].mxu1 }
 0x9ff   :  { %v1100_v36 = vmul.f32 0.25, %v1096_v34  ;;  %v3854_v37 = vpop.f32.mrb[13].mxu1 }
 0xa01   :  { %v1105_v39 = vadd.f32 %v4659_v6, %v1100_v36  ;;  %v1507_v40 = vld [vmem:[#allocation2] sm:$0xff] }
 0xa02   :  { %v1516_v41 = vadd.f32 %v3542_v38, %v1507_v40 }
 0xa03   :  { %v1106_v42 = vsel %vm310_vm5, %v1105_v39, -inf }
 0xa04   :  { %1107 = vmax.xlane.f32.xlu0 %v1106_v42  ;;  %v1518_v13 = vadd.f32 %v1516_v41, %v4590_v21  ;;  %v1667_v42 = vld [vmem:[%s5076_s18] sm:$0xff] }
 0xa06   :  { %v1522_v44 = vsel %vm396_vm8, %v1518_v13, 0.0 }
 0xa07   :  { %1523 = vadd.xlane.f32.xlu1 %v1522_v44  ;;  %v1669_v44 = vld [vmem:[%s5076_s18 + $0x10] sm:$0xff] }
 0xa08   :  { %1280 = vadd.xlane.f32.xlu0 %v1279_v45  ;;  %v1670_v45 = vld [vmem:[%s5076_s18 + $0x18] sm:$0xff] }
 0xa91   :  { %v1108_v46 = vpop.xlane.xlu0 %1107 }
 0xa92   :  { %v1109_v47 = vsub.f32 %v1105_v39, %v1108_v46  ;;  %v4113_v46 = vpack.c.bf16 %v1670_v45, %v1669_v44  ;;  %v3552_v45 = vld [vmem:[%s5079_s21] ss:$0 sm:$0xff] }
 0xa94   :  { %v1110_v48 = vmul.f32 1.442695, %v1109_v47  ;;  %v1524_v49 = vpop.xlane.xlu1 %1523  ;;  %v1671_v47 = vld [vmem:[%s5076_s18 + $0x20] sm:$0xff] }
 0xa95   :  { %v1528_v50 = vmul.f32 0.03125, %v1524_v49  ;;  %v1281_v57 = vpop.xlane.xlu0 %1280 }
 0xa96   :  { %4230 = vpow2.f32 %v1110_v48  ;;  %v1672_v48 = vld [vmem:[%s5076_s18 + $0x28] sm:$0xff] }
 0xa97   :  { %v1530_v51 = vsub.f32 %v1518_v13, %v1528_v50  ;;  %v4117_v49 = vpack.c.bf16 %v1672_v48, %v1671_v47  ;;  %v1673_v50 = vld [vmem:[%s5076_s18 + $0x30] sm:$0xff] }
 0xa99   :  { %v1532_v52 = vmul.f32 %v1530_v51, %v1530_v51 }
 0xa9b   :  { %v1534_v53 = vsel %vm396_vm8, %v1532_v52, 0.0 }
 0xa9c   :  { %1535 = vadd.xlane.f32.xlu1 %v1534_v53  ;;  %v3545_v53 = vld [vmem:[%s5075_s17] ss:$0 sm:$0xff] }
 0xaa0   :  { %v4231_v54 = vpop.eup %4230 }
 0xaa1   :  { %v1112_v21 = vsel %vm310_vm5, %v4231_v54, 0.0 }
 0xaa2   :  { %1113 = vadd.xlane.f32.xlu0 %v1112_v21 }
 0xab8   :  { %1284 = vrot.lane.b32.xlu0 %v4605_v26, %s4326_s2  ;;  %v3544_v26 = vld [vmem:[%s5073_s15] ss:$0 sm:$0xff] }
 0xb29   :  { %v1536_v55 = vpop.xlane.xlu1 %1535 }
 0xb2a   :  { %v1540_v56 = vmul.f32 0.03125, %v1536_v55 }
 0xb2c   :  { %v1542_v58 = vadd.f32 1e-12, %v1540_v56 }
 0xb2e   :  { %4232 = vrsqrt.f32 %v1542_v58 }
 0xb2f   :  { %v1114_v59 = vpop.xlane.xlu0 %1113 }
 0xb30   :  { %4234 = vrcp.f32 %v1114_v59 }
 0xb31   :  { %4236 = vrcp.f32 %v1281_v57 }
 0xb33   :  { %v1285_v3 = vpop.permute.xlu0 %1284 }
 0xb38   :  { %v4233_v60 = vpop.eup %4232 }
 0xb39   :  { %v1546_v62 = vmul.f32 %v4233_v60, %v1530_v51  ;;  %v1674_v51 = vld [vmem:[%s5076_s18 + $0x38] sm:$0xff] }
 0xb3a   :  { %v4235_v63 = vpop.eup %4234  ;;  %v4121_v52 = vpack.c.bf16 %v1674_v51, %v1673_v50  ;;  %v3558_v50 = vld [vmem:[%s5120_s8 + $0x1] ss:$0 sm:$0xff]  ;;  %s5123_s8 = smov 64  }
 0xb3b   :  { %v1116_v0 = vmul.f32 %v4235_v63, %v4231_v54  ;;  %v4237_v1 = vpop.eup %4236  ;;  %v1554_v2 = vmul.f32 %v3543_v61, %v1546_v62 }
 0xb3c   :  { %v1283_v4 = vmul.f32 %v4237_v1, %v4229_v43  ;;  %v1668_v43 = vld [vmem:[%s5076_s18 + $0x8] sm:$0xff] }
 0xb3d   :  { %3858 = vmatmul.mubr.msk.f32.vlgmr.msra.gmra.mrb[14].mxu1 %vm310_vm5, %v1116_v0  ;;  %v4720_v5 = vadd.f32 %v3544_v26, %v1554_v2  ;;  %v4109_v13 = vpack.c.bf16 %v1668_v43, %v1667_v42  ;;  %v3551_v42 = vld [vmem:[%s5078_s20] ss:$0 sm:$0xff] }
 0xb3e   :  { %3866 = vmatpush3.msra.mxu1 %v1285_v3  ;;  %3867 = vmatprep.mubr.msk.f32.mxu1 %vm4321_vm9, %v4319_v16  ;;  %v3548_v3 = vld [vmem:[%s5077_s19] ss:$0 sm:$0xff] }
 0xb3f   :  { %4102 = vmatprep.subr.bf16.mxu1 %v4101_v31 }
 0xb41   :  { %3868 = vmatmul.mubr.msk.f32.vlgmr.msra.gmra.mrb[16].mxu1 %vm310_vm5, %v1283_v4 }
 0xb42   :  { %3892 = vmatprep.mubr.msk.f32.mxu1 %vm396_vm8, %v4720_v5  ;;  %4104 = vmatpush3.bf16.msra.mxu1 %v4101_v31 }
 0xc10   :  { %v1189_v7 = vpop.f32.mrb[14].mxu1 }
 0xc11   :  { %v3859_v8 = vpop.f32.mrb[15].mxu1 }
 0xc14   :  { %v1356_v9 = vpop.f32.mrb[16].mxu1 }
 0xc15   :  { %v3869_v10 = vpop.f32.mrb[17].mxu1  ;;  %3875 = vmatmul.mubr.msk.f32.vlgmr.msra.gmra.mrb[4].mxu0 %vm152_vm0, %v1356_v9 }
 0xc16   :  { %4100 = vmatpush3.bf16.msra.mxu0 %v4681_v22  ;;  %3881 = vmatprep.mubr.msk.f32.mxu0 %vm4321_vm9, %v4319_v16 }
 0xc17   :  { %4110 = vmatprep.subr.bf16.mxu0 %v4109_v13 }
 0xc1d   :  { %3882 = vmatmul.mubr.msk.f32.vlgmr.msra.gmra.mrb[4].mxu0 %vm152_vm0, %v1189_v7 }
 0xc1e   :  { %4112 = vmatpush3.bf16.msra.mxu0 %v4109_v13 }
 0xc1f   :  { %4114 = vmatprep.subr.bf16.mxu0 %v4113_v46 }
 0xc22   :  { %4116 = vmatpush3.bf16.msra.mxu0 %v4113_v46 }
 0xc23   :  { %4118 = vmatprep.subr.bf16.mxu0 %v4117_v49 }
 0xc26   :  { %4120 = vmatpush3.bf16.msra.mxu0 %v4117_v49 }
 0xc27   :  { %4122 = vmatprep.subr.bf16.mxu0 %v4121_v52 }
 0xc2a   :  { %4124 = vmatpush3.bf16.msra.mxu0 %v4121_v52 }
 0xc2b   :  { %3935 = vmatprep.subr.mxu0 %v4319_v16 }
 0xcf0   :  { %v1502_v11 = vpop.f32.mrb[4].mxu0 }
 0xcf1   :  { %1506 = vst.msk [vmem:[#allocation2 + $0x8] sm:$0xff] %vm396_vm8, %v1502_v11  ;;  %v3883_v12 = vpop.f32.mrb[5].mxu0 }
 0xcf8   :  { %v1508_v15 = vld [vmem:[#allocation2 + $0x8] sm:$0xff] }
 0xcf9   :  { %v1517_v18 = vadd.f32 %v3542_v38, %v1508_v15 }
 0xcfb   :  { %v1519_v19 = vadd.f32 %v1517_v18, %v4594_v23  ;;  %v1566_v23 = vld [vmem:[%s5074_s16 + $0x10] sm:$0xff] }
 0xcfc   :  { %v4105_v33 = vpack.c.bf16 %v1567_v32, %v1566_v23  ;;  %v3555_v23 = vld [vmem:[%s5117_s4 + $0x30] sm:$0xff]  ;;  %v3556_v32 = vld [vmem:[%s5117_s4 + $0x38] sm:$0xff] }
 0xcfd   :  { %v1525_v20 = vsel %vm396_vm8, %v1519_v19, 0.0 }
 0xcfe   :  { %1526 = vadd.xlane.f32.xlu0 %v1525_v20  ;;  %4106 = vmatprep.subr.bf16.mxu1 %v4105_v33 }
 0xcff   :  { %4108 = vmatpush3.bf16.msra.mxu1 %v4105_v33  ;;  %v4129_v33 = vpack.c.bf16 %v3556_v32, %v3555_v23  ;;  %v3562_v23 = vld [vmem:[%s5122_s12 + $0x28] sm:$0xff] }
 0xd8b   :  { %v1527_v24 = vpop.xlane.xlu0 %1526 }
 0xd8c   :  { %v1529_v25 = vmul.f32 0.03125, %v1527_v24 }
 0xd8e   :  { %v1531_v27 = vsub.f32 %v1519_v19, %v1529_v25 }
 0xd90   :  { %v1533_v22 = vmul.f32 %v1531_v27, %v1531_v27 }
 0xd92   :  { %v1537_v28 = vsel %vm396_vm8, %v1533_v22, 0.0 }
 0xd93   :  { %1538 = vadd.xlane.f32.xlu0 %v1537_v28 }
 0xe20   :  { %v1539_v34 = vpop.xlane.xlu0 %1538 }
 0xe21   :  { %v1541_v36 = vmul.f32 0.03125, %v1539_v34 }
 0xe23   :  { %v1543_v37 = vadd.f32 1e-12, %v1541_v36 }
 0xe25   :  { %4238 = vrsqrt.f32 %v1543_v37 }
 0xe2f   :  { %v4239_v38 = vpop.eup %4238 }
 0xe30   :  { %v1547_v39 = vmul.f32 %v4239_v38, %v1531_v27 }
 0xe32   :  { %v1555_v40 = vmul.f32 %v3543_v61, %v1547_v39 }
 0xe34   :  { %v1563_v41 = vadd.f32 %v3544_v26, %v1555_v40 }
 0xe36   :  { %3893 = vmatmul.mubr.msk.f32.vlgmr.msra.gmra.mrb[18].mxu1 %vm396_vm8, %v1563_v41 }
 0xf09   :  { %v3894_v54 = vpop.f32.mrb[18].mxu1 }
 0xf0a   :  { %v1653_v21 = vadd.f32 %v3894_v54, %v3545_v53  ;;  %v1647_v55 = vpop.f32.mrb[19].mxu1 }
 0xf0b   :  { %v1648_v56 = vadd.f32 %v3545_v53, %v1647_v55 }
 0xf0c   :  { %v1660_v57 = vmul.f32 0.70710677, %v1653_v21  ;;  %v1657_v0 = vmul.f32 0.5, %v1653_v21 }
 0xf0d   :  { %v1659_v58 = vmul.f32 0.70710677, %v1648_v56  ;;  %v1656_v62 = vmul.f32 0.5, %v1648_v56 }
 0xf0e   :  { %4240 = verf.f32 %v1660_v57 }
 0xf0f   :  { %4242 = verf.f32 %v1659_v58 }
 0xf18   :  { %v4241_v59 = vpop.eup %4240 }
 0xf19   :  { %v4243_v60 = vpop.eup %4242  ;;  %v1664_v61 = vadd.f32 1.0, %v4241_v59 }
 0xf1a   :  { %v1663_v63 = vadd.f32 1.0, %v4243_v60 }
 0xf1b   :  { %v1666_v2 = vmul.f32 %v1664_v61, %v1657_v0 }
 0xf1c   :  { %v1665_v1 = vmul.f32 %v1663_v63, %v1656_v62 }
 0xf1e   :  { %3911 = vmatprep.mubr.msk.f32.mxu0 %vm1682_vm10, %v1665_v1 }
 0xf1f   :  { %3912 = vmatmul.mubr.msk.f32.vlgmr.msra.gmra.mrb[6].mxu0 %vm1682_vm10, %v1666_v2 }
 0xf20   :  { %3937 = vmatprep.mubr.msk.f32.mxu0 %vm4321_vm9, %v4319_v16 }
 0xff2   :  { %v3913_v26 = vpop.f32.mrb[6].mxu0 }
 0xff3   :  { %v1761_v4 = vadd.f32 %v3913_v26, %v3548_v3  ;;  %v1755_v7 = vpop.f32.mrb[7].mxu0 }
 0xff4   :  { %v1756_v8 = vadd.f32 %v3548_v3, %v1755_v7 }
 0xff5   :  { %v1765_v9 = vadd.f32 %v1761_v4, %v1563_v41 }
 0xff6   :  { %v1764_v10 = vadd.f32 %v1756_v8, %v4720_v5  ;;  %v3553_v5 = vld [vmem:[%s5117_s4 + $0x20] sm:$0xff] }
 0xff7   :  { %v1771_v11 = vsel %vm396_vm8, %v1765_v9, 0.0  ;;  %v4125_v31 = vpack.c.bf16 %v3554_v30, %v3553_v5  ;;  %v3564_v5 = vld [vmem:[%s5122_s12 + $0x38] sm:$0xff] }
 0xff8   :  { %1772 = vadd.xlane.f32.xlu0 %v1771_v11  ;;  %v1768_v12 = vsel %vm396_vm8, %v1764_v10, 0.0 }
 0xff9   :  { %1769 = vadd.xlane.f32.xlu1 %v1768_v12  ;;  %4126 = vmatprep.subr.bf16.mxu1 %v4125_v31 }
 0xffa   :  { %4128 = vmatpush3.bf16.msra.mxu1 %v4125_v31  ;;  %v3561_v31 = vld [vmem:[%s5122_s12 + $0x20] sm:$0xff] }
 0xffb   :  { %4130 = vmatprep.subr.bf16.mxu1 %v4129_v33 }
 0xffe   :  { %4132 = vmatpush3.bf16.msra.mxu1 %v4129_v33 }
 0xfff   :  { %3925 = vmatprep.subr.mxu1 %v4319_v16 }
0x1085   :  { %v1773_v15 = vpop.xlane.xlu0 %1772 }
0x1086   :  { %v1775_v18 = vmul.f32 0.03125, %v1773_v15  ;;  %v1770_v19 = vpop.xlane.xlu1 %1769 }
0x1087   :  { %v1774_v20 = vmul.f32 0.03125, %v1770_v19 }
0x1088   :  { %v1777_v24 = vsub.f32 %v1765_v9, %v1775_v18 }
0x1089   :  { %v1776_v25 = vsub.f32 %v1764_v10, %v1774_v20 }
0x108a   :  { %v1779_v27 = vmul.f32 %v1777_v24, %v1777_v24 }
0x108b   :  { %v1778_v22 = vmul.f32 %v1776_v25, %v1776_v25 }
0x108c   :  { %v1783_v28 = vsel %vm396_vm8, %v1779_v27, 0.0 }
0x108d   :  { %1784 = vadd.xlane.f32.xlu0 %v1783_v28  ;;  %v1780_v29 = vsel %vm396_vm8, %v1778_v22, 0.0 }
0x108e   :  { %1781 = vadd.xlane.f32.xlu1 %v1780_v29  ;;  %v3563_v29 = vld [vmem:[%s5122_s12 + $0x30] sm:$0xff] }
0x108f   :  { %v4134_v30 = vpack.c.bf16 %v3564_v5, %v3563_v29 }
0x111a   :  { %v1785_v34 = vpop.xlane.xlu0 %1784 }
0x111b   :  { %v1787_v36 = vmul.f32 0.03125, %v1785_v34  ;;  %v1782_v37 = vpop.xlane.xlu1 %1781  ;;  %v4875_v34 = vpack.c.bf16 %v3562_v23, %v3561_v31 }
0x111c   :  { %v1786_v38 = vmul.f32 0.03125, %v1782_v37 }
0x111d   :  { %v1789_v39 = vadd.f32 1e-12, %v1787_v36 }
0x111e   :  { %v1788_v40 = vadd.f32 1e-12, %v1786_v38 }
0x111f   :  { %4244 = vrsqrt.f32 %v1789_v39 }
0x1120   :  { %4246 = vrsqrt.f32 %v1788_v40 }
0x1129   :  { %v4245_v41 = vpop.eup %4244 }
0x112a   :  { %v4247_v43 = vpop.eup %4246  ;;  %v1793_v13 = vmul.f32 %v4245_v41, %v1777_v24 }
0x112b   :  { %v1792_v44 = vmul.f32 %v4247_v43, %v1776_v25 }
0x112c   :  { %v1801_v46 = vmul.f32 %v3551_v42, %v1793_v13 }
0x112d   :  { %v1800_v47 = vmul.f32 %v3551_v42, %v1792_v44 }
0x112e   :  { %v4808_v49 = vadd.f32 %v3552_v45, %v1801_v46 }
0x112f   :  { %v4806_v48 = vadd.f32 %v3552_v45, %v1800_v47 }
0x1131   :  { %3922 = vmatprep.mubr.msk.f32.mxu1 %vm396_vm8, %v4806_v48 }
0x1132   :  { %3923 = vmatmul.mubr.msk.f32.vlgmr.msra.gmra.mrb[20].mxu1 %vm396_vm8, %v4808_v49 }
0x1133   :  { %3927 = vmatprep.mubr.msk.f32.mxu1 %vm4321_vm9, %v4319_v16 }
0x1205   :  { %v3924_v51 = vpop.f32.mrb[20].mxu1 }
0x1206   :  { %v4819_v52 = vadd.f32 %v3924_v51, %v3558_v50  ;;  %v1895_v53 = vpop.f32.mrb[21].mxu1 }
0x1207   :  { %v1896_v54 = vadd.f32 %v3558_v50, %v1895_v53 }
0x1209   :  { %2077 = vrot.lane.b32.xlu0 %v1896_v54, %s4323_s3  ;;  %1910 = vrot.lane.b32.xlu1 %v1896_v54, %s4322_s5 }
0x120d   :  { %2075 = vrot.lane.b32.xlu1 %v1896_v54, %s4324_s10 }
0x127b   :  { %v2078_v21 = vpop.permute.xlu0 %2077  ;;  %v1911_v55 = vpop.permute.xlu1 %1910 }
0x127c   :  { %3926 = vmatpush3.xpose.msk.msra.mxu1 %vm152_vm0, %v1911_v55  ;;  %3936 = vmatpush3.xpose.msk.msra.mxu0 %vm152_vm0, %v2078_v21 }
0x127d   :  { %3930 = vmatprep.subr.mxu1 %v4319_v16  ;;  %4133 = vmatprep.subr.bf16.mxu0 %v4327_v17 }
0x127f   :  { %3928 = vmatmul.mubr.msk.f32.vlgmr.msra.gmra.mrb[22].mxu1 %vm152_vm0, %v1896_v54  ;;  %v2076_v56 = vpop.permute.xlu1 %2075 }
0x1280   :  { %3938 = vmatmul.mubr.msk.f32.vlgmr.msra.gmra.mrb[8].mxu0 %vm152_vm0, %v2076_v56  ;;  %3932 = vmatprep.mubr.msk.f32.mxu1 %vm4321_vm9, %v4319_v16 }
0x1281   :  { %3949 = vmatprep.mubr.msk.f32.mxu0 %vm4321_vm9, %v4319_v16  ;;  %4135 = vmatpush3.bf16.msra.mxu0 %v4134_v30 }
0x1282   :  { %4136 = vmatprep.subr.bf16.mxu0 %v4327_v17 }
0x1352   :  { %v1982_v57 = vpop.f32.mrb[22].mxu1 }
0x1353   :  { %v1986_v58 = vmul.f32 0.25, %v1982_v57  ;;  %v3929_v59 = vpop.f32.mrb[23].mxu1  ;;  %v2149_v60 = vpop.f32.mrb[8].mxu0 }
0x1354   :  { %v2153_v61 = vmul.f32 0.25, %v2149_v60  ;;  %v3939_v62 = vpop.f32.mrb[9].mxu0 }
0x1355   :  { %v1987_v63 = vadd.f32 %v1986_v58, %v4625_v35  ;;  %v3582_v58 = vld [vmem:[%s5071_s13 + $0x1] ss:$0 sm:$0xff] }
0x1356   :  { %v2154_v0 = vadd.f32 %v2153_v61, %v4625_v35 }
0x1357   :  { %v1988_v1 = vsel %vm310_vm5, %v1987_v63, -inf }
0x1358   :  { %1989 = vmax.xlane.f32.xlu1 %v1988_v1  ;;  %v2155_v2 = vsel %vm310_vm5, %v2154_v0, -inf }
0x1359   :  { %2156 = vmax.xlane.f32.xlu0 %v2155_v2 }
0x13e5   :  { %v1990_v3 = vpop.xlane.xlu1 %1989 }
0x13e6   :  { %v1991_v26 = vsub.f32 %v1987_v63, %v1990_v3  ;;  %v2157_v4 = vpop.xlane.xlu0 %2156 }
0x13e7   :  { %v2158_v7 = vsub.f32 %v2154_v0, %v2157_v4 }
0x13e8   :  { %v1992_v8 = vmul.f32 1.442695, %v1991_v26 }
0x13e9   :  { %v2159_v9 = vmul.f32 1.442695, %v2158_v7 }
0x13ea   :  { %4248 = vpow2.f32 %v1992_v8 }
0x13eb   :  { %4250 = vpow2.f32 %v2159_v9 }
0x13f4   :  { %v4249_v10 = vpop.eup %4248 }
0x13f5   :  { %v4251_v11 = vpop.eup %4250  ;;  %v1994_v12 = vsel %vm310_vm5, %v4249_v10, 0.0 }
0x13f6   :  { %1995 = vadd.xlane.f32.xlu0 %v1994_v12  ;;  %v2161_v35 = vsel %vm310_vm5, %v4251_v11, 0.0 }
0x13f7   :  { %2162 = vadd.xlane.f32.xlu1 %v2161_v35 }
0x1408   :  { %2166 = vrot.lane.b32.xlu1 %v1896_v54, %s4326_s2 }
0x140c   :  { %2390 = vrot.lane.b32.xlu1 %v4819_v52, %s4322_s5  ;;  %1999 = vrot.lane.b32.xlu0 %v1896_v54, %s5123_s8 }
0x1410   :  { %2555 = vrot.lane.b32.xlu1 %v4819_v52, %s4324_s10  ;;  %2557 = vrot.lane.b32.xlu0 %v4819_v52, %s4323_s3 }
0x1483   :  { %v1996_v15 = vpop.xlane.xlu0 %1995 }
0x1484   :  { %4252 = vrcp.f32 %v1996_v15  ;;  %v2163_v18 = vpop.xlane.xlu1 %2162 }
0x1485   :  { %4254 = vrcp.f32 %v2163_v18 }
0x1487   :  { %v2000_v19 = vpop.permute.xlu0 %1999 }
0x1488   :  { %3931 = vmatpush3.msra.mxu1 %v2000_v19  ;;  %v2167_v27 = vpop.permute.xlu1 %2166 }
0x1489   :  { %3940 = vmatprep.subr.mxu1 %v4319_v16 }
0x148b   :  { %v2558_v41 = vpop.permute.xlu0 %2557 }
0x148c   :  { %v2391_v28 = vpop.permute.xlu1 %2390 }
0x148e   :  { %v4253_v20 = vpop.eup %4252 }
0x148f   :  { %v1998_v24 = vmul.f32 %v4253_v20, %v4249_v10  ;;  %v4255_v25 = vpop.eup %4254 }
0x1490   :  { %v2165_v22 = vmul.f32 %v4255_v25, %v4251_v11  ;;  %v2556_v13 = vpop.permute.xlu1 %2555  ;;  %v3585_v25 = vld [vmem:[%s5072_s14 + $0x1] ss:$0 sm:$0xff] }
0x1491   :  { %3933 = vmatmul.mubr.msk.f32.vlgmr.msra.gmra.mrb[24].mxu1 %vm310_vm5, %v1998_v24 }
0x1492   :  { %3941 = vmatpush3.msra.mxu1 %v2167_v27  ;;  %3942 = vmatprep.mubr.msk.f32.mxu1 %vm4321_vm9, %v4319_v16 }
0x1493   :  { %3959 = vmatprep.subr.mxu1 %v4319_v16 }
0x1495   :  { %3943 = vmatmul.mubr.msk.f32.vlgmr.msra.gmra.mrb[26].mxu1 %vm310_vm5, %v2165_v22 }
0x1496   :  { %3961 = vmatprep.mubr.msk.f32.mxu1 %vm4321_vm9, %v4319_v16 }
0x1499   :  { %3960 = vmatpush3.xpose.msk.msra.mxu1 %vm152_vm0, %v2391_v28  ;;  %v3586_v28 = vld [vmem:[%s5073_s15 + $0x1] ss:$0 sm:$0xff] }
0x149a   :  { %3964 = vmatprep.subr.mxu1 %v4319_v16 }
0x149c   :  { %3962 = vmatmul.mubr.msk.f32.vlgmr.msra.gmra.mrb[28].mxu1 %vm152_vm0, %v4819_v52 }
0x149d   :  { %3966 = vmatprep.mubr.msk.f32.mxu1 %vm4321_vm9, %v4319_v16 }
0x1564   :  { %v2071_v32 = vpop.f32.mrb[24].mxu1 }
0x1565   :  { %v3934_v33 = vpop.f32.mrb[25].mxu1 }
0x1568   :  { %v2238_v36 = vpop.f32.mrb[26].mxu1 }
0x1569   :  { %v3944_v37 = vpop.f32.mrb[27].mxu1  ;;  %3950 = vmatmul.mubr.msk.f32.vlgmr.msra.gmra.mrb[10].mxu0 %vm152_vm0, %v2238_v36 }
0x156a   :  { %4138 = vmatpush3.bf16.msra.mxu0 %v4875_v34  ;;  %3956 = vmatprep.mubr.msk.f32.mxu0 %vm4321_vm9, %v4319_v16 }
0x156b   :  { %3969 = vmatprep.subr.mxu0 %v4319_v16 }
0x156f   :  { %v2462_v38 = vpop.f32.mrb[28].mxu1 }
0x1570   :  { %v2466_v39 = vmul.f32 0.25, %v2462_v38  ;;  %v3963_v40 = vpop.f32.mrb[29].mxu1 }
0x1571   :  { %3957 = vmatmul.mubr.msk.f32.vlgmr.msra.gmra.mrb[10].mxu0 %vm152_vm0, %v2071_v32 }
0x1572   :  { %3971 = vmatprep.mubr.msk.f32.mxu0 %vm4321_vm9, %v4319_v16  ;;  %v2467_v42 = vadd.f32 %v2466_v39, %v4659_v6 }
0x1573   :  { %3970 = vmatpush3.xpose.msk.msra.mxu0 %vm152_vm0, %v2558_v41 }
0x1574   :  { %v2468_v43 = vsel %vm310_vm5, %v2467_v42, -inf  ;;  %4139 = vmatprep.subr.bf16.mxu0 %v4327_v17 }
0x1575   :  { %2469 = vmax.xlane.f32.xlu0 %v2468_v43  ;;  %v3587_v43 = vld [vmem:[%s5074_s16 + $0x20] sm:$0xff] }
0x1576   :  { %3972 = vmatmul.mubr.msk.f32.vlgmr.msra.gmra.mrb[12].mxu0 %vm152_vm0, %v2556_v13  ;;  %v3588_v13 = vld [vmem:[%s5074_s16 + $0x28] sm:$0xff] }
0x1577   :  { %4141 = vmatpush3.bf16.msra.mxu0 %v4134_v30  ;;  %3983 = vmatprep.mubr.msk.f32.mxu0 %vm4321_vm9, %v4319_v16 }
0x1578   :  { %4142 = vmatprep.subr.bf16.mxu0 %v4327_v17 }
0x1602   :  { %v2470_v44 = vpop.xlane.xlu0 %2469 }
0x1603   :  { %v2471_v45 = vsub.f32 %v2467_v42, %v2470_v44  ;;  %v4145_v44 = vpack.c.bf16 %v3588_v13, %v3587_v43  ;;  %v3181_v43 = vld [vmem:[%s5080_s22 + $0x10] sm:$0xff]  ;;  %v3182_v13 = vld [vmem:[%s5080_s22 + $0x18] sm:$0xff] }
0x1605   :  { %v2472_v46 = vmul.f32 1.442695, %v2471_v45  ;;  %v3590_v45 = vld [vmem:[%s5074_s16 + $0x38] sm:$0xff] }
0x1607   :  { %4256 = vpow2.f32 %v2472_v46 }
0x1611   :  { %v4257_v47 = vpop.eup %4256 }
0x1612   :  { %v2474_v50 = vsel %vm310_vm5, %v4257_v47, 0.0 }
0x1613   :  { %2475 = vadd.xlane.f32.xlu0 %v2474_v50 }
0x1644   :  { %v2384_v51 = vpop.f32.mrb[10].mxu0 }
0x1645   :  { %2388 = vst.msk [vmem:[#allocation2] sm:$0xff] %vm396_vm8, %v2384_v51  ;;  %v3958_v53 = vpop.f32.mrb[11].mxu0 }
0x1649   :  { %v2629_v54 = vpop.f32.mrb[12].mxu0 }
0x164a   :  { %v2633_v21 = vmul.f32 0.25, %v2629_v54  ;;  %v3973_v55 = vpop.f32.mrb[13].mxu0 }
0x164c   :  { %v2634_v56 = vadd.f32 %v2633_v21, %v4659_v6  ;;  %v2869_v17 = vld [vmem:[#allocation2] sm:$0xff] }
0x164d   :  { %v2879_v59 = vadd.f32 %v3582_v58, %v2869_v17 }
0x164e   :  { %v2635_v57 = vsel %vm310_vm5, %v2634_v56, -inf }
0x164f   :  { %2636 = vmax.xlane.f32.xlu1 %v2635_v57  ;;  %v2881_v60 = vadd.f32 %v2879_v59, %v4806_v48  ;;  %v3596_v57 = vld [vmem:[%s5076_s18 + $0x48] sm:$0xff]  ;;  %v3598_v59 = vld [vmem:[%s5076_s18 + $0x58] sm:$0xff] }
0x1651   :  { %v2887_v61 = vsel %vm396_vm8, %v2881_v60, 0.0 }
0x1660   :  { %2479 = vrot.lane.b32.xlu1 %v4819_v52, %s5123_s8 }
0x1684   :  { %2888 = vadd.xlane.f32.xlu1 %v2887_v61  ;;  %v3599_v61 = vld [vmem:[%s5076_s18 + $0x60] sm:$0xff] }
0x16a0   :  { %v2476_v62 = vpop.xlane.xlu0 %2475 }
0x16a1   :  { %4258 = vrcp.f32 %v2476_v62  ;;  %v3600_v62 = vld [vmem:[%s5076_s18 + $0x68] sm:$0xff] }
0x16ab   :  { %v4259_v63 = vpop.eup %4258 }
0x16ac   :  { %v2478_v2 = vmul.f32 %v4259_v63, %v4257_v47  ;;  %v3601_v63 = vld [vmem:[%s5076_s18 + $0x70] sm:$0xff] }
0x16dc   :  { %v2637_v6 = vpop.xlane.xlu1 %2636 }
0x16dd   :  { %v2638_v0 = vsub.f32 %v2634_v56, %v2637_v6  ;;  %v3595_v56 = vld [vmem:[%s5076_s18 + $0x40] sm:$0xff]  ;;  %v4161_v6 = vpack.c.bf16 %v3600_v62, %v3599_v61 }
0x16de   :  { %v4153_v17 = vpack.c.bf16 %v3596_v57, %v3595_v56  ;;  %v3610_v57 = vld [vmem:[%s5079_s21 + $0x1] ss:$0 sm:$0xff]  ;;  %v3611_v61 = vld [vmem:[%s5081_s23] ss:$0 sm:$0xff] }
0x16df   :  { %v2639_v1 = vmul.f32 1.442695, %v2638_v0  ;;  %v3602_v0 = vld [vmem:[%s5076_s18 + $0x78] sm:$0xff] }
0x16e0   :  { %v2480_v3 = vpop.permute.xlu1 %2479 }
0x16e1   :  { %4260 = vpow2.f32 %v2639_v1  ;;  %3965 = vmatpush3.msra.mxu1 %v2480_v3  ;;  %v4165_v1 = vpack.c.bf16 %v3602_v0, %v3601_v63 }
0x16e2   :  { %3967 = vmatmul.mubr.msk.f32.vlgmr.msra.gmra.mrb[30].mxu1 %vm310_vm5, %v2478_v2  ;;  %3974 = vmatprep.subr.mxu1 %v4319_v16  ;;  %v3592_v2 = vld [vmem:[%s5075_s17 + $0x1] ss:$0 sm:$0xff] }
0x16e3   :  { %3976 = vmatprep.mubr.msk.f32.mxu1 %vm4321_vm9, %v4319_v16 }
0x16eb   :  { %v4261_v48 = vpop.eup %4260 }
0x16ec   :  { %v2641_v26 = vsel %vm310_vm5, %v4261_v48, 0.0 }
0x16ed   :  { %2642 = vadd.xlane.f32.xlu0 %v2641_v26 }
0x1703   :  { %2646 = vrot.lane.b32.xlu0 %v4819_v52, %s4326_s2 }
0x1711   :  { %v2889_v4 = vpop.xlane.xlu1 %2888 }
0x1712   :  { %v2893_v7 = vmul.f32 0.03125, %v2889_v4 }
0x1714   :  { %v2895_v8 = vsub.f32 %v2881_v60, %v2893_v7 }
0x1716   :  { %v2897_v9 = vmul.f32 %v2895_v8, %v2895_v8 }
0x1718   :  { %v2899_v10 = vsel %vm396_vm8, %v2897_v9, 0.0 }
0x1719   :  { %2900 = vadd.xlane.f32.xlu1 %v2899_v10 }
0x177a   :  { %v2643_v11 = vpop.xlane.xlu0 %2642 }
0x177b   :  { %4262 = vrcp.f32 %v2643_v11 }
0x177e   :  { %v2647_v12 = vpop.permute.xlu0 %2646 }
0x177f   :  { %3975 = vmatpush3.msra.mxu1 %v2647_v12 }
0x1780   :  { %4146 = vmatprep.subr.bf16.mxu1 %v4145_v44 }
0x1785   :  { %v4263_v35 = vpop.eup %4262 }
0x1786   :  { %v2645_v15 = vmul.f32 %v4263_v35, %v4261_v48 }
0x1788   :  { %3977 = vmatmul.mubr.msk.f32.vlgmr.msra.gmra.mrb[32].mxu1 %vm310_vm5, %v2645_v15 }
0x1789   :  { %4148 = vmatpush3.bf16.msra.mxu1 %v4145_v44  ;;  %v4173_v44 = vpack.c.bf16 %v3182_v13, %v3181_v43  ;;  %v3615_v13 = vld [vmem:[%s5083_s25] ss:$0 sm:$0xff] }
0x17a6   :  { %v2901_v18 = vpop.xlane.xlu1 %2900 }
0x17a7   :  { %v2905_v19 = vmul.f32 0.03125, %v2901_v18 }
0x17a9   :  { %v2907_v20 = vadd.f32 1e-12, %v2905_v19 }
0x17ab   :  { %4264 = vrsqrt.f32 %v2907_v20  ;;  %v3604_v20 = vld [vmem:[%s5077_s19 + $0x1] ss:$0 sm:$0xff] }
0x17b5   :  { %v4265_v52 = vpop.eup %4264  ;;  %v2551_v24 = vpop.f32.mrb[30].mxu1 }
0x17b6   :  { %v3968_v27 = vpop.f32.mrb[31].mxu1  ;;  %v2911_v22 = vmul.f32 %v4265_v52, %v2895_v8 }
0x17b8   :  { %v2919_v29 = vmul.f32 %v3585_v25, %v2911_v22 }
0x17ba   :  { %v4919_v5 = vadd.f32 %v3586_v28, %v2919_v29 }
0x17bc   :  { %4001 = vmatprep.mubr.msk.f32.mxu1 %vm396_vm8, %v4919_v5 }
0x185b   :  { %v2718_v30 = vpop.f32.mrb[32].mxu1 }
0x185c   :  { %v3978_v31 = vpop.f32.mrb[33].mxu1  ;;  %3984 = vmatmul.mubr.msk.f32.vlgmr.msra.gmra.mrb[14].mxu0 %vm152_vm0, %v2718_v30 }
0x185d   :  { %4144 = vmatpush3.bf16.msra.mxu0 %v4875_v34  ;;  %3990 = vmatprep.mubr.msk.f32.mxu0 %vm4321_vm9, %v4319_v16 }
0x185e   :  { %4154 = vmatprep.subr.bf16.mxu0 %v4153_v17 }
0x1864   :  { %3991 = vmatmul.mubr.msk.f32.vlgmr.msra.gmra.mrb[14].mxu0 %vm152_vm0, %v2551_v24  ;;  %vm3493_vm0 = vcmask 0  }
0x1865   :  { %4156 = vmatpush3.bf16.msra.mxu0 %v4153_v17 }
0x1937   :  { %v2864_v23 = vpop.f32.mrb[14].mxu0 }
0x1938   :  { %2868 = vst.msk [vmem:[#allocation2 + $0x8] sm:$0xff] %vm396_vm8, %v2864_v23  ;;  %v3992_v32 = vpop.f32.mrb[15].mxu0 }
0x193f   :  { %v2870_v33 = vld [vmem:[#allocation2 + $0x8] sm:$0xff] }
0x1940   :  { %v2880_v36 = vadd.f32 %v3582_v58, %v2870_v33  ;;  %v3597_v58 = vld [vmem:[%s5076_s18 + $0x50] sm:$0xff] }
0x1941   :  { %v4157_v60 = vpack.c.bf16 %v3598_v59, %v3597_v58 }
0x1942   :  { %v2882_v37 = vadd.f32 %v2880_v36, %v4808_v49  ;;  %v3589_v49 = vld [vmem:[%s5074_s16 + $0x30] sm:$0xff]  ;;  %s3501_s16 = sshll.u32 %s4328_s0, 4  ;;  %s3502_s16 = int_to_ptr.vmem [resolvable:$true] %s3501_s16 }
0x1943   :  { %v4149_v46 = vpack.c.bf16 %v3590_v45, %v3589_v49  ;;  %4158 = vmatprep.subr.bf16.mxu0 %v4157_v60  ;;  %s4294_s13 = scalar_lea.vmem %s3502_s16, 16  ;;  %p4299_p1 = scmp.lt.s32.totalorder %s3502_s16, %s3502_s16 }
0x1944   :  { %v2890_v38 = vsel %vm396_vm8, %v2882_v37, 0.0  ;;  %4160 = vmatpush3.bf16.msra.mxu0 %v4157_v60  ;;  %p4295_p0 = scmp.ne.s32.totalorder %s3502_s16, %s4294_s13 }
0x1945   :  { %2891 = vadd.xlane.f32.xlu0 %v2890_v38  ;;  %4150 = vmatprep.subr.bf16.mxu1 %v4149_v46 }
0x1946   :  { %4152 = vmatpush3.bf16.msra.mxu1 %v4149_v46  ;;  %4162 = vmatprep.subr.bf16.mxu0 %v4161_v6 }
0x1948   :  { %4164 = vmatpush3.bf16.msra.mxu0 %v4161_v6 }
0x1949   :  { %4166 = vmatprep.subr.bf16.mxu0 %v4165_v1 }
0x194c   :  { %4168 = vmatpush3.bf16.msra.mxu0 %v4165_v1 }
0x19d2   :  { %v2892_v39 = vpop.xlane.xlu0 %2891 }
0x19d3   :  { %v2894_v40 = vmul.f32 0.03125, %v2892_v39 }
0x19d5   :  { %v2896_v41 = vsub.f32 %v2882_v37, %v2894_v40 }
0x19d7   :  { %v2898_v34 = vmul.f32 %v2896_v41, %v2896_v41 }
0x19d9   :  { %v2902_v42 = vsel %vm396_vm8, %v2898_v34, 0.0  ;;  %v3180_v34 = vld [vmem:[%s5080_s22 + $0x8] sm:$0xff] }
0x19da   :  { %2903 = vadd.xlane.f32.xlu0 %v2902_v42 }
0x1a67   :  { %v2904_v47 = vpop.xlane.xlu0 %2903 }
0x1a68   :  { %v2906_v50 = vmul.f32 0.03125, %v2904_v47 }
0x1a6a   :  { %v2908_v51 = vadd.f32 1e-12, %v2906_v50 }
0x1a6c   :  { %4266 = vrsqrt.f32 %v2908_v51 }
0x1a76   :  { %v4267_v53 = vpop.eup %4266 }
0x1a77   :  { %v2912_v54 = vmul.f32 %v4267_v53, %v2896_v41 }
0x1a79   :  { %v2920_v21 = vmul.f32 %v3585_v25, %v2912_v54  ;;  %v3609_v54 = vld [vmem:[%s5078_s20 + $0x1] ss:$0 sm:$0xff] }
0x1a7b   :  { %v2928_v55 = vadd.f32 %v3586_v28, %v2920_v21 }
0x1a7d   :  { %4002 = vmatmul.mubr.msk.f32.vlgmr.msra.gmra.mrb[34].mxu1 %vm396_vm8, %v2928_v55 }
0x1b50   :  { %v4003_v3 = vpop.f32.mrb[34].mxu1 }
0x1b51   :  { %v3020_v48 = vadd.f32 %v4003_v3, %v3592_v2  ;;  %v3014_v26 = vpop.f32.mrb[35].mxu1 }
0x1b52   :  { %v3015_v4 = vadd.f32 %v3592_v2, %v3014_v26 }
0x1b53   :  { %v3026_v7 = vmul.f32 0.70710677, %v3020_v48  ;;  %v3024_v15 = vmul.f32 0.5, %v3020_v48 }
0x1b54   :  { %v3025_v8 = vmul.f32 0.70710677, %v3015_v4  ;;  %v3023_v12 = vmul.f32 0.5, %v3015_v4 }
0x1b55   :  { %4268 = verf.f32 %v3026_v7 }
0x1b56   :  { %4270 = verf.f32 %v3025_v8 }
0x1b5f   :  { %v4269_v9 = vpop.eup %4268 }
0x1b60   :  { %v4271_v10 = vpop.eup %4270  ;;  %v3030_v11 = vadd.f32 1.0, %v4269_v9 }
0x1b61   :  { %v3029_v35 = vadd.f32 1.0, %v4271_v10 }
0x1b62   :  { %v3032_v19 = vmul.f32 %v3030_v11, %v3024_v15 }
0x1b63   :  { %v3031_v18 = vmul.f32 %v3029_v35, %v3023_v12 }
0x1b65   :  { %4020 = vmatprep.mubr.msk.f32.mxu0 %vm1682_vm10, %v3031_v18 }
0x1b66   :  { %4021 = vmatmul.mubr.msk.f32.vlgmr.msra.gmra.mrb[16].mxu0 %vm1682_vm10, %v3032_v19 }
0x1c39   :  { %v4022_v52 = vpop.f32.mrb[16].mxu0 }
0x1c3a   :  { %v3128_v24 = vadd.f32 %v4022_v52, %v3604_v20  ;;  %v3122_v25 = vpop.f32.mrb[17].mxu0 }
0x1c3b   :  { %v3123_v27 = vadd.f32 %v3604_v20, %v3122_v25 }
0x1c3c   :  { %v3132_v22 = vadd.f32 %v3128_v24, %v2928_v55 }
0x1c3d   :  { %v3131_v28 = vadd.f32 %v3123_v27, %v4919_v5  ;;  %v3179_v5 = vld [vmem:[%s5080_s22] sm:$0xff]  ;;  %s4298_s22 = scalar_lea.vmem %s3502_s16, 32 }
0x1c3e   :  { %v3140_v29 = vsel %vm396_vm8, %v3132_v22, 0.0  ;;  %v4169_v42 = vpack.c.bf16 %v3180_v34, %v3179_v5  ;;  %v3614_v5 = vld [vmem:[%s5082_s24] ss:$0 sm:$0xff]  ;;  %p4300_p2 = scmp.lt.s32.totalorder %s4298_s22, %s4294_s13 }
0x1c3f   :  { %3141 = vadd.xlane.f32.xlu0 %v3140_v29  ;;  %v3137_v30 = vsel %vm396_vm8, %v3131_v28, 0.0  ;;  %v3326_v29 = vld [vmem:[%s5084_s26 + $0x8] sm:$0xff] }
0x1c40   :  { %3138 = vadd.xlane.f32.xlu1 %v3137_v30  ;;  %4170 = vmatprep.subr.bf16.mxu1 %v4169_v42  ;;  %p4301_p3 = por %p4300_p2, %p4299_p1 }
0x1c41   :  { %4172 = vmatpush3.bf16.msra.mxu1 %v4169_v42 }
0x1c42   :  { %4174 = vmatprep.subr.bf16.mxu1 %v4173_v44  ;;  %p4302_p4 = pnand %p4301_p3, %p4295_p0 }
0x1c45   :  { %4176 = vmatpush3.bf16.msra.mxu1 %v4173_v44 }
0x1ccc   :  { %v3142_v31 = vpop.xlane.xlu0 %3141 }
0x1ccd   :  { %v3144_v23 = vmul.f32 0.03125, %v3142_v31  ;;  %v3139_v32 = vpop.xlane.xlu1 %3138  ;;  %v3327_v31 = vld [vmem:[%s5084_s26 + $0x10] sm:$0xff] }
0x1cce   :  { %v3143_v33 = vmul.f32 0.03125, %v3139_v32 }
0x1ccf   :  { %v3146_v36 = vsub.f32 %v3132_v22, %v3144_v23  ;;  %v3328_v23 = vld [vmem:[%s5084_s26 + $0x18] sm:$0xff] }
0x1cd0   :  { %v3145_v37 = vsub.f32 %v3131_v28, %v3143_v33  ;;  %v3325_v28 = vld [vmem:[%s5084_s26] sm:$0xff]  ;;  %v4181_v32 = vpack.c.bf16 %v3328_v23, %v3327_v31 }
0x1cd1   :  { %v3148_v38 = vmul.f32 %v3146_v36, %v3146_v36  ;;  %v4177_v30 = vpack.c.bf16 %v3326_v29, %v3325_v28 }
0x1cd2   :  { %v3147_v39 = vmul.f32 %v3145_v37, %v3145_v37 }
0x1cd3   :  { %v3152_v40 = vsel %vm396_vm8, %v3148_v38, 0.0  ;;  %4178 = vmatprep.subr.bf16.mxu1 %v4177_v30 }
0x1cd4   :  { %3153 = vadd.xlane.f32.xlu0 %v3152_v40  ;;  %v3149_v41 = vsel %vm396_vm8, %v3147_v39, 0.0 }
0x1cd5   :  { %3150 = vadd.xlane.f32.xlu1 %v3149_v41 }
0x1d61   :  { %v3154_v49 = vpop.xlane.xlu0 %3153 }
0x1d62   :  { %v3156_v45 = vmul.f32 0.03125, %v3154_v49  ;;  %v3151_v46 = vpop.xlane.xlu1 %3150 }
0x1d63   :  { %v3155_v47 = vmul.f32 0.03125, %v3151_v46 }
0x1d64   :  { %v3158_v50 = vadd.f32 1e-12, %v3156_v45 }
0x1d65   :  { %v3157_v51 = vadd.f32 1e-12, %v3155_v47  ;;  %v3616_v47 = vld [vmem:[%s5085_s27] ss:$0 sm:$0xff] }
0x1d66   :  { %4272 = vrsqrt.f32 %v3158_v50 }
0x1d67   :  { %4274 = vrsqrt.f32 %v3157_v51 }
0x1d70   :  { %v4273_v53 = vpop.eup %4272 }
0x1d71   :  { %v4275_v21 = vpop.eup %4274  ;;  %v3162_v55 = vmul.f32 %v4273_v53, %v3146_v36 }
0x1d72   :  { %v3161_v56 = vmul.f32 %v4275_v21, %v3145_v37  ;;  %v3417_v21 = vld [vmem:[%s5124_s7] sm:$0xff] }
0x1d73   :  { %v3170_v17 = vmul.f32 %v3609_v54, %v3162_v55  ;;  %v3418_v55 = vld [vmem:[%s5124_s7 + $0x8] sm:$0xff]  ;;  %vm3455_vm13 = vcmp.ne.s32.totalorder %v3417_v21, 4294967196 }
0x1d74   :  { %v3169_v58 = vmul.f32 %v3609_v54, %v3161_v56  ;;  %vm3456_vm14 = vcmp.ne.s32.totalorder %v3418_v55, 4294967196 }
0x1d75   :  { %v3178_v60 = vadd.f32 %v3610_v57, %v3170_v17 }
0x1d76   :  { %v3177_v59 = vadd.f32 %v3610_v57, %v3169_v58 }
0x1d78   :  { %4031 = vmatprep.mubr.msk.f32.mxu1 %vm396_vm8, %v3177_v59 }
0x1d79   :  { %4032 = vmatmul.mubr.msk.f32.vlgmr.msra.gmra.mrb[36].mxu1 %vm396_vm8, %v3178_v60 }
0x1d7a   :  { %4180 = vmatpush3.bf16.msra.mxu1 %v4177_v30 }
0x1d7b   :  { %4182 = vmatprep.subr.bf16.mxu1 %v4181_v32 }
0x1d7e   :  { %4184 = vmatpush3.bf16.msra.mxu1 %v4181_v32 }
0x1e4c   :  { %v4033_v62 = vpop.f32.mrb[36].mxu1 }
0x1e4d   :  { %v3268_v6 = vadd.f32 %v4033_v62, %v3611_v61  ;;  %v3262_v63 = vpop.f32.mrb[37].mxu1 }
0x1e4e   :  { %v3263_v0 = vadd.f32 %v3611_v61, %v3262_v63 }
0x1e4f   :  { %v3274_v1 = vmul.f32 0.70710677, %v3268_v6  ;;  %v3272_v26 = vmul.f32 0.5, %v3268_v6 }
0x1e50   :  { %v3273_v2 = vmul.f32 0.70710677, %v3263_v0  ;;  %v3271_v7 = vmul.f32 0.5, %v3263_v0 }
0x1e51   :  { %4276 = verf.f32 %v3274_v1 }
0x1e52   :  { %4278 = verf.f32 %v3273_v2  ;;  %v3620_v2 = vsel %vm3456_vm14, 1.0, %v4319_v16 }
0x1e5b   :  { %v4277_v3 = vpop.eup %4276 }
0x1e5c   :  { %v4279_v48 = vpop.eup %4278  ;;  %v3278_v4 = vadd.f32 1.0, %v4277_v3  ;;  %v3619_v3 = vsel %vm3455_vm13, 1.0, %v4319_v16 }
0x1e5d   :  { %v3277_v8 = vadd.f32 1.0, %v4279_v48  ;;  %v3476_v48 = vsel %vm3463_vm15, %v3619_v3, 0.0 }
0x1e5e   :  { %v3280_v9 = vmul.f32 %v3278_v4, %v3272_v26  ;;  %v3477_v26 = vsel %vm3463_vm15, %v3620_v2, 0.0 }
0x1e5f   :  { %v3279_v10 = vmul.f32 %v3277_v8, %v3271_v7  ;;  %v3478_v4 = vadd.f32 %v3477_v26, %v3476_v48 }
0x1e60   :  { %v3286_v11 = vsel %vm396_vm8, %v3280_v9, 0.0 }
0x1e61   :  { %3287 = vadd.xlane.f32.xlu0 %v3286_v11  ;;  %v3283_v12 = vsel %vm396_vm8, %v3279_v10, 0.0 }
0x1e62   :  { %3284 = vadd.xlane.f32.xlu1 %v3283_v12 }
0x1eee   :  { %v3288_v35 = vpop.xlane.xlu0 %3287 }
0x1eef   :  { %v3290_v15 = vmul.f32 0.03125, %v3288_v35  ;;  %v3285_v18 = vpop.xlane.xlu1 %3284 }
0x1ef0   :  { %v3289_v19 = vmul.f32 0.03125, %v3285_v18 }
0x1ef1   :  { %v3292_v20 = vsub.f32 %v3280_v9, %v3290_v15 }
0x1ef2   :  { %v3291_v52 = vsub.f32 %v3279_v10, %v3289_v19 }
0x1ef3   :  { %v3294_v24 = vmul.f32 %v3292_v20, %v3292_v20 }
0x1ef4   :  { %v3293_v25 = vmul.f32 %v3291_v52, %v3291_v52 }
0x1ef5   :  { %v3298_v27 = vsel %vm396_vm8, %v3294_v24, 0.0 }
0x1ef6   :  { %3299 = vadd.xlane.f32.xlu0 %v3298_v27  ;;  %v3295_v22 = vsel %vm396_vm8, %v3293_v25, 0.0 }
0x1ef7   :  { %3296 = vadd.xlane.f32.xlu1 %v3295_v22 }
0x1f83   :  { %v3300_v33 = vpop.xlane.xlu0 %3299 }
0x1f84   :  { %v3302_v36 = vmul.f32 0.03125, %v3300_v33  ;;  %v3297_v37 = vpop.xlane.xlu1 %3296 }
0x1f85   :  { %v3301_v38 = vmul.f32 0.03125, %v3297_v37 }
0x1f86   :  { %v3304_v39 = vadd.f32 1e-12, %v3302_v36 }
0x1f87   :  { %v3303_v40 = vadd.f32 1e-12, %v3301_v38 }
0x1f88   :  { %4280 = vrsqrt.f32 %v3304_v39 }
0x1f89   :  { %4282 = vrsqrt.f32 %v3303_v40 }
0x1f92   :  { %v4281_v41 = vpop.eup %4280 }
0x1f93   :  { %v4283_v34 = vpop.eup %4282  ;;  %v3308_v42 = vmul.f32 %v4281_v41, %v3292_v20 }
0x1f94   :  { %v3307_v43 = vmul.f32 %v4283_v34, %v3291_v52 }
0x1f95   :  { %v3316_v44 = vmul.f32 %v3614_v5, %v3308_v42 }
0x1f96   :  { %v3315_v49 = vmul.f32 %v3614_v5, %v3307_v43 }
0x1f97   :  { %v3324_v46 = vadd.f32 %v3615_v13, %v3316_v44 }
0x1f98   :  { %v3323_v45 = vadd.f32 %v3615_v13, %v3315_v49 }
0x1f9a   :  { %4042 = vmatprep.mubr.msk.f32.mxu1 %vm396_vm8, %v3323_v45 }
0x1f9b   :  { %4043 = vmatmul.mubr.msk.f32.vlgmr.msra.gmra.mrb[38].mxu1 %vm396_vm8, %v3324_v46 }
0x206e   :  { %v4044_v50 = vpop.f32.mrb[38].mxu1 }
0x206f   :  { %v3414_v51 = vadd.f32 %v4044_v50, %v3616_v47  ;;  %v3408_v53 = vpop.f32.mrb[39].mxu1 }
0x2070   :  { %v3409_v54 = vadd.f32 %v3616_v47, %v3408_v53 }
0x2071   :  { %3421 = vmax.xlane.f32.xlu0 %v3414_v51 }
0x2072   :  { %3419 = vmax.xlane.f32.xlu1 %v3409_v54 }
0x2083   :  { %3440 = vperm.xlu1 %4215, %v3417_v21  }
0x2087   :  { %3443 = vperm.xlu0 %4214, %v3418_v55  }
0x20fe   :  { %v3422_v56 = vpop.xlane.xlu0 %3421 }
0x20ff   :  { %v3424_v57 = vsub.f32 %v3414_v51, %v3422_v56  ;;  %v3420_v17 = vpop.xlane.xlu1 %3419 }
0x2100   :  { %v3423_v58 = vsub.f32 %v3409_v54, %v3420_v17 }
0x2101   :  { %v3427_v59 = vmul.f32 1.442695, %v3424_v57 }
0x2102   :  { %v3425_v60 = vmul.f32 1.442695, %v3423_v58 }
0x2103   :  { %4284 = vpow2.f32 %v3427_v59  ;;  %v3441_v62 = vpop.permute.xlu1 %3440 }
0x2104   :  { %4286 = vpow2.f32 %v3425_v60  ;;  %vm3445_vm12 = vcmp.eq.s32.totalorder %v4505_v14, %v3441_v62 }
0x2105   :  { %v3447_v1 = vsel %vm3445_vm12, %v3409_v54, 0.0 }
0x2106   :  { %v3444_v61 = vpop.permute.xlu0 %3443 }
0x2107   :  { %vm3446_vm11 = vcmp.eq.s32.totalorder %v4505_v14, %v3444_v61 }
0x2108   :  { %v3448_v0 = vsel %vm3446_vm11, %v3414_v51, 0.0 }
0x210d   :  { %v4285_v6 = vpop.eup %4284 }
0x210e   :  { %v4287_v63 = vpop.eup %4286  ;;  %3431 = vadd.xlane.f32.xlu0 %v4285_v6 }
0x210f   :  { %3429 = vadd.xlane.f32.xlu1 %v4287_v63 }
0x2112   :  { %3451 = vadd.xlane.f32.xlu0 %v3448_v0 }
0x2113   :  { %3449 = vadd.xlane.f32.xlu1 %v3447_v1 }
0x2116   :  { %3479 = vadd.xlane.f32.xlu0 %v3478_v4 }
0x219b   :  { %v3432_v7 = vpop.xlane.xlu0 %3431 }
0x219c   :  { %4288 = vlog2.f32 %v3432_v7  ;;  %v3430_v14 = vpop.xlane.xlu1 %3429 }
0x219d   :  { %4290 = vlog2.f32 %v3430_v14 }
0x219f   :  { %v3452_v35 = vpop.xlane.xlu0 %3451 }
0x21a0   :  { %v3450_v16 = vpop.xlane.xlu1 %3449 }
0x21a3   :  { %v3480_v22 = vpop.xlane.xlu0 %3479 }
0x21a4   :  { %v3481_v28 = vrot.slane %v3480_v22, 4 }
0x21a6   :  { %v4289_v8 = vpop.eup %4288  ;;  %v3482_v29 = vadd.f32 %v3481_v28, %v3480_v22 }
0x21a7   :  { %v4291_v9 = vpop.eup %4290  ;;  %v3436_v10 = vmul.f32 0.6931472, %v4289_v8 }
0x21a8   :  { %v3434_v11 = vmul.f32 0.6931472, %v4291_v9  ;;  %v3483_v30 = vrot.slane %v3482_v29, 2 }
0x21a9   :  { %v3438_v12 = vadd.f32 %v3436_v10, %v3422_v56 }
0x21aa   :  { %v3437_v15 = vadd.f32 %v3434_v11, %v3420_v17  ;;  %v3484_v33 = vadd.f32 %v3483_v30, %v3482_v29 }
0x21ab   :  { %v3454_v18 = vsub.f32 %v3438_v12, %v3452_v35 }
0x21ac   :  { %v3453_v19 = vsub.f32 %v3437_v15, %v3450_v16  ;;  %v3485_v38 = vrot.slane %v3484_v33, 1 }
0x21ad   :  { %v3462_v20 = vmul.f32 %v3620_v2, %v3454_v18 }
0x21ae   :  { %v3461_v52 = vmul.f32 %v3619_v3, %v3453_v19  ;;  %v3486_v41 = vadd.f32 %v3485_v38, %v3484_v33 }
0x21af   :  { %v3465_v24 = vsel %vm3463_vm15, %v3462_v20, 0.0 }
0x21b0   :  { %v3464_v25 = vsel %vm3463_vm15, %v3461_v52, 0.0 }
0x21b1   :  { %v3466_v27 = vadd.f32 %v3465_v24, %v3464_v25 }
0x21b3   :  { %3467 = vadd.xlane.f32.xlu1 %v3466_v27 }
0x2240   :  { %v3468_v31 = vpop.xlane.xlu1 %3467 }
0x2241   :  { %v3469_v23 = vrot.slane %v3468_v31, 4 }
0x2243   :  { %v3470_v32 = vadd.f32 %v3469_v23, %v3468_v31 }
0x2245   :  { %v3471_v36 = vrot.slane %v3470_v32, 2 }
0x2247   :  { %v3472_v37 = vadd.f32 %v3471_v36, %v3470_v32 }
0x2249   :  { %v3473_v39 = vrot.slane %v3472_v37, 1 }
0x224b   :  { %v3474_v40 = vadd.f32 %v3473_v39, %v3472_v37 }
0x224d   :  { %4197 = vpush %v3474_v40 }
0x224e   :  { %4199 = vpush %v3486_v41 }
0x227e   :  { %s4198_s27 = spop %4197 }
0x227f   :  { %s4200_s1 = spop %4199 }
0x2280   :  { %v3488_v5 = vstv %s4200_s1 }
0x2281   :  { %4292 = vrcp.f32 %v3488_v5 }
0x228b   :  { %v4293_v34 = vpop.eup %4292 }
0x228c   :  { %4201 = vpush %v4293_v34 }
0x22bd   :  { %s4202_s12 = spop %4201 }
0x22be   :  { %s3491_s4 = smul.f32 %s4202_s12, %s4198_s27 }
0x22c0   :  { %v3492_v42 = vstv %s3491_s4 }
0x22c1   :  { %3494 = vst.msk [vmem:[#allocation3] sm:$0x1] %vm3493_vm0, %v3492_v42 }
0x22c2   :  { %4305 = shalt.err (!%p4302_p4)
}
0x22c3   :  { %s4306_s9 = scalar_lea.hbm %s5086_s28, 16 }
0x22c4   :  { %p4307_p5 = scmp.ne.s32.totalorder %s5086_s28, %s4306_s9  ;;  %p4310_p6 = scmp.lt.u32.totalorder %s4306_s9, %s5086_s28 }
0x22c6   :  { %p4312_p7 = pnand %p4310_p6, %p4307_p5 }
0x22c8   :  { %4315 = shalt.err (!%p4312_p7)
}
0x22c9   :  { %3504 = dma.vmem_to_hbm [thread:$0]  %s3502_s16, 16, %s5086_s28, [#allocation4]  }
0x22ca   :  { %4316 = dma.done.wait [#allocation4], 16  }
0x22cb   :  { %4317 = vsyncadd [#allocation4], 4294967280 }
0x22cc   :  { %3508 = vsyncpa [#allocation4], 1 }

</bundles_post_ra>
